<compile_context>
chip_gen: v6e
topology: v6e:2x2x1
jax: 0.10.0
libtpu: 0.0.40
codegen_flags: <defaults>
</compile_context>

<pallas_src>
import functools

import jax
import jax.numpy as jnp
from jax.experimental import pallas as pl
from jax.experimental.pallas import tpu as pltpu

N = 30                 # neurons per network (from the torch module)
NP = 32                # N padded to a sublane-group multiple
XROWS = 8              # augmented input rows: [x0, x1, 1, 0, 0, 0, 0, 0]
K_TOT = XROWS + 2 * NP # 72 — contraction dim of the fused dot
SROW = XROWS           # rows [8:40)  of lhs scratch ARE s
FROW = XROWS + NP      # rows [40:72) of lhs scratch ARE s_fast
TAU_M = 10.0
TAU_S = 10.0
TAU_S_FAST = 1.0


# ----------------------------------------------------------------------------
# Pallas kernel: TT NLIF time steps per grid step; grid = (row_group, T//TT).
# ----------------------------------------------------------------------------
def nlif_kernel(x_ref, w_ref, init_ref, out_ref, lhs_scr, v_scr):
    # x_ref    : (TT, 8, Rb)      transposed augmented input rows [x0,x1,1,0,..]
    # w_ref    : (32, 72)         [W_in | I_o | 0 | mask*W_syn | mask*W_fast]
    # init_ref : (3, 32, Rb)      initial [v ; s ; s_fast] for this row group
    # out_ref  : (TT, 4, 32, Rb)  packed per-step [spiked ; v ; s ; s_fast]
    # lhs_scr  : (72, Rb)         persistent dot operand (x rows + s + s_fast)
    # v_scr    : (32, Rb)         persistent membrane potential

    @pl.when(pl.program_id(1) == 0)
    def _init():
        v_scr[...] = init_ref[0]
        lhs_scr[SROW:FROW, :] = init_ref[1]
        lhs_scr[FROW:K_TOT, :] = init_ref[2]

    w = w_ref[...]
    tt_steps = x_ref.shape[0]

    def step(tt, carry):
        # Overwrite the input rows of the persistent lhs operand.
        lhs_scr[0:XROWS, :] = x_ref[tt]
        s = lhs_scr[SROW:FROW, :]
        sf = lhs_scr[FROW:K_TOT, :]
        v = v_scr[...]

        # Single fused MXU dot: I_in + I_o + I_syn + I_fast_syn, transposed
        # layout (neurons in sublanes, networks in lanes).
        i_tot = jnp.dot(w, lhs_scr[...], preferred_element_type=jnp.float32)

        dv = i_tot / TAU_M
        v_next = v + dv
        gating = jnp.clip(v_next, 0.0, 1.0)
        dvc = jnp.clip(dv, -1.0, 1.0)
        g = gating * dvc
        s_new = s + (g - s) / TAU_S
        sf_new = sf + (g - sf) / TAU_S_FAST
        spiked = jnp.logical_or(v_next >= 1.0, v_next <= -1.0).astype(jnp.float32)
        v_new = (1.0 - spiked) * v_next

        out_ref[tt, 0, :, :] = spiked
        out_ref[tt, 1, :, :] = v_new
        out_ref[tt, 2, :, :] = s_new
        out_ref[tt, 3, :, :] = sf_new

        v_scr[...] = v_new
        lhs_scr[SROW:FROW, :] = s_new
        lhs_scr[FROW:K_TOT, :] = sf_new
        return carry

    jax.lax.fori_loop(0, tt_steps, step, 0, unroll=True)


# ----------------------------------------------------------------------------
# Host wrapper: full multi-step simulation in one pallas_call.
# ----------------------------------------------------------------------------
@functools.partial(jax.jit, static_argnames=("tt", "r_blk"))
def nlif_simulate(x_seq, params, v0, s0, sf0, *, tt=8, r_blk=128):
    """Simulate T NLIF steps for E ensembles of B networks (shared parameters).

    x_seq:  (E, T, B, 2)
    params: dict with W_in (N,2), W_syn (N,N), W_fast (N,N), O (2,N), I_o (N,)
    v0/s0/sf0: (E, B, N) initial state
    returns spiked (E,T,B,N), readout (E,T,B,2), v, s, s_fast (E,T,B,N)
    """
    f32 = jnp.float32
    E, T, B, _ = x_seq.shape
    R = E * B                              # all independent networks -> lanes
    G = pl.cdiv(R, r_blk)                  # row groups ("parallel" grid axis)
    R_pad = G * r_blk
    TB = pl.cdiv(T, tt)                    # time blocks ("arbitrary" grid axis)
    T_pad = TB * tt

    # ---- transposed, lane-dense inputs (built once, outside the kernel) ----
    # x: (E,T,B,2) -> (T_pad, 8, R_pad); row 2 is the constant 1.0 bias row.
    x_flat = x_seq.astype(f32).transpose(1, 0, 2, 3).reshape(T, R, 2)
    x_tr = x_flat.transpose(0, 2, 1)                              # (T, 2, R)
    xa = jnp.zeros((T_pad, XROWS, R_pad), f32)
    xa = xa.at[:T, 0:2, :R].set(x_tr)
    xa = xa.at[:, 2, :].set(1.0)

    # Stacked weight block (32, 72): output rows padded 30 -> 32 with zeros,
    # self-recurrence mask applied on the host.
    mask = jnp.ones((N, N), f32) - jnp.eye(N, dtype=f32)
    w32 = jnp.zeros((NP, K_TOT), f32)
    w32 = w32.at[:N, 0:2].set(params["W_in"].astype(f32))
    w32 = w32.at[:N, 2].set(params["I_o"].astype(f32))
    w32 = w32.at[:N, SROW:SROW + N].set(mask * params["W_syn"].astype(f32))
    w32 = w32.at[:N, FROW:FROW + N].set(mask * params["W_fast"].astype(f32))

    def to_rows(a):  # (E, B, N) -> (NP, R_pad), transposed + padded
        z = jnp.zeros((NP, R_pad), f32)
        return z.at[:N, :R].set(a.astype(f32).reshape(R, N).T)

    init_state = jnp.stack([to_rows(v0), to_rows(s0), to_rows(sf0)], axis=0)

    out = pl.pallas_call(
        nlif_kernel,
        out_shape=jax.ShapeDtypeStruct((T_pad, 4, NP, R_pad), f32),
        grid_spec=pltpu.PrefetchScalarGridSpec(
            num_scalar_prefetch=0,
            grid=(G, TB),
            in_specs=[
                pl.BlockSpec((tt, XROWS, r_blk), lambda g, t: (t, 0, g)),
                pl.BlockSpec((NP, K_TOT), lambda g, t: (0, 0)),
                pl.BlockSpec((3, NP, r_blk), lambda g, t: (0, 0, g)),
            ],
            out_specs=pl.BlockSpec((tt, 4, NP, r_blk), lambda g, t: (t, 0, 0, g)),
            scratch_shapes=[
                pltpu.VMEM((K_TOT, r_blk), f32),   # lhs = [x ; s ; s_fast]
                pltpu.VMEM((NP, r_blk), f32),      # membrane potential v
            ],
        ),
        compiler_params=pltpu.CompilerParams(
            dimension_semantics=("parallel", "arbitrary")
        ),
    )(xa, w32, init_state)

    # ---- un-pad / un-transpose and compute the readout in one XLA matmul ----
    out = out[:T, :, :N, :R]                                  # (T, 4, N, R)

    def to_etbn(a):                                           # (T, N, R) -> (E,T,B,N)
        return a.reshape(T, N, E, B).transpose(2, 0, 3, 1)

    spiked = to_etbn(out[:, 0])
    v_seq = to_etbn(out[:, 1])
    s_seq = to_etbn(out[:, 2])
    sf_seq = to_etbn(out[:, 3])
    readout = jnp.einsum("etbn,on->etbo", s_seq, params["O"].astype(f32))
    return spiked, readout, v_seq, s_seq, sf_seq


# ----------------------------------------------------------------------------
# Pure-JAX reference (mirrors the PyTorch forward, looped over time).
# ----------------------------------------------------------------------------
def nlif_ref_simulate(x_seq, params, v0, s0, sf0):
    """x_seq: (T, B, 2); states (B, N). Returns stacked per-step outputs."""
    hp = jax.lax.Precision.HIGHEST
    f32 = jnp.float32
    mask = jnp.ones((N, N), f32) - jnp.eye(N, dtype=f32)
    w_syn_m = mask * params["W_syn"].astype(f32)
    w_fast_m = mask * params["W_fast"].astype(f32)
    v, s, sf = v0, s0, sf0
    spk, ro, vs, ss, sfs = [], [], [], [], []
    for t in range(x_seq.shape[0]):
        x = x_seq[t]
        i_in = jnp.matmul(x, params["W_in"].T.astype(f32), precision=hp)
        i_fast = jnp.matmul(sf, w_fast_m.T, precision=hp)
        i_syn = jnp.matmul(s, w_syn_m.T, precision=hp)
        i_tot = i_syn + i_fast + i_in + params["I_o"].astype(f32)[None, :]
        dv = i_tot / TAU_M
        v_next = v + dv
        gating = jnp.clip(v_next, 0.0, 1.0)
        dvc = jnp.clip(dv, -1.0, 1.0)
        s = s + (gating * dvc - s) / TAU_S
        sf = sf + (gating * dvc - sf) / TAU_S_FAST
        spiked = jnp.logical_or(v_next >= 1.0, v_next <= -1.0).astype(f32)
        v = (1.0 - spiked) * v_next
        readout = jnp.matmul(s, params["O"].T.astype(f32), precision=hp)
        spk.append(spiked); ro.append(readout); vs.append(v); ss.append(s); sfs.append(sf)
    return (jnp.stack(spk), jnp.stack(ro), jnp.stack(vs), jnp.stack(ss), jnp.stack(sfs))


# ----------------------------------------------------------------------------
# Deterministic parameter init (matches shapes / init scheme of NLIF.__init__).
# ----------------------------------------------------------------------------
def init_params(key, w_mean=0.15, w_var=0.15, w_lim=2.0):
    k_syn, k_fast, k_in, k_o, k_io = jax.random.split(key, 5)
    mask = jnp.ones((N, N)) - jnp.eye(N)
    w_syn = mask * (w_mean - w_var + 2 * w_var * jax.random.uniform(k_syn, (N, N)))
    w_fast = mask * (w_mean - w_var + 2 * w_var * jax.random.uniform(k_fast, (N, N)))
    w_in = jax.random.normal(k_in, (N, 2))
    w_o = jax.random.normal(k_o, (2, N))
    i_o = jnp.clip(0.05 * jax.random.uniform(k_io, (N,)), -1.0, 1.0)
    return {
        "W_syn": jnp.clip(w_syn, -w_lim, w_lim).astype(jnp.float32),
        "W_fast": jnp.clip(w_fast, -w_lim, w_lim).astype(jnp.float32),
        "W_in": jnp.clip(w_in, -w_lim, w_lim).astype(jnp.float32),
        "O": jnp.clip(w_o, -w_lim, w_lim).astype(jnp.float32),
        "I_o": i_o.astype(jnp.float32),
    }


# TODO(synk): backward-pass gradient clamp hooks of the torch module are
# training-time machinery and are not part of this forward kernel.

if __name__ == "__main__":
    key = jax.random.PRNGKey(0)
    k_params, k_x, k_v, k_s, k_sf = jax.random.split(key, 5)

    # 2 row groups of 128 networks each (lane-dense, 2-way parallel for v7x).
    E, T, B = 2, 16, 128
    params = init_params(k_params)

    # Test 1: random inputs / state (moderate scale), full recurrent dynamics.
    x_seq = 0.2 * jax.random.normal(k_x, (E, T, B, 2), dtype=jnp.float32)
    v0 = 0.05 * jax.random.normal(k_v, (E, B, N), dtype=jnp.float32)
    s0 = 0.02 * jax.random.uniform(k_s, (E, B, N), dtype=jnp.float32)
    sf0 = 0.02 * jax.random.uniform(k_sf, (E, B, N), dtype=jnp.float32)

    outs = jax.block_until_ready(nlif_simulate(x_seq, params, v0, s0, sf0))

    for e in range(E):
        ref = nlif_ref_simulate(x_seq[e], params, v0[e], s0[e], sf0[e])
        for got, want in zip(outs, ref):
            assert got[e].shape == want.shape, (got[e].shape, want.shape)
            assert jnp.allclose(got[e], want, atol=1e-4, rtol=1e-4), float(
                jnp.max(jnp.abs(got[e] - want))
            )

    # Test 2: deterministic spiking path (strong bias currents, no recurrence).
    zN = jnp.zeros((N, N), jnp.float32)
    params_spk = {
        "W_syn": zN,
        "W_fast": zN,
        "W_in": jnp.zeros((N, 2), jnp.float32),
        "O": jnp.ones((2, N), jnp.float32),
        "I_o": jnp.linspace(0.0, 3.0, N).astype(jnp.float32),
    }
    x0 = jnp.zeros((E, T, B, 2), jnp.float32)
    z = jnp.zeros((E, B, N), jnp.float32)
    outs2 = jax.block_until_ready(nlif_simulate(x0, params_spk, z, z, z))
    assert float(jnp.sum(outs2[0])) > 0.0, "spiking path was not exercised"
    ref2 = nlif_ref_simulate(x0[0], params_spk, z[0], z[0], z[0])
    for e in range(E):
        for got, want in zip(outs2, ref2):
            assert got[e].shape == want.shape, (got[e].shape, want.shape)
            assert jnp.allclose(got[e], want, atol=1e-4, rtol=1e-4), float(
                jnp.max(jnp.abs(got[e] - want))
            )

    print("KERNEL_OK")
</pallas_src>

<mosaic_0001>
module attributes {stable_mosaic.version = 11 : i64} {
  func.func @nlif_kernel(%arg0: i32, %arg1: i32, %arg2: memref<8x8x128xf32, #tpu.memory_space<vmem>>, %arg3: memref<32x72xf32, #tpu.memory_space<vmem>>, %arg4: memref<3x32x128xf32, #tpu.memory_space<vmem>>, %arg5: memref<8x4x32x128xf32, #tpu.memory_space<vmem>>, %arg6: memref<72x128xf32, #tpu.memory_space<vmem>>, %arg7: memref<32x128xf32, #tpu.memory_space<vmem>>) attributes {dimension_semantics = [#tpu.dimension_semantics<parallel>, #tpu.dimension_semantics<arbitrary>], iteration_bounds = array<i64: 2, 2>, scalar_prefetch = 0 : i64, scratch_operands = 2 : i64, tpu.core_type = #tpu.core_type<tc>, window_params = [{transform_indices = @transform_0, window_bounds = array<i64: 8, 8, 128>}, {pipeline_mode = #tpu.pipeline_mode<synchronous>, transform_indices = @transform_1, window_bounds = array<i64: 32, 72>}, {transform_indices = @transform_2, window_bounds = array<i64: 3, 32, 128>}, {transform_indices = @transform_3, window_bounds = array<i64: 8, 4, 32, 128>}]} {
    %c0_i32 = arith.constant 0 : i32
    %0 = arith.cmpi eq, %arg1, %c0_i32 : i32
    %1 = arith.extui %0 : i1 to i32
    %c0_i32_0 = arith.constant 0 : i32
    %2 = arith.cmpi ne, %1, %c0_i32_0 : i32
    scf.if %2 {
      %c0_325 = arith.constant 0 : index
      %c0_326 = arith.constant 0 : index
      %c0_327 = arith.constant 0 : index
      %468 = vector.load %arg4[%c0_325, %c0_326, %c0_327] : memref<3x32x128xf32, #tpu.memory_space<vmem>>, vector<1x32x128xf32>
      %469 = vector.shape_cast %468 : vector<1x32x128xf32> to vector<32x128xf32>
      %c0_328 = arith.constant 0 : index
      %c0_329 = arith.constant 0 : index
      %470 = vector.load %arg7[%c0_328, %c0_329] : memref<32x128xf32, #tpu.memory_space<vmem>>, vector<32x128xf32>
      tpu.vector_store %arg7[%c0_328, %c0_329], %469 {strides = array<i32>} : memref<32x128xf32, #tpu.memory_space<vmem>>, vector<32x128xf32>,
      %c1_330 = arith.constant 1 : index
      %c0_331 = arith.constant 0 : index
      %c0_332 = arith.constant 0 : index
      %471 = vector.load %arg4[%c1_330, %c0_331, %c0_332] : memref<3x32x128xf32, #tpu.memory_space<vmem>>, vector<1x32x128xf32>
      %472 = vector.shape_cast %471 : vector<1x32x128xf32> to vector<32x128xf32>
      %c8_333 = arith.constant 8 : index
      %c0_334 = arith.constant 0 : index
      %473 = vector.load %arg6[%c8_333, %c0_334] : memref<72x128xf32, #tpu.memory_space<vmem>>, vector<32x128xf32>
      tpu.vector_store %arg6[%c8_333, %c0_334], %472 {strides = array<i32>} : memref<72x128xf32, #tpu.memory_space<vmem>>, vector<32x128xf32>,
      %c2_335 = arith.constant 2 : index
      %c0_336 = arith.constant 0 : index
      %c0_337 = arith.constant 0 : index
      %474 = vector.load %arg4[%c2_335, %c0_336, %c0_337] : memref<3x32x128xf32, #tpu.memory_space<vmem>>, vector<1x32x128xf32>
      %475 = vector.shape_cast %474 : vector<1x32x128xf32> to vector<32x128xf32>
      %c40_338 = arith.constant 40 : index
      %c0_339 = arith.constant 0 : index
      %476 = vector.load %arg6[%c40_338, %c0_339] : memref<72x128xf32, #tpu.memory_space<vmem>>, vector<32x128xf32>
      tpu.vector_store %arg6[%c40_338, %c0_339], %475 {strides = array<i32>} : memref<72x128xf32, #tpu.memory_space<vmem>>, vector<32x128xf32>,
    } else {
    }
    %c0 = arith.constant 0 : index
    %c0_1 = arith.constant 0 : index
    %3 = vector.load %arg3[%c0, %c0_1] : memref<32x72xf32, #tpu.memory_space<vmem>>, vector<32x72xf32>
    %c0_i32_2 = arith.constant 0 : i32
    %4 = arith.index_cast %c0_i32_2 : i32 to index
    %c0_3 = arith.constant 0 : index
    %c0_4 = arith.constant 0 : index
    %5 = vector.load %arg2[%4, %c0_3, %c0_4] : memref<8x8x128xf32, #tpu.memory_space<vmem>>, vector<1x8x128xf32>
    %6 = vector.shape_cast %5 : vector<1x8x128xf32> to vector<8x128xf32>
    %c0_5 = arith.constant 0 : index
    %c0_6 = arith.constant 0 : index
    %7 = vector.load %arg6[%c0_5, %c0_6] : memref<72x128xf32, #tpu.memory_space<vmem>>, vector<8x128xf32>
    tpu.vector_store %arg6[%c0_5, %c0_6], %6 {strides = array<i32>} : memref<72x128xf32, #tpu.memory_space<vmem>>, vector<8x128xf32>,
    %c8 = arith.constant 8 : index
    %c0_7 = arith.constant 0 : index
    %8 = vector.load %arg6[%c8, %c0_7] : memref<72x128xf32, #tpu.memory_space<vmem>>, vector<32x128xf32>
    %c40 = arith.constant 40 : index
    %c0_8 = arith.constant 0 : index
    %9 = vector.load %arg6[%c40, %c0_8] : memref<72x128xf32, #tpu.memory_space<vmem>>, vector<32x128xf32>
    %c0_9 = arith.constant 0 : index
    %c0_10 = arith.constant 0 : index
    %10 = vector.load %arg7[%c0_9, %c0_10] : memref<32x128xf32, #tpu.memory_space<vmem>>, vector<32x128xf32>
    %c0_11 = arith.constant 0 : index
    %c0_12 = arith.constant 0 : index
    %11 = vector.load %arg6[%c0_11, %c0_12] : memref<72x128xf32, #tpu.memory_space<vmem>>, vector<72x128xf32>
    %cst = arith.constant dense<0.000000e+00> : vector<32x128xf32>
    %12 = tpu.matmul %3, %11, %cst {dimension_numbers = #tpu.dot_dimension_numbers<[1], [0], [0], [1], [0, 0, 1, 1], [], []>} : vector<32x72xf32>, vector<72x128xf32>, vector<32x128xf32> -> vector<32x128xf32>
    %cst_13 = arith.constant 1.000000e+01 : f32
    %13 = vector.broadcast %cst_13 : f32 to vector<32x128xf32>
    %14 = arith.divf %12, %13 : vector<32x128xf32>
    %15 = arith.addf %10, %14 : vector<32x128xf32>
    %cst_14 = arith.constant 0.000000e+00 : f32
    %cst_15 = arith.constant 1.000000e+00 : f32
    %16 = vector.broadcast %cst_14 : f32 to vector<32x128xf32>
    %17 = arith.maximumf %16, %15 : vector<32x128xf32>
    %18 = vector.broadcast %cst_15 : f32 to vector<32x128xf32>
    %19 = arith.minimumf %18, %17 : vector<32x128xf32>
    %cst_16 = arith.constant -1.000000e+00 : f32
    %cst_17 = arith.constant 1.000000e+00 : f32
    %20 = vector.broadcast %cst_16 : f32 to vector<32x128xf32>
    %21 = arith.maximumf %20, %14 : vector<32x128xf32>
    %22 = vector.broadcast %cst_17 : f32 to vector<32x128xf32>
    %23 = arith.minimumf %22, %21 : vector<32x128xf32>
    %24 = arith.mulf %19, %23 : vector<32x128xf32>
    %25 = arith.subf %24, %8 : vector<32x128xf32>
    %cst_18 = arith.constant 1.000000e+01 : f32
    %26 = vector.broadcast %cst_18 : f32 to vector<32x128xf32>
    %27 = arith.divf %25, %26 : vector<32x128xf32>
    %28 = arith.addf %8, %27 : vector<32x128xf32>
    %29 = arith.subf %24, %9 : vector<32x128xf32>
    %cst_19 = arith.constant 1.000000e+00 : f32
    %30 = vector.broadcast %cst_19 : f32 to vector<32x128xf32>
    %31 = arith.divf %29, %30 : vector<32x128xf32>
    %32 = arith.addf %9, %31 : vector<32x128xf32>
    %cst_20 = arith.constant 1.000000e+00 : f32
    %33 = vector.broadcast %cst_20 : f32 to vector<32x128xf32>
    %34 = arith.cmpf oge, %15, %33 : vector<32x128xf32>
    %cst_21 = arith.constant -1.000000e+00 : f32
    %35 = vector.broadcast %cst_21 : f32 to vector<32x128xf32>
    %36 = arith.cmpf ole, %15, %35 : vector<32x128xf32>
    %37 = arith.ori %34, %36 : vector<32x128xi1>
    %38 = arith.extui %37 : vector<32x128xi1> to vector<32x128xi32>
    %39 = arith.sitofp %38 : vector<32x128xi32> to vector<32x128xf32>
    %cst_22 = arith.constant 1.000000e+00 : f32
    %40 = vector.broadcast %cst_22 : f32 to vector<32x128xf32>
    %41 = arith.subf %40, %39 : vector<32x128xf32>
    %42 = arith.mulf %41, %15 : vector<32x128xf32>
    %43 = arith.index_cast %c0_i32_2 : i32 to index
    %c0_23 = arith.constant 0 : index
    %c0_24 = arith.constant 0 : index
    %c0_25 = arith.constant 0 : index
    %44 = vector.load %arg5[%43, %c0_23, %c0_24, %c0_25] : memref<8x4x32x128xf32, #tpu.memory_space<vmem>>, vector<1x1x32x128xf32>
    %45 = vector.shape_cast %44 : vector<1x1x32x128xf32> to vector<32x128xf32>
    %46 = vector.shape_cast %39 : vector<32x128xf32> to vector<1x1x32x128xf32>
    tpu.vector_store %arg5[%43, %c0_23, %c0_24, %c0_25], %46 {strides = array<i32>} : memref<8x4x32x128xf32, #tpu.memory_space<vmem>>, vector<1x1x32x128xf32>,
    %47 = arith.index_cast %c0_i32_2 : i32 to index
    %c1 = arith.constant 1 : index
    %c0_26 = arith.constant 0 : index
    %c0_27 = arith.constant 0 : index
    %48 = vector.load %arg5[%47, %c1, %c0_26, %c0_27] : memref<8x4x32x128xf32, #tpu.memory_space<vmem>>, vector<1x1x32x128xf32>
    %49 = vector.shape_cast %48 : vector<1x1x32x128xf32> to vector<32x128xf32>
    %50 = vector.shape_cast %42 : vector<32x128xf32> to vector<1x1x32x128xf32>
    tpu.vector_store %arg5[%47, %c1, %c0_26, %c0_27], %50 {strides = array<i32>} : memref<8x4x32x128xf32, #tpu.memory_space<vmem>>, vector<1x1x32x128xf32>,
    %51 = arith.index_cast %c0_i32_2 : i32 to index
    %c2 = arith.constant 2 : index
    %c0_28 = arith.constant 0 : index
    %c0_29 = arith.constant 0 : index
    %52 = vector.load %arg5[%51, %c2, %c0_28, %c0_29] : memref<8x4x32x128xf32, #tpu.memory_space<vmem>>, vector<1x1x32x128xf32>
    %53 = vector.shape_cast %52 : vector<1x1x32x128xf32> to vector<32x128xf32>
    %54 = vector.shape_cast %28 : vector<32x128xf32> to vector<1x1x32x128xf32>
    tpu.vector_store %arg5[%51, %c2, %c0_28, %c0_29], %54 {strides = array<i32>} : memref<8x4x32x128xf32, #tpu.memory_space<vmem>>, vector<1x1x32x128xf32>,
    %55 = arith.index_cast %c0_i32_2 : i32 to index
    %c3 = arith.constant 3 : index
    %c0_30 = arith.constant 0 : index
    %c0_31 = arith.constant 0 : index
    %56 = vector.load %arg5[%55, %c3, %c0_30, %c0_31] : memref<8x4x32x128xf32, #tpu.memory_space<vmem>>, vector<1x1x32x128xf32>
    %57 = vector.shape_cast %56 : vector<1x1x32x128xf32> to vector<32x128xf32>
    %58 = vector.shape_cast %32 : vector<32x128xf32> to vector<1x1x32x128xf32>
    tpu.vector_store %arg5[%55, %c3, %c0_30, %c0_31], %58 {strides = array<i32>} : memref<8x4x32x128xf32, #tpu.memory_space<vmem>>, vector<1x1x32x128xf32>,
    %c0_32 = arith.constant 0 : index
    %c0_33 = arith.constant 0 : index
    %59 = vector.load %arg7[%c0_32, %c0_33] : memref<32x128xf32, #tpu.memory_space<vmem>>, vector<32x128xf32>
    tpu.vector_store %arg7[%c0_32, %c0_33], %42 {strides = array<i32>} : memref<32x128xf32, #tpu.memory_space<vmem>>, vector<32x128xf32>,
    %c8_34 = arith.constant 8 : index
    %c0_35 = arith.constant 0 : index
    %60 = vector.load %arg6[%c8_34, %c0_35] : memref<72x128xf32, #tpu.memory_space<vmem>>, vector<32x128xf32>
    tpu.vector_store %arg6[%c8_34, %c0_35], %28 {strides = array<i32>} : memref<72x128xf32, #tpu.memory_space<vmem>>, vector<32x128xf32>,
    %c40_36 = arith.constant 40 : index
    %c0_37 = arith.constant 0 : index
    %61 = vector.load %arg6[%c40_36, %c0_37] : memref<72x128xf32, #tpu.memory_space<vmem>>, vector<32x128xf32>
    tpu.vector_store %arg6[%c40_36, %c0_37], %32 {strides = array<i32>} : memref<72x128xf32, #tpu.memory_space<vmem>>, vector<32x128xf32>,
    %c1_i32 = arith.constant 1 : i32
    %62 = arith.index_cast %c1_i32 : i32 to index
    %c0_38 = arith.constant 0 : index
    %c0_39 = arith.constant 0 : index
    %63 = vector.load %arg2[%62, %c0_38, %c0_39] : memref<8x8x128xf32, #tpu.memory_space<vmem>>, vector<1x8x128xf32>
    %64 = vector.shape_cast %63 : vector<1x8x128xf32> to vector<8x128xf32>
    %c0_40 = arith.constant 0 : index
    %c0_41 = arith.constant 0 : index
    %65 = vector.load %arg6[%c0_40, %c0_41] : memref<72x128xf32, #tpu.memory_space<vmem>>, vector<8x128xf32>
    tpu.vector_store %arg6[%c0_40, %c0_41], %64 {strides = array<i32>} : memref<72x128xf32, #tpu.memory_space<vmem>>, vector<8x128xf32>,
    %c8_42 = arith.constant 8 : index
    %c0_43 = arith.constant 0 : index
    %66 = vector.load %arg6[%c8_42, %c0_43] : memref<72x128xf32, #tpu.memory_space<vmem>>, vector<32x128xf32>
    %c40_44 = arith.constant 40 : index
    %c0_45 = arith.constant 0 : index
    %67 = vector.load %arg6[%c40_44, %c0_45] : memref<72x128xf32, #tpu.memory_space<vmem>>, vector<32x128xf32>
    %c0_46 = arith.constant 0 : index
    %c0_47 = arith.constant 0 : index
    %68 = vector.load %arg7[%c0_46, %c0_47] : memref<32x128xf32, #tpu.memory_space<vmem>>, vector<32x128xf32>
    %c0_48 = arith.constant 0 : index
    %c0_49 = arith.constant 0 : index
    %69 = vector.load %arg6[%c0_48, %c0_49] : memref<72x128xf32, #tpu.memory_space<vmem>>, vector<72x128xf32>
    %cst_50 = arith.constant dense<0.000000e+00> : vector<32x128xf32>
    %70 = tpu.matmul %3, %69, %cst_50 {dimension_numbers = #tpu.dot_dimension_numbers<[1], [0], [0], [1], [0, 0, 1, 1], [], []>} : vector<32x72xf32>, vector<72x128xf32>, vector<32x128xf32> -> vector<32x128xf32>
    %cst_51 = arith.constant 1.000000e+01 : f32
    %71 = vector.broadcast %cst_51 : f32 to vector<32x128xf32>
    %72 = arith.divf %70, %71 : vector<32x128xf32>
    %73 = arith.addf %68, %72 : vector<32x128xf32>
    %cst_52 = arith.constant 0.000000e+00 : f32
    %cst_53 = arith.constant 1.000000e+00 : f32
    %74 = vector.broadcast %cst_52 : f32 to vector<32x128xf32>
    %75 = arith.maximumf %74, %73 : vector<32x128xf32>
    %76 = vector.broadcast %cst_53 : f32 to vector<32x128xf32>
    %77 = arith.minimumf %76, %75 : vector<32x128xf32>
    %cst_54 = arith.constant -1.000000e+00 : f32
    %cst_55 = arith.constant 1.000000e+00 : f32
    %78 = vector.broadcast %cst_54 : f32 to vector<32x128xf32>
    %79 = arith.maximumf %78, %72 : vector<32x128xf32>
    %80 = vector.broadcast %cst_55 : f32 to vector<32x128xf32>
    %81 = arith.minimumf %80, %79 : vector<32x128xf32>
    %82 = arith.mulf %77, %81 : vector<32x128xf32>
    %83 = arith.subf %82, %66 : vector<32x128xf32>
    %cst_56 = arith.constant 1.000000e+01 : f32
    %84 = vector.broadcast %cst_56 : f32 to vector<32x128xf32>
    %85 = arith.divf %83, %84 : vector<32x128xf32>
    %86 = arith.addf %66, %85 : vector<32x128xf32>
    %87 = arith.subf %82, %67 : vector<32x128xf32>
    %cst_57 = arith.constant 1.000000e+00 : f32
    %88 = vector.broadcast %cst_57 : f32 to vector<32x128xf32>
    %89 = arith.divf %87, %88 : vector<32x128xf32>
    %90 = arith.addf %67, %89 : vector<32x128xf32>
    %cst_58 = arith.constant 1.000000e+00 : f32
    %91 = vector.broadcast %cst_58 : f32 to vector<32x128xf32>
    %92 = arith.cmpf oge, %73, %91 : vector<32x128xf32>
    %cst_59 = arith.constant -1.000000e+00 : f32
    %93 = vector.broadcast %cst_59 : f32 to vector<32x128xf32>
    %94 = arith.cmpf ole, %73, %93 : vector<32x128xf32>
    %95 = arith.ori %92, %94 : vector<32x128xi1>
    %96 = arith.extui %95 : vector<32x128xi1> to vector<32x128xi32>
    %97 = arith.sitofp %96 : vector<32x128xi32> to vector<32x128xf32>
    %cst_60 = arith.constant 1.000000e+00 : f32
    %98 = vector.broadcast %cst_60 : f32 to vector<32x128xf32>
    %99 = arith.subf %98, %97 : vector<32x128xf32>
    %100 = arith.mulf %99, %73 : vector<32x128xf32>
    %101 = arith.index_cast %c1_i32 : i32 to index
    %c0_61 = arith.constant 0 : index
    %c0_62 = arith.constant 0 : index
    %c0_63 = arith.constant 0 : index
    %102 = vector.load %arg5[%101, %c0_61, %c0_62, %c0_63] : memref<8x4x32x128xf32, #tpu.memory_space<vmem>>, vector<1x1x32x128xf32>
    %103 = vector.shape_cast %102 : vector<1x1x32x128xf32> to vector<32x128xf32>
    %104 = vector.shape_cast %97 : vector<32x128xf32> to vector<1x1x32x128xf32>
    tpu.vector_store %arg5[%101, %c0_61, %c0_62, %c0_63], %104 {strides = array<i32>} : memref<8x4x32x128xf32, #tpu.memory_space<vmem>>, vector<1x1x32x128xf32>,
    %105 = arith.index_cast %c1_i32 : i32 to index
    %c1_64 = arith.constant 1 : index
    %c0_65 = arith.constant 0 : index
    %c0_66 = arith.constant 0 : index
    %106 = vector.load %arg5[%105, %c1_64, %c0_65, %c0_66] : memref<8x4x32x128xf32, #tpu.memory_space<vmem>>, vector<1x1x32x128xf32>
    %107 = vector.shape_cast %106 : vector<1x1x32x128xf32> to vector<32x128xf32>
    %108 = vector.shape_cast %100 : vector<32x128xf32> to vector<1x1x32x128xf32>
    tpu.vector_store %arg5[%105, %c1_64, %c0_65, %c0_66], %108 {strides = array<i32>} : memref<8x4x32x128xf32, #tpu.memory_space<vmem>>, vector<1x1x32x128xf32>,
    %109 = arith.index_cast %c1_i32 : i32 to index
    %c2_67 = arith.constant 2 : index
    %c0_68 = arith.constant 0 : index
    %c0_69 = arith.constant 0 : index
    %110 = vector.load %arg5[%109, %c2_67, %c0_68, %c0_69] : memref<8x4x32x128xf32, #tpu.memory_space<vmem>>, vector<1x1x32x128xf32>
    %111 = vector.shape_cast %110 : vector<1x1x32x128xf32> to vector<32x128xf32>
    %112 = vector.shape_cast %86 : vector<32x128xf32> to vector<1x1x32x128xf32>
    tpu.vector_store %arg5[%109, %c2_67, %c0_68, %c0_69], %112 {strides = array<i32>} : memref<8x4x32x128xf32, #tpu.memory_space<vmem>>, vector<1x1x32x128xf32>,
    %113 = arith.index_cast %c1_i32 : i32 to index
    %c3_70 = arith.constant 3 : index
    %c0_71 = arith.constant 0 : index
    %c0_72 = arith.constant 0 : index
    %114 = vector.load %arg5[%113, %c3_70, %c0_71, %c0_72] : memref<8x4x32x128xf32, #tpu.memory_space<vmem>>, vector<1x1x32x128xf32>
    %115 = vector.shape_cast %114 : vector<1x1x32x128xf32> to vector<32x128xf32>
    %116 = vector.shape_cast %90 : vector<32x128xf32> to vector<1x1x32x128xf32>
    tpu.vector_store %arg5[%113, %c3_70, %c0_71, %c0_72], %116 {strides = array<i32>} : memref<8x4x32x128xf32, #tpu.memory_space<vmem>>, vector<1x1x32x128xf32>,
    %c0_73 = arith.constant 0 : index
    %c0_74 = arith.constant 0 : index
    %117 = vector.load %arg7[%c0_73, %c0_74] : memref<32x128xf32, #tpu.memory_space<vmem>>, vector<32x128xf32>
    tpu.vector_store %arg7[%c0_73, %c0_74], %100 {strides = array<i32>} : memref<32x128xf32, #tpu.memory_space<vmem>>, vector<32x128xf32>,
    %c8_75 = arith.constant 8 : index
    %c0_76 = arith.constant 0 : index
    %118 = vector.load %arg6[%c8_75, %c0_76] : memref<72x128xf32, #tpu.memory_space<vmem>>, vector<32x128xf32>
    tpu.vector_store %arg6[%c8_75, %c0_76], %86 {strides = array<i32>} : memref<72x128xf32, #tpu.memory_space<vmem>>, vector<32x128xf32>,
    %c40_77 = arith.constant 40 : index
    %c0_78 = arith.constant 0 : index
    %119 = vector.load %arg6[%c40_77, %c0_78] : memref<72x128xf32, #tpu.memory_space<vmem>>, vector<32x128xf32>
    tpu.vector_store %arg6[%c40_77, %c0_78], %90 {strides = array<i32>} : memref<72x128xf32, #tpu.memory_space<vmem>>, vector<32x128xf32>,
    %c2_i32 = arith.constant 2 : i32
    %120 = arith.index_cast %c2_i32 : i32 to index
    %c0_79 = arith.constant 0 : index
    %c0_80 = arith.constant 0 : index
    %121 = vector.load %arg2[%120, %c0_79, %c0_80] : memref<8x8x128xf32, #tpu.memory_space<vmem>>, vector<1x8x128xf32>
    %122 = vector.shape_cast %121 : vector<1x8x128xf32> to vector<8x128xf32>
    %c0_81 = arith.constant 0 : index
    %c0_82 = arith.constant 0 : index
    %123 = vector.load %arg6[%c0_81, %c0_82] : memref<72x128xf32, #tpu.memory_space<vmem>>, vector<8x128xf32>
    tpu.vector_store %arg6[%c0_81, %c0_82], %122 {strides = array<i32>} : memref<72x128xf32, #tpu.memory_space<vmem>>, vector<8x128xf32>,
    %c8_83 = arith.constant 8 : index
    %c0_84 = arith.constant 0 : index
    %124 = vector.load %arg6[%c8_83, %c0_84] : memref<72x128xf32, #tpu.memory_space<vmem>>, vector<32x128xf32>
    %c40_85 = arith.constant 40 : index
    %c0_86 = arith.constant 0 : index
    %125 = vector.load %arg6[%c40_85, %c0_86] : memref<72x128xf32, #tpu.memory_space<vmem>>, vector<32x128xf32>
    %c0_87 = arith.constant 0 : index
    %c0_88 = arith.constant 0 : index
    %126 = vector.load %arg7[%c0_87, %c0_88] : memref<32x128xf32, #tpu.memory_space<vmem>>, vector<32x128xf32>
    %c0_89 = arith.constant 0 : index
    %c0_90 = arith.constant 0 : index
    %127 = vector.load %arg6[%c0_89, %c0_90] : memref<72x128xf32, #tpu.memory_space<vmem>>, vector<72x128xf32>
    %cst_91 = arith.constant dense<0.000000e+00> : vector<32x128xf32>
    %128 = tpu.matmul %3, %127, %cst_91 {dimension_numbers = #tpu.dot_dimension_numbers<[1], [0], [0], [1], [0, 0, 1, 1], [], []>} : vector<32x72xf32>, vector<72x128xf32>, vector<32x128xf32> -> vector<32x128xf32>
    %cst_92 = arith.constant 1.000000e+01 : f32
    %129 = vector.broadcast %cst_92 : f32 to vector<32x128xf32>
    %130 = arith.divf %128, %129 : vector<32x128xf32>
    %131 = arith.addf %126, %130 : vector<32x128xf32>
    %cst_93 = arith.constant 0.000000e+00 : f32
    %cst_94 = arith.constant 1.000000e+00 : f32
    %132 = vector.broadcast %cst_93 : f32 to vector<32x128xf32>
    %133 = arith.maximumf %132, %131 : vector<32x128xf32>
    %134 = vector.broadcast %cst_94 : f32 to vector<32x128xf32>
    %135 = arith.minimumf %134, %133 : vector<32x128xf32>
    %cst_95 = arith.constant -1.000000e+00 : f32
    %cst_96 = arith.constant 1.000000e+00 : f32
    %136 = vector.broadcast %cst_95 : f32 to vector<32x128xf32>
    %137 = arith.maximumf %136, %130 : vector<32x128xf32>
    %138 = vector.broadcast %cst_96 : f32 to vector<32x128xf32>
    %139 = arith.minimumf %138, %137 : vector<32x128xf32>
    %140 = arith.mulf %135, %139 : vector<32x128xf32>
    %141 = arith.subf %140, %124 : vector<32x128xf32>
    %cst_97 = arith.constant 1.000000e+01 : f32
    %142 = vector.broadcast %cst_97 : f32 to vector<32x128xf32>
    %143 = arith.divf %141, %142 : vector<32x128xf32>
    %144 = arith.addf %124, %143 : vector<32x128xf32>
    %145 = arith.subf %140, %125 : vector<32x128xf32>
    %cst_98 = arith.constant 1.000000e+00 : f32
    %146 = vector.broadcast %cst_98 : f32 to vector<32x128xf32>
    %147 = arith.divf %145, %146 : vector<32x128xf32>
    %148 = arith.addf %125, %147 : vector<32x128xf32>
    %cst_99 = arith.constant 1.000000e+00 : f32
    %149 = vector.broadcast %cst_99 : f32 to vector<32x128xf32>
    %150 = arith.cmpf oge, %131, %149 : vector<32x128xf32>
    %cst_100 = arith.constant -1.000000e+00 : f32
    %151 = vector.broadcast %cst_100 : f32 to vector<32x128xf32>
    %152 = arith.cmpf ole, %131, %151 : vector<32x128xf32>
    %153 = arith.ori %150, %152 : vector<32x128xi1>
    %154 = arith.extui %153 : vector<32x128xi1> to vector<32x128xi32>
    %155 = arith.sitofp %154 : vector<32x128xi32> to vector<32x128xf32>
    %cst_101 = arith.constant 1.000000e+00 : f32
    %156 = vector.broadcast %cst_101 : f32 to vector<32x128xf32>
    %157 = arith.subf %156, %155 : vector<32x128xf32>
    %158 = arith.mulf %157, %131 : vector<32x128xf32>
    %159 = arith.index_cast %c2_i32 : i32 to index
    %c0_102 = arith.constant 0 : index
    %c0_103 = arith.constant 0 : index
    %c0_104 = arith.constant 0 : index
    %160 = vector.load %arg5[%159, %c0_102, %c0_103, %c0_104] : memref<8x4x32x128xf32, #tpu.memory_space<vmem>>, vector<1x1x32x128xf32>
    %161 = vector.shape_cast %160 : vector<1x1x32x128xf32> to vector<32x128xf32>
    %162 = vector.shape_cast %155 : vector<32x128xf32> to vector<1x1x32x128xf32>
    tpu.vector_store %arg5[%159, %c0_102, %c0_103, %c0_104], %162 {strides = array<i32>} : memref<8x4x32x128xf32, #tpu.memory_space<vmem>>, vector<1x1x32x128xf32>,
    %163 = arith.index_cast %c2_i32 : i32 to index
    %c1_105 = arith.constant 1 : index
    %c0_106 = arith.constant 0 : index
    %c0_107 = arith.constant 0 : index
    %164 = vector.load %arg5[%163, %c1_105, %c0_106, %c0_107] : memref<8x4x32x128xf32, #tpu.memory_space<vmem>>, vector<1x1x32x128xf32>
    %165 = vector.shape_cast %164 : vector<1x1x32x128xf32> to vector<32x128xf32>
    %166 = vector.shape_cast %158 : vector<32x128xf32> to vector<1x1x32x128xf32>
    tpu.vector_store %arg5[%163, %c1_105, %c0_106, %c0_107], %166 {strides = array<i32>} : memref<8x4x32x128xf32, #tpu.memory_space<vmem>>, vector<1x1x32x128xf32>,
    %167 = arith.index_cast %c2_i32 : i32 to index
    %c2_108 = arith.constant 2 : index
    %c0_109 = arith.constant 0 : index
    %c0_110 = arith.constant 0 : index
    %168 = vector.load %arg5[%167, %c2_108, %c0_109, %c0_110] : memref<8x4x32x128xf32, #tpu.memory_space<vmem>>, vector<1x1x32x128xf32>
    %169 = vector.shape_cast %168 : vector<1x1x32x128xf32> to vector<32x128xf32>
    %170 = vector.shape_cast %144 : vector<32x128xf32> to vector<1x1x32x128xf32>
    tpu.vector_store %arg5[%167, %c2_108, %c0_109, %c0_110], %170 {strides = array<i32>} : memref<8x4x32x128xf32, #tpu.memory_space<vmem>>, vector<1x1x32x128xf32>,
    %171 = arith.index_cast %c2_i32 : i32 to index
    %c3_111 = arith.constant 3 : index
    %c0_112 = arith.constant 0 : index
    %c0_113 = arith.constant 0 : index
    %172 = vector.load %arg5[%171, %c3_111, %c0_112, %c0_113] : memref<8x4x32x128xf32, #tpu.memory_space<vmem>>, vector<1x1x32x128xf32>
    %173 = vector.shape_cast %172 : vector<1x1x32x128xf32> to vector<32x128xf32>
    %174 = vector.shape_cast %148 : vector<32x128xf32> to vector<1x1x32x128xf32>
    tpu.vector_store %arg5[%171, %c3_111, %c0_112, %c0_113], %174 {strides = array<i32>} : memref<8x4x32x128xf32, #tpu.memory_space<vmem>>, vector<1x1x32x128xf32>,
    %c0_114 = arith.constant 0 : index
    %c0_115 = arith.constant 0 : index
    %175 = vector.load %arg7[%c0_114, %c0_115] : memref<32x128xf32, #tpu.memory_space<vmem>>, vector<32x128xf32>
    tpu.vector_store %arg7[%c0_114, %c0_115], %158 {strides = array<i32>} : memref<32x128xf32, #tpu.memory_space<vmem>>, vector<32x128xf32>,
    %c8_116 = arith.constant 8 : index
    %c0_117 = arith.constant 0 : index
    %176 = vector.load %arg6[%c8_116, %c0_117] : memref<72x128xf32, #tpu.memory_space<vmem>>, vector<32x128xf32>
    tpu.vector_store %arg6[%c8_116, %c0_117], %144 {strides = array<i32>} : memref<72x128xf32, #tpu.memory_space<vmem>>, vector<32x128xf32>,
    %c40_118 = arith.constant 40 : index
    %c0_119 = arith.constant 0 : index
    %177 = vector.load %arg6[%c40_118, %c0_119] : memref<72x128xf32, #tpu.memory_space<vmem>>, vector<32x128xf32>
    tpu.vector_store %arg6[%c40_118, %c0_119], %148 {strides = array<i32>} : memref<72x128xf32, #tpu.memory_space<vmem>>, vector<32x128xf32>,
    %c3_i32 = arith.constant 3 : i32
    %178 = arith.index_cast %c3_i32 : i32 to index
    %c0_120 = arith.constant 0 : index
    %c0_121 = arith.constant 0 : index
    %179 = vector.load %arg2[%178, %c0_120, %c0_121] : memref<8x8x128xf32, #tpu.memory_space<vmem>>, vector<1x8x128xf32>
    %180 = vector.shape_cast %179 : vector<1x8x128xf32> to vector<8x128xf32>
    %c0_122 = arith.constant 0 : index
    %c0_123 = arith.constant 0 : index
    %181 = vector.load %arg6[%c0_122, %c0_123] : memref<72x128xf32, #tpu.memory_space<vmem>>, vector<8x128xf32>
    tpu.vector_store %arg6[%c0_122, %c0_123], %180 {strides = array<i32>} : memref<72x128xf32, #tpu.memory_space<vmem>>, vector<8x128xf32>,
    %c8_124 = arith.constant 8 : index
    %c0_125 = arith.constant 0 : index
    %182 = vector.load %arg6[%c8_124, %c0_125] : memref<72x128xf32, #tpu.memory_space<vmem>>, vector<32x128xf32>
    %c40_126 = arith.constant 40 : index
    %c0_127 = arith.constant 0 : index
    %183 = vector.load %arg6[%c40_126, %c0_127] : memref<72x128xf32, #tpu.memory_space<vmem>>, vector<32x128xf32>
    %c0_128 = arith.constant 0 : index
    %c0_129 = arith.constant 0 : index
    %184 = vector.load %arg7[%c0_128, %c0_129] : memref<32x128xf32, #tpu.memory_space<vmem>>, vector<32x128xf32>
    %c0_130 = arith.constant 0 : index
    %c0_131 = arith.constant 0 : index
    %185 = vector.load %arg6[%c0_130, %c0_131] : memref<72x128xf32, #tpu.memory_space<vmem>>, vector<72x128xf32>
    %cst_132 = arith.constant dense<0.000000e+00> : vector<32x128xf32>
    %186 = tpu.matmul %3, %185, %cst_132 {dimension_numbers = #tpu.dot_dimension_numbers<[1], [0], [0], [1], [0, 0, 1, 1], [], []>} : vector<32x72xf32>, vector<72x128xf32>, vector<32x128xf32> -> vector<32x128xf32>
    %cst_133 = arith.constant 1.000000e+01 : f32
    %187 = vector.broadcast %cst_133 : f32 to vector<32x128xf32>
    %188 = arith.divf %186, %187 : vector<32x128xf32>
    %189 = arith.addf %184, %188 : vector<32x128xf32>
    %cst_134 = arith.constant 0.000000e+00 : f32
    %cst_135 = arith.constant 1.000000e+00 : f32
    %190 = vector.broadcast %cst_134 : f32 to vector<32x128xf32>
    %191 = arith.maximumf %190, %189 : vector<32x128xf32>
    %192 = vector.broadcast %cst_135 : f32 to vector<32x128xf32>
    %193 = arith.minimumf %192, %191 : vector<32x128xf32>
    %cst_136 = arith.constant -1.000000e+00 : f32
    %cst_137 = arith.constant 1.000000e+00 : f32
    %194 = vector.broadcast %cst_136 : f32 to vector<32x128xf32>
    %195 = arith.maximumf %194, %188 : vector<32x128xf32>
    %196 = vector.broadcast %cst_137 : f32 to vector<32x128xf32>
    %197 = arith.minimumf %196, %195 : vector<32x128xf32>
    %198 = arith.mulf %193, %197 : vector<32x128xf32>
    %199 = arith.subf %198, %182 : vector<32x128xf32>
    %cst_138 = arith.constant 1.000000e+01 : f32
    %200 = vector.broadcast %cst_138 : f32 to vector<32x128xf32>
    %201 = arith.divf %199, %200 : vector<32x128xf32>
    %202 = arith.addf %182, %201 : vector<32x128xf32>
    %203 = arith.subf %198, %183 : vector<32x128xf32>
    %cst_139 = arith.constant 1.000000e+00 : f32
    %204 = vector.broadcast %cst_139 : f32 to vector<32x128xf32>
    %205 = arith.divf %203, %204 : vector<32x128xf32>
    %206 = arith.addf %183, %205 : vector<32x128xf32>
    %cst_140 = arith.constant 1.000000e+00 : f32
    %207 = vector.broadcast %cst_140 : f32 to vector<32x128xf32>
    %208 = arith.cmpf oge, %189, %207 : vector<32x128xf32>
    %cst_141 = arith.constant -1.000000e+00 : f32
    %209 = vector.broadcast %cst_141 : f32 to vector<32x128xf32>
    %210 = arith.cmpf ole, %189, %209 : vector<32x128xf32>
    %211 = arith.ori %208, %210 : vector<32x128xi1>
    %212 = arith.extui %211 : vector<32x128xi1> to vector<32x128xi32>
    %213 = arith.sitofp %212 : vector<32x128xi32> to vector<32x128xf32>
    %cst_142 = arith.constant 1.000000e+00 : f32
    %214 = vector.broadcast %cst_142 : f32 to vector<32x128xf32>
    %215 = arith.subf %214, %213 : vector<32x128xf32>
    %216 = arith.mulf %215, %189 : vector<32x128xf32>
    %217 = arith.index_cast %c3_i32 : i32 to index
    %c0_143 = arith.constant 0 : index
    %c0_144 = arith.constant 0 : index
    %c0_145 = arith.constant 0 : index
    %218 = vector.load %arg5[%217, %c0_143, %c0_144, %c0_145] : memref<8x4x32x128xf32, #tpu.memory_space<vmem>>, vector<1x1x32x128xf32>
    %219 = vector.shape_cast %218 : vector<1x1x32x128xf32> to vector<32x128xf32>
    %220 = vector.shape_cast %213 : vector<32x128xf32> to vector<1x1x32x128xf32>
    tpu.vector_store %arg5[%217, %c0_143, %c0_144, %c0_145], %220 {strides = array<i32>} : memref<8x4x32x128xf32, #tpu.memory_space<vmem>>, vector<1x1x32x128xf32>,
    %221 = arith.index_cast %c3_i32 : i32 to index
    %c1_146 = arith.constant 1 : index
    %c0_147 = arith.constant 0 : index
    %c0_148 = arith.constant 0 : index
    %222 = vector.load %arg5[%221, %c1_146, %c0_147, %c0_148] : memref<8x4x32x128xf32, #tpu.memory_space<vmem>>, vector<1x1x32x128xf32>
    %223 = vector.shape_cast %222 : vector<1x1x32x128xf32> to vector<32x128xf32>
    %224 = vector.shape_cast %216 : vector<32x128xf32> to vector<1x1x32x128xf32>
    tpu.vector_store %arg5[%221, %c1_146, %c0_147, %c0_148], %224 {strides = array<i32>} : memref<8x4x32x128xf32, #tpu.memory_space<vmem>>, vector<1x1x32x128xf32>,
    %225 = arith.index_cast %c3_i32 : i32 to index
    %c2_149 = arith.constant 2 : index
    %c0_150 = arith.constant 0 : index
    %c0_151 = arith.constant 0 : index
    %226 = vector.load %arg5[%225, %c2_149, %c0_150, %c0_151] : memref<8x4x32x128xf32, #tpu.memory_space<vmem>>, vector<1x1x32x128xf32>
    %227 = vector.shape_cast %226 : vector<1x1x32x128xf32> to vector<32x128xf32>
    %228 = vector.shape_cast %202 : vector<32x128xf32> to vector<1x1x32x128xf32>
    tpu.vector_store %arg5[%225, %c2_149, %c0_150, %c0_151], %228 {strides = array<i32>} : memref<8x4x32x128xf32, #tpu.memory_space<vmem>>, vector<1x1x32x128xf32>,
    %229 = arith.index_cast %c3_i32 : i32 to index
    %c3_152 = arith.constant 3 : index
    %c0_153 = arith.constant 0 : index
    %c0_154 = arith.constant 0 : index
    %230 = vector.load %arg5[%229, %c3_152, %c0_153, %c0_154] : memref<8x4x32x128xf32, #tpu.memory_space<vmem>>, vector<1x1x32x128xf32>
    %231 = vector.shape_cast %230 : vector<1x1x32x128xf32> to vector<32x128xf32>
    %232 = vector.shape_cast %206 : vector<32x128xf32> to vector<1x1x32x128xf32>
    tpu.vector_store %arg5[%229, %c3_152, %c0_153, %c0_154], %232 {strides = array<i32>} : memref<8x4x32x128xf32, #tpu.memory_space<vmem>>, vector<1x1x32x128xf32>,
    %c0_155 = arith.constant 0 : index
    %c0_156 = arith.constant 0 : index
    %233 = vector.load %arg7[%c0_155, %c0_156] : memref<32x128xf32, #tpu.memory_space<vmem>>, vector<32x128xf32>
    tpu.vector_store %arg7[%c0_155, %c0_156], %216 {strides = array<i32>} : memref<32x128xf32, #tpu.memory_space<vmem>>, vector<32x128xf32>,
    %c8_157 = arith.constant 8 : index
    %c0_158 = arith.constant 0 : index
    %234 = vector.load %arg6[%c8_157, %c0_158] : memref<72x128xf32, #tpu.memory_space<vmem>>, vector<32x128xf32>
    tpu.vector_store %arg6[%c8_157, %c0_158], %202 {strides = array<i32>} : memref<72x128xf32, #tpu.memory_space<vmem>>, vector<32x128xf32>,
    %c40_159 = arith.constant 40 : index
    %c0_160 = arith.constant 0 : index
    %235 = vector.load %arg6[%c40_159, %c0_160] : memref<72x128xf32, #tpu.memory_space<vmem>>, vector<32x128xf32>
    tpu.vector_store %arg6[%c40_159, %c0_160], %206 {strides = array<i32>} : memref<72x128xf32, #tpu.memory_space<vmem>>, vector<32x128xf32>,
    %c4_i32 = arith.constant 4 : i32
    %236 = arith.index_cast %c4_i32 : i32 to index
    %c0_161 = arith.constant 0 : index
    %c0_162 = arith.constant 0 : index
    %237 = vector.load %arg2[%236, %c0_161, %c0_162] : memref<8x8x128xf32, #tpu.memory_space<vmem>>, vector<1x8x128xf32>
    %238 = vector.shape_cast %237 : vector<1x8x128xf32> to vector<8x128xf32>
    %c0_163 = arith.constant 0 : index
    %c0_164 = arith.constant 0 : index
    %239 = vector.load %arg6[%c0_163, %c0_164] : memref<72x128xf32, #tpu.memory_space<vmem>>, vector<8x128xf32>
    tpu.vector_store %arg6[%c0_163, %c0_164], %238 {strides = array<i32>} : memref<72x128xf32, #tpu.memory_space<vmem>>, vector<8x128xf32>,
    %c8_165 = arith.constant 8 : index
    %c0_166 = arith.constant 0 : index
    %240 = vector.load %arg6[%c8_165, %c0_166] : memref<72x128xf32, #tpu.memory_space<vmem>>, vector<32x128xf32>
    %c40_167 = arith.constant 40 : index
    %c0_168 = arith.constant 0 : index
    %241 = vector.load %arg6[%c40_167, %c0_168] : memref<72x128xf32, #tpu.memory_space<vmem>>, vector<32x128xf32>
    %c0_169 = arith.constant 0 : index
    %c0_170 = arith.constant 0 : index
    %242 = vector.load %arg7[%c0_169, %c0_170] : memref<32x128xf32, #tpu.memory_space<vmem>>, vector<32x128xf32>
    %c0_171 = arith.constant 0 : index
    %c0_172 = arith.constant 0 : index
    %243 = vector.load %arg6[%c0_171, %c0_172] : memref<72x128xf32, #tpu.memory_space<vmem>>, vector<72x128xf32>
    %cst_173 = arith.constant dense<0.000000e+00> : vector<32x128xf32>
    %244 = tpu.matmul %3, %243, %cst_173 {dimension_numbers = #tpu.dot_dimension_numbers<[1], [0], [0], [1], [0, 0, 1, 1], [], []>} : vector<32x72xf32>, vector<72x128xf32>, vector<32x128xf32> -> vector<32x128xf32>
    %cst_174 = arith.constant 1.000000e+01 : f32
    %245 = vector.broadcast %cst_174 : f32 to vector<32x128xf32>
    %246 = arith.divf %244, %245 : vector<32x128xf32>
    %247 = arith.addf %242, %246 : vector<32x128xf32>
    %cst_175 = arith.constant 0.000000e+00 : f32
    %cst_176 = arith.constant 1.000000e+00 : f32
    %248 = vector.broadcast %cst_175 : f32 to vector<32x128xf32>
    %249 = arith.maximumf %248, %247 : vector<32x128xf32>
    %250 = vector.broadcast %cst_176 : f32 to vector<32x128xf32>
    %251 = arith.minimumf %250, %249 : vector<32x128xf32>
    %cst_177 = arith.constant -1.000000e+00 : f32
    %cst_178 = arith.constant 1.000000e+00 : f32
    %252 = vector.broadcast %cst_177 : f32 to vector<32x128xf32>
    %253 = arith.maximumf %252, %246 : vector<32x128xf32>
    %254 = vector.broadcast %cst_178 : f32 to vector<32x128xf32>
    %255 = arith.minimumf %254, %253 : vector<32x128xf32>
    %256 = arith.mulf %251, %255 : vector<32x128xf32>
    %257 = arith.subf %256, %240 : vector<32x128xf32>
    %cst_179 = arith.constant 1.000000e+01 : f32
    %258 = vector.broadcast %cst_179 : f32 to vector<32x128xf32>
    %259 = arith.divf %257, %258 : vector<32x128xf32>
    %260 = arith.addf %240, %259 : vector<32x128xf32>
    %261 = arith.subf %256, %241 : vector<32x128xf32>
    %cst_180 = arith.constant 1.000000e+00 : f32
    %262 = vector.broadcast %cst_180 : f32 to vector<32x128xf32>
    %263 = arith.divf %261, %262 : vector<32x128xf32>
    %264 = arith.addf %241, %263 : vector<32x128xf32>
    %cst_181 = arith.constant 1.000000e+00 : f32
    %265 = vector.broadcast %cst_181 : f32 to vector<32x128xf32>
    %266 = arith.cmpf oge, %247, %265 : vector<32x128xf32>
    %cst_182 = arith.constant -1.000000e+00 : f32
    %267 = vector.broadcast %cst_182 : f32 to vector<32x128xf32>
    %268 = arith.cmpf ole, %247, %267 : vector<32x128xf32>
    %269 = arith.ori %266, %268 : vector<32x128xi1>
    %270 = arith.extui %269 : vector<32x128xi1> to vector<32x128xi32>
    %271 = arith.sitofp %270 : vector<32x128xi32> to vector<32x128xf32>
    %cst_183 = arith.constant 1.000000e+00 : f32
    %272 = vector.broadcast %cst_183 : f32 to vector<32x128xf32>
    %273 = arith.subf %272, %271 : vector<32x128xf32>
    %274 = arith.mulf %273, %247 : vector<32x128xf32>
    %275 = arith.index_cast %c4_i32 : i32 to index
    %c0_184 = arith.constant 0 : index
    %c0_185 = arith.constant 0 : index
    %c0_186 = arith.constant 0 : index
    %276 = vector.load %arg5[%275, %c0_184, %c0_185, %c0_186] : memref<8x4x32x128xf32, #tpu.memory_space<vmem>>, vector<1x1x32x128xf32>
    %277 = vector.shape_cast %276 : vector<1x1x32x128xf32> to vector<32x128xf32>
    %278 = vector.shape_cast %271 : vector<32x128xf32> to vector<1x1x32x128xf32>
    tpu.vector_store %arg5[%275, %c0_184, %c0_185, %c0_186], %278 {strides = array<i32>} : memref<8x4x32x128xf32, #tpu.memory_space<vmem>>, vector<1x1x32x128xf32>,
    %279 = arith.index_cast %c4_i32 : i32 to index
    %c1_187 = arith.constant 1 : index
    %c0_188 = arith.constant 0 : index
    %c0_189 = arith.constant 0 : index
    %280 = vector.load %arg5[%279, %c1_187, %c0_188, %c0_189] : memref<8x4x32x128xf32, #tpu.memory_space<vmem>>, vector<1x1x32x128xf32>
    %281 = vector.shape_cast %280 : vector<1x1x32x128xf32> to vector<32x128xf32>
    %282 = vector.shape_cast %274 : vector<32x128xf32> to vector<1x1x32x128xf32>
    tpu.vector_store %arg5[%279, %c1_187, %c0_188, %c0_189], %282 {strides = array<i32>} : memref<8x4x32x128xf32, #tpu.memory_space<vmem>>, vector<1x1x32x128xf32>,
    %283 = arith.index_cast %c4_i32 : i32 to index
    %c2_190 = arith.constant 2 : index
    %c0_191 = arith.constant 0 : index
    %c0_192 = arith.constant 0 : index
    %284 = vector.load %arg5[%283, %c2_190, %c0_191, %c0_192] : memref<8x4x32x128xf32, #tpu.memory_space<vmem>>, vector<1x1x32x128xf32>
    %285 = vector.shape_cast %284 : vector<1x1x32x128xf32> to vector<32x128xf32>
    %286 = vector.shape_cast %260 : vector<32x128xf32> to vector<1x1x32x128xf32>
    tpu.vector_store %arg5[%283, %c2_190, %c0_191, %c0_192], %286 {strides = array<i32>} : memref<8x4x32x128xf32, #tpu.memory_space<vmem>>, vector<1x1x32x128xf32>,
    %287 = arith.index_cast %c4_i32 : i32 to index
    %c3_193 = arith.constant 3 : index
    %c0_194 = arith.constant 0 : index
    %c0_195 = arith.constant 0 : index
    %288 = vector.load %arg5[%287, %c3_193, %c0_194, %c0_195] : memref<8x4x32x128xf32, #tpu.memory_space<vmem>>, vector<1x1x32x128xf32>
    %289 = vector.shape_cast %288 : vector<1x1x32x128xf32> to vector<32x128xf32>
    %290 = vector.shape_cast %264 : vector<32x128xf32> to vector<1x1x32x128xf32>
    tpu.vector_store %arg5[%287, %c3_193, %c0_194, %c0_195], %290 {strides = array<i32>} : memref<8x4x32x128xf32, #tpu.memory_space<vmem>>, vector<1x1x32x128xf32>,
    %c0_196 = arith.constant 0 : index
    %c0_197 = arith.constant 0 : index
    %291 = vector.load %arg7[%c0_196, %c0_197] : memref<32x128xf32, #tpu.memory_space<vmem>>, vector<32x128xf32>
    tpu.vector_store %arg7[%c0_196, %c0_197], %274 {strides = array<i32>} : memref<32x128xf32, #tpu.memory_space<vmem>>, vector<32x128xf32>,
    %c8_198 = arith.constant 8 : index
    %c0_199 = arith.constant 0 : index
    %292 = vector.load %arg6[%c8_198, %c0_199] : memref<72x128xf32, #tpu.memory_space<vmem>>, vector<32x128xf32>
    tpu.vector_store %arg6[%c8_198, %c0_199], %260 {strides = array<i32>} : memref<72x128xf32, #tpu.memory_space<vmem>>, vector<32x128xf32>,
    %c40_200 = arith.constant 40 : index
    %c0_201 = arith.constant 0 : index
    %293 = vector.load %arg6[%c40_200, %c0_201] : memref<72x128xf32, #tpu.memory_space<vmem>>, vector<32x128xf32>
    tpu.vector_store %arg6[%c40_200, %c0_201], %264 {strides = array<i32>} : memref<72x128xf32, #tpu.memory_space<vmem>>, vector<32x128xf32>,
    %c5_i32 = arith.constant 5 : i32
    %294 = arith.index_cast %c5_i32 : i32 to index
    %c0_202 = arith.constant 0 : index
    %c0_203 = arith.constant 0 : index
    %295 = vector.load %arg2[%294, %c0_202, %c0_203] : memref<8x8x128xf32, #tpu.memory_space<vmem>>, vector<1x8x128xf32>
    %296 = vector.shape_cast %295 : vector<1x8x128xf32> to vector<8x128xf32>
    %c0_204 = arith.constant 0 : index
    %c0_205 = arith.constant 0 : index
    %297 = vector.load %arg6[%c0_204, %c0_205] : memref<72x128xf32, #tpu.memory_space<vmem>>, vector<8x128xf32>
    tpu.vector_store %arg6[%c0_204, %c0_205], %296 {strides = array<i32>} : memref<72x128xf32, #tpu.memory_space<vmem>>, vector<8x128xf32>,
    %c8_206 = arith.constant 8 : index
    %c0_207 = arith.constant 0 : index
    %298 = vector.load %arg6[%c8_206, %c0_207] : memref<72x128xf32, #tpu.memory_space<vmem>>, vector<32x128xf32>
    %c40_208 = arith.constant 40 : index
    %c0_209 = arith.constant 0 : index
    %299 = vector.load %arg6[%c40_208, %c0_209] : memref<72x128xf32, #tpu.memory_space<vmem>>, vector<32x128xf32>
    %c0_210 = arith.constant 0 : index
    %c0_211 = arith.constant 0 : index
    %300 = vector.load %arg7[%c0_210, %c0_211] : memref<32x128xf32, #tpu.memory_space<vmem>>, vector<32x128xf32>
    %c0_212 = arith.constant 0 : index
    %c0_213 = arith.constant 0 : index
    %301 = vector.load %arg6[%c0_212, %c0_213] : memref<72x128xf32, #tpu.memory_space<vmem>>, vector<72x128xf32>
    %cst_214 = arith.constant dense<0.000000e+00> : vector<32x128xf32>
    %302 = tpu.matmul %3, %301, %cst_214 {dimension_numbers = #tpu.dot_dimension_numbers<[1], [0], [0], [1], [0, 0, 1, 1], [], []>} : vector<32x72xf32>, vector<72x128xf32>, vector<32x128xf32> -> vector<32x128xf32>
    %cst_215 = arith.constant 1.000000e+01 : f32
    %303 = vector.broadcast %cst_215 : f32 to vector<32x128xf32>
    %304 = arith.divf %302, %303 : vector<32x128xf32>
    %305 = arith.addf %300, %304 : vector<32x128xf32>
    %cst_216 = arith.constant 0.000000e+00 : f32
    %cst_217 = arith.constant 1.000000e+00 : f32
    %306 = vector.broadcast %cst_216 : f32 to vector<32x128xf32>
    %307 = arith.maximumf %306, %305 : vector<32x128xf32>
    %308 = vector.broadcast %cst_217 : f32 to vector<32x128xf32>
    %309 = arith.minimumf %308, %307 : vector<32x128xf32>
    %cst_218 = arith.constant -1.000000e+00 : f32
    %cst_219 = arith.constant 1.000000e+00 : f32
    %310 = vector.broadcast %cst_218 : f32 to vector<32x128xf32>
    %311 = arith.maximumf %310, %304 : vector<32x128xf32>
    %312 = vector.broadcast %cst_219 : f32 to vector<32x128xf32>
    %313 = arith.minimumf %312, %311 : vector<32x128xf32>
    %314 = arith.mulf %309, %313 : vector<32x128xf32>
    %315 = arith.subf %314, %298 : vector<32x128xf32>
    %cst_220 = arith.constant 1.000000e+01 : f32
    %316 = vector.broadcast %cst_220 : f32 to vector<32x128xf32>
    %317 = arith.divf %315, %316 : vector<32x128xf32>
    %318 = arith.addf %298, %317 : vector<32x128xf32>
    %319 = arith.subf %314, %299 : vector<32x128xf32>
    %cst_221 = arith.constant 1.000000e+00 : f32
    %320 = vector.broadcast %cst_221 : f32 to vector<32x128xf32>
    %321 = arith.divf %319, %320 : vector<32x128xf32>
    %322 = arith.addf %299, %321 : vector<32x128xf32>
    %cst_222 = arith.constant 1.000000e+00 : f32
    %323 = vector.broadcast %cst_222 : f32 to vector<32x128xf32>
    %324 = arith.cmpf oge, %305, %323 : vector<32x128xf32>
    %cst_223 = arith.constant -1.000000e+00 : f32
    %325 = vector.broadcast %cst_223 : f32 to vector<32x128xf32>
    %326 = arith.cmpf ole, %305, %325 : vector<32x128xf32>
    %327 = arith.ori %324, %326 : vector<32x128xi1>
    %328 = arith.extui %327 : vector<32x128xi1> to vector<32x128xi32>
    %329 = arith.sitofp %328 : vector<32x128xi32> to vector<32x128xf32>
    %cst_224 = arith.constant 1.000000e+00 : f32
    %330 = vector.broadcast %cst_224 : f32 to vector<32x128xf32>
    %331 = arith.subf %330, %329 : vector<32x128xf32>
    %332 = arith.mulf %331, %305 : vector<32x128xf32>
    %333 = arith.index_cast %c5_i32 : i32 to index
    %c0_225 = arith.constant 0 : index
    %c0_226 = arith.constant 0 : index
    %c0_227 = arith.constant 0 : index
    %334 = vector.load %arg5[%333, %c0_225, %c0_226, %c0_227] : memref<8x4x32x128xf32, #tpu.memory_space<vmem>>, vector<1x1x32x128xf32>
    %335 = vector.shape_cast %334 : vector<1x1x32x128xf32> to vector<32x128xf32>
    %336 = vector.shape_cast %329 : vector<32x128xf32> to vector<1x1x32x128xf32>
    tpu.vector_store %arg5[%333, %c0_225, %c0_226, %c0_227], %336 {strides = array<i32>} : memref<8x4x32x128xf32, #tpu.memory_space<vmem>>, vector<1x1x32x128xf32>,
    %337 = arith.index_cast %c5_i32 : i32 to index
    %c1_228 = arith.constant 1 : index
    %c0_229 = arith.constant 0 : index
    %c0_230 = arith.constant 0 : index
    %338 = vector.load %arg5[%337, %c1_228, %c0_229, %c0_230] : memref<8x4x32x128xf32, #tpu.memory_space<vmem>>, vector<1x1x32x128xf32>
    %339 = vector.shape_cast %338 : vector<1x1x32x128xf32> to vector<32x128xf32>
    %340 = vector.shape_cast %332 : vector<32x128xf32> to vector<1x1x32x128xf32>
    tpu.vector_store %arg5[%337, %c1_228, %c0_229, %c0_230], %340 {strides = array<i32>} : memref<8x4x32x128xf32, #tpu.memory_space<vmem>>, vector<1x1x32x128xf32>,
    %341 = arith.index_cast %c5_i32 : i32 to index
    %c2_231 = arith.constant 2 : index
    %c0_232 = arith.constant 0 : index
    %c0_233 = arith.constant 0 : index
    %342 = vector.load %arg5[%341, %c2_231, %c0_232, %c0_233] : memref<8x4x32x128xf32, #tpu.memory_space<vmem>>, vector<1x1x32x128xf32>
    %343 = vector.shape_cast %342 : vector<1x1x32x128xf32> to vector<32x128xf32>
    %344 = vector.shape_cast %318 : vector<32x128xf32> to vector<1x1x32x128xf32>
    tpu.vector_store %arg5[%341, %c2_231, %c0_232, %c0_233], %344 {strides = array<i32>} : memref<8x4x32x128xf32, #tpu.memory_space<vmem>>, vector<1x1x32x128xf32>,
    %345 = arith.index_cast %c5_i32 : i32 to index
    %c3_234 = arith.constant 3 : index
    %c0_235 = arith.constant 0 : index
    %c0_236 = arith.constant 0 : index
    %346 = vector.load %arg5[%345, %c3_234, %c0_235, %c0_236] : memref<8x4x32x128xf32, #tpu.memory_space<vmem>>, vector<1x1x32x128xf32>
    %347 = vector.shape_cast %346 : vector<1x1x32x128xf32> to vector<32x128xf32>
    %348 = vector.shape_cast %322 : vector<32x128xf32> to vector<1x1x32x128xf32>
    tpu.vector_store %arg5[%345, %c3_234, %c0_235, %c0_236], %348 {strides = array<i32>} : memref<8x4x32x128xf32, #tpu.memory_space<vmem>>, vector<1x1x32x128xf32>,
    %c0_237 = arith.constant 0 : index
    %c0_238 = arith.constant 0 : index
    %349 = vector.load %arg7[%c0_237, %c0_238] : memref<32x128xf32, #tpu.memory_space<vmem>>, vector<32x128xf32>
    tpu.vector_store %arg7[%c0_237, %c0_238], %332 {strides = array<i32>} : memref<32x128xf32, #tpu.memory_space<vmem>>, vector<32x128xf32>,
    %c8_239 = arith.constant 8 : index
    %c0_240 = arith.constant 0 : index
    %350 = vector.load %arg6[%c8_239, %c0_240] : memref<72x128xf32, #tpu.memory_space<vmem>>, vector<32x128xf32>
    tpu.vector_store %arg6[%c8_239, %c0_240], %318 {strides = array<i32>} : memref<72x128xf32, #tpu.memory_space<vmem>>, vector<32x128xf32>,
    %c40_241 = arith.constant 40 : index
    %c0_242 = arith.constant 0 : index
    %351 = vector.load %arg6[%c40_241, %c0_242] : memref<72x128xf32, #tpu.memory_space<vmem>>, vector<32x128xf32>
    tpu.vector_store %arg6[%c40_241, %c0_242], %322 {strides = array<i32>} : memref<72x128xf32, #tpu.memory_space<vmem>>, vector<32x128xf32>,
    %c6_i32 = arith.constant 6 : i32
    %352 = arith.index_cast %c6_i32 : i32 to index
    %c0_243 = arith.constant 0 : index
    %c0_244 = arith.constant 0 : index
    %353 = vector.load %arg2[%352, %c0_243, %c0_244] : memref<8x8x128xf32, #tpu.memory_space<vmem>>, vector<1x8x128xf32>
    %354 = vector.shape_cast %353 : vector<1x8x128xf32> to vector<8x128xf32>
    %c0_245 = arith.constant 0 : index
    %c0_246 = arith.constant 0 : index
    %355 = vector.load %arg6[%c0_245, %c0_246] : memref<72x128xf32, #tpu.memory_space<vmem>>, vector<8x128xf32>
    tpu.vector_store %arg6[%c0_245, %c0_246], %354 {strides = array<i32>} : memref<72x128xf32, #tpu.memory_space<vmem>>, vector<8x128xf32>,
    %c8_247 = arith.constant 8 : index
    %c0_248 = arith.constant 0 : index
    %356 = vector.load %arg6[%c8_247, %c0_248] : memref<72x128xf32, #tpu.memory_space<vmem>>, vector<32x128xf32>
    %c40_249 = arith.constant 40 : index
    %c0_250 = arith.constant 0 : index
    %357 = vector.load %arg6[%c40_249, %c0_250] : memref<72x128xf32, #tpu.memory_space<vmem>>, vector<32x128xf32>
    %c0_251 = arith.constant 0 : index
    %c0_252 = arith.constant 0 : index
    %358 = vector.load %arg7[%c0_251, %c0_252] : memref<32x128xf32, #tpu.memory_space<vmem>>, vector<32x128xf32>
    %c0_253 = arith.constant 0 : index
    %c0_254 = arith.constant 0 : index
    %359 = vector.load %arg6[%c0_253, %c0_254] : memref<72x128xf32, #tpu.memory_space<vmem>>, vector<72x128xf32>
    %cst_255 = arith.constant dense<0.000000e+00> : vector<32x128xf32>
    %360 = tpu.matmul %3, %359, %cst_255 {dimension_numbers = #tpu.dot_dimension_numbers<[1], [0], [0], [1], [0, 0, 1, 1], [], []>} : vector<32x72xf32>, vector<72x128xf32>, vector<32x128xf32> -> vector<32x128xf32>
    %cst_256 = arith.constant 1.000000e+01 : f32
    %361 = vector.broadcast %cst_256 : f32 to vector<32x128xf32>
    %362 = arith.divf %360, %361 : vector<32x128xf32>
    %363 = arith.addf %358, %362 : vector<32x128xf32>
    %cst_257 = arith.constant 0.000000e+00 : f32
    %cst_258 = arith.constant 1.000000e+00 : f32
    %364 = vector.broadcast %cst_257 : f32 to vector<32x128xf32>
    %365 = arith.maximumf %364, %363 : vector<32x128xf32>
    %366 = vector.broadcast %cst_258 : f32 to vector<32x128xf32>
    %367 = arith.minimumf %366, %365 : vector<32x128xf32>
    %cst_259 = arith.constant -1.000000e+00 : f32
    %cst_260 = arith.constant 1.000000e+00 : f32
    %368 = vector.broadcast %cst_259 : f32 to vector<32x128xf32>
    %369 = arith.maximumf %368, %362 : vector<32x128xf32>
    %370 = vector.broadcast %cst_260 : f32 to vector<32x128xf32>
    %371 = arith.minimumf %370, %369 : vector<32x128xf32>
    %372 = arith.mulf %367, %371 : vector<32x128xf32>
    %373 = arith.subf %372, %356 : vector<32x128xf32>
    %cst_261 = arith.constant 1.000000e+01 : f32
    %374 = vector.broadcast %cst_261 : f32 to vector<32x128xf32>
    %375 = arith.divf %373, %374 : vector<32x128xf32>
    %376 = arith.addf %356, %375 : vector<32x128xf32>
    %377 = arith.subf %372, %357 : vector<32x128xf32>
    %cst_262 = arith.constant 1.000000e+00 : f32
    %378 = vector.broadcast %cst_262 : f32 to vector<32x128xf32>
    %379 = arith.divf %377, %378 : vector<32x128xf32>
    %380 = arith.addf %357, %379 : vector<32x128xf32>
    %cst_263 = arith.constant 1.000000e+00 : f32
    %381 = vector.broadcast %cst_263 : f32 to vector<32x128xf32>
    %382 = arith.cmpf oge, %363, %381 : vector<32x128xf32>
    %cst_264 = arith.constant -1.000000e+00 : f32
    %383 = vector.broadcast %cst_264 : f32 to vector<32x128xf32>
    %384 = arith.cmpf ole, %363, %383 : vector<32x128xf32>
    %385 = arith.ori %382, %384 : vector<32x128xi1>
    %386 = arith.extui %385 : vector<32x128xi1> to vector<32x128xi32>
    %387 = arith.sitofp %386 : vector<32x128xi32> to vector<32x128xf32>
    %cst_265 = arith.constant 1.000000e+00 : f32
    %388 = vector.broadcast %cst_265 : f32 to vector<32x128xf32>
    %389 = arith.subf %388, %387 : vector<32x128xf32>
    %390 = arith.mulf %389, %363 : vector<32x128xf32>
    %391 = arith.index_cast %c6_i32 : i32 to index
    %c0_266 = arith.constant 0 : index
    %c0_267 = arith.constant 0 : index
    %c0_268 = arith.constant 0 : index
    %392 = vector.load %arg5[%391, %c0_266, %c0_267, %c0_268] : memref<8x4x32x128xf32, #tpu.memory_space<vmem>>, vector<1x1x32x128xf32>
    %393 = vector.shape_cast %392 : vector<1x1x32x128xf32> to vector<32x128xf32>
    %394 = vector.shape_cast %387 : vector<32x128xf32> to vector<1x1x32x128xf32>
    tpu.vector_store %arg5[%391, %c0_266, %c0_267, %c0_268], %394 {strides = array<i32>} : memref<8x4x32x128xf32, #tpu.memory_space<vmem>>, vector<1x1x32x128xf32>,
    %395 = arith.index_cast %c6_i32 : i32 to index
    %c1_269 = arith.constant 1 : index
    %c0_270 = arith.constant 0 : index
    %c0_271 = arith.constant 0 : index
    %396 = vector.load %arg5[%395, %c1_269, %c0_270, %c0_271] : memref<8x4x32x128xf32, #tpu.memory_space<vmem>>, vector<1x1x32x128xf32>
    %397 = vector.shape_cast %396 : vector<1x1x32x128xf32> to vector<32x128xf32>
    %398 = vector.shape_cast %390 : vector<32x128xf32> to vector<1x1x32x128xf32>
    tpu.vector_store %arg5[%395, %c1_269, %c0_270, %c0_271], %398 {strides = array<i32>} : memref<8x4x32x128xf32, #tpu.memory_space<vmem>>, vector<1x1x32x128xf32>,
    %399 = arith.index_cast %c6_i32 : i32 to index
    %c2_272 = arith.constant 2 : index
    %c0_273 = arith.constant 0 : index
    %c0_274 = arith.constant 0 : index
    %400 = vector.load %arg5[%399, %c2_272, %c0_273, %c0_274] : memref<8x4x32x128xf32, #tpu.memory_space<vmem>>, vector<1x1x32x128xf32>
    %401 = vector.shape_cast %400 : vector<1x1x32x128xf32> to vector<32x128xf32>
    %402 = vector.shape_cast %376 : vector<32x128xf32> to vector<1x1x32x128xf32>
    tpu.vector_store %arg5[%399, %c2_272, %c0_273, %c0_274], %402 {strides = array<i32>} : memref<8x4x32x128xf32, #tpu.memory_space<vmem>>, vector<1x1x32x128xf32>,
    %403 = arith.index_cast %c6_i32 : i32 to index
    %c3_275 = arith.constant 3 : index
    %c0_276 = arith.constant 0 : index
    %c0_277 = arith.constant 0 : index
    %404 = vector.load %arg5[%403, %c3_275, %c0_276, %c0_277] : memref<8x4x32x128xf32, #tpu.memory_space<vmem>>, vector<1x1x32x128xf32>
    %405 = vector.shape_cast %404 : vector<1x1x32x128xf32> to vector<32x128xf32>
    %406 = vector.shape_cast %380 : vector<32x128xf32> to vector<1x1x32x128xf32>
    tpu.vector_store %arg5[%403, %c3_275, %c0_276, %c0_277], %406 {strides = array<i32>} : memref<8x4x32x128xf32, #tpu.memory_space<vmem>>, vector<1x1x32x128xf32>,
    %c0_278 = arith.constant 0 : index
    %c0_279 = arith.constant 0 : index
    %407 = vector.load %arg7[%c0_278, %c0_279] : memref<32x128xf32, #tpu.memory_space<vmem>>, vector<32x128xf32>
    tpu.vector_store %arg7[%c0_278, %c0_279], %390 {strides = array<i32>} : memref<32x128xf32, #tpu.memory_space<vmem>>, vector<32x128xf32>,
    %c8_280 = arith.constant 8 : index
    %c0_281 = arith.constant 0 : index
    %408 = vector.load %arg6[%c8_280, %c0_281] : memref<72x128xf32, #tpu.memory_space<vmem>>, vector<32x128xf32>
    tpu.vector_store %arg6[%c8_280, %c0_281], %376 {strides = array<i32>} : memref<72x128xf32, #tpu.memory_space<vmem>>, vector<32x128xf32>,
    %c40_282 = arith.constant 40 : index
    %c0_283 = arith.constant 0 : index
    %409 = vector.load %arg6[%c40_282, %c0_283] : memref<72x128xf32, #tpu.memory_space<vmem>>, vector<32x128xf32>
    tpu.vector_store %arg6[%c40_282, %c0_283], %380 {strides = array<i32>} : memref<72x128xf32, #tpu.memory_space<vmem>>, vector<32x128xf32>,
    %c7_i32 = arith.constant 7 : i32
    %410 = arith.index_cast %c7_i32 : i32 to index
    %c0_284 = arith.constant 0 : index
    %c0_285 = arith.constant 0 : index
    %411 = vector.load %arg2[%410, %c0_284, %c0_285] : memref<8x8x128xf32, #tpu.memory_space<vmem>>, vector<1x8x128xf32>
    %412 = vector.shape_cast %411 : vector<1x8x128xf32> to vector<8x128xf32>
    %c0_286 = arith.constant 0 : index
    %c0_287 = arith.constant 0 : index
    %413 = vector.load %arg6[%c0_286, %c0_287] : memref<72x128xf32, #tpu.memory_space<vmem>>, vector<8x128xf32>
    tpu.vector_store %arg6[%c0_286, %c0_287], %412 {strides = array<i32>} : memref<72x128xf32, #tpu.memory_space<vmem>>, vector<8x128xf32>,
    %c8_288 = arith.constant 8 : index
    %c0_289 = arith.constant 0 : index
    %414 = vector.load %arg6[%c8_288, %c0_289] : memref<72x128xf32, #tpu.memory_space<vmem>>, vector<32x128xf32>
    %c40_290 = arith.constant 40 : index
    %c0_291 = arith.constant 0 : index
    %415 = vector.load %arg6[%c40_290, %c0_291] : memref<72x128xf32, #tpu.memory_space<vmem>>, vector<32x128xf32>
    %c0_292 = arith.constant 0 : index
    %c0_293 = arith.constant 0 : index
    %416 = vector.load %arg7[%c0_292, %c0_293] : memref<32x128xf32, #tpu.memory_space<vmem>>, vector<32x128xf32>
    %c0_294 = arith.constant 0 : index
    %c0_295 = arith.constant 0 : index
    %417 = vector.load %arg6[%c0_294, %c0_295] : memref<72x128xf32, #tpu.memory_space<vmem>>, vector<72x128xf32>
    %cst_296 = arith.constant dense<0.000000e+00> : vector<32x128xf32>
    %418 = tpu.matmul %3, %417, %cst_296 {dimension_numbers = #tpu.dot_dimension_numbers<[1], [0], [0], [1], [0, 0, 1, 1], [], []>} : vector<32x72xf32>, vector<72x128xf32>, vector<32x128xf32> -> vector<32x128xf32>
    %cst_297 = arith.constant 1.000000e+01 : f32
    %419 = vector.broadcast %cst_297 : f32 to vector<32x128xf32>
    %420 = arith.divf %418, %419 : vector<32x128xf32>
    %421 = arith.addf %416, %420 : vector<32x128xf32>
    %cst_298 = arith.constant 0.000000e+00 : f32
    %cst_299 = arith.constant 1.000000e+00 : f32
    %422 = vector.broadcast %cst_298 : f32 to vector<32x128xf32>
    %423 = arith.maximumf %422, %421 : vector<32x128xf32>
    %424 = vector.broadcast %cst_299 : f32 to vector<32x128xf32>
    %425 = arith.minimumf %424, %423 : vector<32x128xf32>
    %cst_300 = arith.constant -1.000000e+00 : f32
    %cst_301 = arith.constant 1.000000e+00 : f32
    %426 = vector.broadcast %cst_300 : f32 to vector<32x128xf32>
    %427 = arith.maximumf %426, %420 : vector<32x128xf32>
    %428 = vector.broadcast %cst_301 : f32 to vector<32x128xf32>
    %429 = arith.minimumf %428, %427 : vector<32x128xf32>
    %430 = arith.mulf %425, %429 : vector<32x128xf32>
    %431 = arith.subf %430, %414 : vector<32x128xf32>
    %cst_302 = arith.constant 1.000000e+01 : f32
    %432 = vector.broadcast %cst_302 : f32 to vector<32x128xf32>
    %433 = arith.divf %431, %432 : vector<32x128xf32>
    %434 = arith.addf %414, %433 : vector<32x128xf32>
    %435 = arith.subf %430, %415 : vector<32x128xf32>
    %cst_303 = arith.constant 1.000000e+00 : f32
    %436 = vector.broadcast %cst_303 : f32 to vector<32x128xf32>
    %437 = arith.divf %435, %436 : vector<32x128xf32>
    %438 = arith.addf %415, %437 : vector<32x128xf32>
    %cst_304 = arith.constant 1.000000e+00 : f32
    %439 = vector.broadcast %cst_304 : f32 to vector<32x128xf32>
    %440 = arith.cmpf oge, %421, %439 : vector<32x128xf32>
    %cst_305 = arith.constant -1.000000e+00 : f32
    %441 = vector.broadcast %cst_305 : f32 to vector<32x128xf32>
    %442 = arith.cmpf ole, %421, %441 : vector<32x128xf32>
    %443 = arith.ori %440, %442 : vector<32x128xi1>
    %444 = arith.extui %443 : vector<32x128xi1> to vector<32x128xi32>
    %445 = arith.sitofp %444 : vector<32x128xi32> to vector<32x128xf32>
    %cst_306 = arith.constant 1.000000e+00 : f32
    %446 = vector.broadcast %cst_306 : f32 to vector<32x128xf32>
    %447 = arith.subf %446, %445 : vector<32x128xf32>
    %448 = arith.mulf %447, %421 : vector<32x128xf32>
    %449 = arith.index_cast %c7_i32 : i32 to index
    %c0_307 = arith.constant 0 : index
    %c0_308 = arith.constant 0 : index
    %c0_309 = arith.constant 0 : index
    %450 = vector.load %arg5[%449, %c0_307, %c0_308, %c0_309] : memref<8x4x32x128xf32, #tpu.memory_space<vmem>>, vector<1x1x32x128xf32>
    %451 = vector.shape_cast %450 : vector<1x1x32x128xf32> to vector<32x128xf32>
    %452 = vector.shape_cast %445 : vector<32x128xf32> to vector<1x1x32x128xf32>
    tpu.vector_store %arg5[%449, %c0_307, %c0_308, %c0_309], %452 {strides = array<i32>} : memref<8x4x32x128xf32, #tpu.memory_space<vmem>>, vector<1x1x32x128xf32>,
    %453 = arith.index_cast %c7_i32 : i32 to index
    %c1_310 = arith.constant 1 : index
    %c0_311 = arith.constant 0 : index
    %c0_312 = arith.constant 0 : index
    %454 = vector.load %arg5[%453, %c1_310, %c0_311, %c0_312] : memref<8x4x32x128xf32, #tpu.memory_space<vmem>>, vector<1x1x32x128xf32>
    %455 = vector.shape_cast %454 : vector<1x1x32x128xf32> to vector<32x128xf32>
    %456 = vector.shape_cast %448 : vector<32x128xf32> to vector<1x1x32x128xf32>
    tpu.vector_store %arg5[%453, %c1_310, %c0_311, %c0_312], %456 {strides = array<i32>} : memref<8x4x32x128xf32, #tpu.memory_space<vmem>>, vector<1x1x32x128xf32>,
    %457 = arith.index_cast %c7_i32 : i32 to index
    %c2_313 = arith.constant 2 : index
    %c0_314 = arith.constant 0 : index
    %c0_315 = arith.constant 0 : index
    %458 = vector.load %arg5[%457, %c2_313, %c0_314, %c0_315] : memref<8x4x32x128xf32, #tpu.memory_space<vmem>>, vector<1x1x32x128xf32>
    %459 = vector.shape_cast %458 : vector<1x1x32x128xf32> to vector<32x128xf32>
    %460 = vector.shape_cast %434 : vector<32x128xf32> to vector<1x1x32x128xf32>
    tpu.vector_store %arg5[%457, %c2_313, %c0_314, %c0_315], %460 {strides = array<i32>} : memref<8x4x32x128xf32, #tpu.memory_space<vmem>>, vector<1x1x32x128xf32>,
    %461 = arith.index_cast %c7_i32 : i32 to index
    %c3_316 = arith.constant 3 : index
    %c0_317 = arith.constant 0 : index
    %c0_318 = arith.constant 0 : index
    %462 = vector.load %arg5[%461, %c3_316, %c0_317, %c0_318] : memref<8x4x32x128xf32, #tpu.memory_space<vmem>>, vector<1x1x32x128xf32>
    %463 = vector.shape_cast %462 : vector<1x1x32x128xf32> to vector<32x128xf32>
    %464 = vector.shape_cast %438 : vector<32x128xf32> to vector<1x1x32x128xf32>
    tpu.vector_store %arg5[%461, %c3_316, %c0_317, %c0_318], %464 {strides = array<i32>} : memref<8x4x32x128xf32, #tpu.memory_space<vmem>>, vector<1x1x32x128xf32>,
    %c0_319 = arith.constant 0 : index
    %c0_320 = arith.constant 0 : index
    %465 = vector.load %arg7[%c0_319, %c0_320] : memref<32x128xf32, #tpu.memory_space<vmem>>, vector<32x128xf32>
    tpu.vector_store %arg7[%c0_319, %c0_320], %448 {strides = array<i32>} : memref<32x128xf32, #tpu.memory_space<vmem>>, vector<32x128xf32>,
    %c8_321 = arith.constant 8 : index
    %c0_322 = arith.constant 0 : index
    %466 = vector.load %arg6[%c8_321, %c0_322] : memref<72x128xf32, #tpu.memory_space<vmem>>, vector<32x128xf32>
    tpu.vector_store %arg6[%c8_321, %c0_322], %434 {strides = array<i32>} : memref<72x128xf32, #tpu.memory_space<vmem>>, vector<32x128xf32>,
    %c40_323 = arith.constant 40 : index
    %c0_324 = arith.constant 0 : index
    %467 = vector.load %arg6[%c40_323, %c0_324] : memref<72x128xf32, #tpu.memory_space<vmem>>, vector<32x128xf32>
    tpu.vector_store %arg6[%c40_323, %c0_324], %438 {strides = array<i32>} : memref<72x128xf32, #tpu.memory_space<vmem>>, vector<32x128xf32>,
    %c8_i32 = arith.constant 8 : i32
    return
  }
  func.func @transform_0(%arg0: i32, %arg1: i32) -> (i32, i32, i32) {
    %c0_i32 = arith.constant 0 : i32
    %c0_i32_0 = arith.constant 0 : i32
    return %arg1, %c0_i32, %arg0 : i32, i32, i32
  }
  func.func @transform_1(%arg0: i32, %arg1: i32) -> (i32, i32) {
    %c0_i32 = arith.constant 0 : i32
    %c0_i32_0 = arith.constant 0 : i32
    %c0_i32_1 = arith.constant 0 : i32
    return %c0_i32, %c0_i32_0 : i32, i32
  }
  func.func @transform_2(%arg0: i32, %arg1: i32) -> (i32, i32, i32) {
    %c0_i32 = arith.constant 0 : i32
    %c0_i32_0 = arith.constant 0 : i32
    %c0_i32_1 = arith.constant 0 : i32
    return %c0_i32, %c0_i32_0, %arg0 : i32, i32, i32
  }
  func.func @transform_3(%arg0: i32, %arg1: i32) -> (i32, i32, i32, i32) {
    %c0_i32 = arith.constant 0 : i32
    %c0_i32_0 = arith.constant 0 : i32
    %c0_i32_1 = arith.constant 0 : i32
    return %arg1, %c0_i32, %c0_i32_0, %arg0 : i32, i32, i32, i32
  }
}

</mosaic_0001>

<bundles_post_ra>
// kernel: nlif_simulate.1
= control target key start
LH: loop header
LB: loop body
LE: loop exit
PB: predicated region body
PF: predicated region fallthrough
CT: control target
= control target key end

     0   :  { %s3465_s12 = smov 0   ;;  %s3467_s13 = smov 0   ;;  %s4703_s0 = inlined_call_operand.vmem [shape: f32[16,8,256], index: 0, kind: input, shape index: {}]   ;;  %s4704_s1 = inlined_call_operand.vmem [shape: f32[32,72], index: 1, kind: input, shape index: {}]   ;;  %s4705_s2 = inlined_call_operand.vmem [shape: f32[3,32,256], index: 2, kind: input, shape index: {}]   ;;  %s4706_s3 = inlined_call_operand.vmem [shape: f32[16,4,32,256], index: 3, kind: output, shape index: {}]  }
   0x1   :  { %s3469_s14 = smov 0   ;;  %s3471_s15 = smov 0  }
   0x2   :  { %s3473_s16 = smov 0   ;;  %s3475_s17 = smov 0  }
   0x3   :  { %s3477_s18 = smov 0   ;;  %s3479_s19 = smov 0  }
   0x4   :  { %s3481_s20 = smov 0  }
   0x5 LB: > { %s22_s21 = sadd.s32 1, %s3434_s18  ;;  %s25_s22 = sadd.s32 1, %s3438_s19  ;;  %s3442_s20 = sphi %s3481_s20, %s13_s20   ;;  %s3438_s19 = sphi %s3479_s19, %s4717_s19   ;;  %s3434_s18 = sphi %s3477_s18, %s4716_s18   ;;  %s3430_s17 = sphi %s3475_s17, %s4715_s17   ;;  %s3426_s16 = sphi %s3473_s16, %s4714_s16   ;;  %s3422_s15 = sphi %s3471_s15, %s4713_s15   ;;  %s3418_s14 = sphi %s3469_s14, %s4712_s14   ;;  %s3414_s13 = sphi %s3467_s13, %s4711_s13   ;;  %s3410_s12 = sphi %s3465_s12, %s4710_s12  }
   0x6   : > { %p23_p0 = scmp.ge.s32.totalorder %s22_s21, 2  ;;  %s2741_s23 = sadd.s32 4294967295, %s3442_s20  }
   0x7   : > { %p41_p1 = scmp.ne.s32.totalorder %s3422_s15, %s3418_s14  ;;  %s34_s24 = sadd.s32 1, %s3422_s15 }
   0x8   : > { %s4719_s21 = smov (%p23_p0, %s22_s21), 0  ;;  %s4721_s22 = smov (!%p23_p0, %s25_s22), %s3438_s19 }
   0x9   : > { %p42_p2 = scmp.eq.s32.totalorder %s3442_s20, 0  ;;  %p27_p3 = scmp.ge.s32.totalorder %s4721_s22, 2 }
   0xa   : > { %s29_s25 = ssub.s32 %s3434_s18, %s4719_s21  ;;  %p88_p5 = scmp.ne.s32.totalorder %s3414_s13, %s3410_s12 }
   0xb   : > { %p3525_p4 = por %p42_p2, %p41_p1  ;;  %s4723_s22 = smov (%p27_p3, %s4721_s22), 0 }
   0xc   : > { %p3533_p6 = por %p88_p5, %p42_p2  ;;  %p120_p7 = scmp.eq.s32.totalorder %s2741_s23, 3 }
   0xd   : > { %s30_s28 = ssub.s32 %s3438_s19, %s4723_s22  ;;  %s81_s29 = sadd.s32 1, %s3414_s13 }
   0xe   : > { %s31_s30 = sor.u32 %s30_s28, %s29_s25  ;;  %p79_p8 = scmp.eq.s32.totalorder %s30_s28, 0 }
   0xf   : > { %p32_p9 = scmp.eq.s32.totalorder %s31_s30, 0  ;;  %p3543_p10 = por %p120_p7, %p41_p1 }
  0x10   : > { %s3548_s5 = scalar_select %p79_p8, %s3414_s13, %s81_s29  }
  0x11   : > { %s3551_s6 = scalar_select %p32_p9, %s3422_s15, %s34_s24  }
  0x12   : > { %p2744_p11 = scmp.ge.s32.totalorder %s3442_s20, 4 }
  0x14   : > { %145 = sbr.rel (%p2744_p11) target bundleno = 45 (0x2d), region = 20 }
  0x19   : > { %148 = sbr.rel (!%p3525_p4) target bundleno = 35 (0x23), region = 24  ;;  %s150_s7 = sand.u32 (%p3525_p4), 1, %s3422_s15  }
  0x1a   : > { %s2995_s8 = sshll.u32 (%p3525_p4), %s3434_s18, 4  ;;  %s2745_s9 = sshll.u32 (%p3525_p4), %s150_s7, 6 }
  0x1b   : > { %s155_s10 = sadd.s32 (%p3525_p4), %s3438_s19, %s2995_s8  ;;  %s152_s24 = scalar_lea.vmem (%p3525_p4), [#allocation4], %s2745_s9 }
  0x1c   : > { %s2748_s11 = sshll.u32 (%p3525_p4), %s155_s10, 3 }
  0x1d   : > { %s157_s28 = scalar_lea.vmem (%p3525_p4), %s4703_s0, %s2748_s11 }
  0x1e   : > { %v200_v0 = vld [vmem:[%s157_s28] sm:$0xff]  ;;  %v202_v1 = vld [vmem:[%s157_s28 + $0x10] sm:$0xff] }
  0x1f   : > { %v204_v2 = vld [vmem:[%s157_s28 + $0x20] sm:$0xff]  ;;  %201 = vst [vmem:[%s152_s24] sm:$0xff] %v200_v0  ;;  %203 = vst [vmem:[%s152_s24 + $0x8] sm:$0xff] %v202_v1  ;;  %v206_v3 = vld [vmem:[%s157_s28 + $0x30] sm:$0xff] }
  0x20   : > { %205 = vst [vmem:[%s152_s24 + $0x10] sm:$0xff] %v204_v2  ;;  %v208_v4 = vld [vmem:[%s157_s28 + $0x40] sm:$0xff]  ;;  %v210_v5 = vld [vmem:[%s157_s28 + $0x50] sm:$0xff]  ;;  %207 = vst [vmem:[%s152_s24 + $0x18] sm:$0xff] %v206_v3 }
  0x21   : > { %209 = vst [vmem:[%s152_s24 + $0x20] sm:$0xff] %v208_v4  ;;  %211 = vst [vmem:[%s152_s24 + $0x28] sm:$0xff] %v210_v5  ;;  %v212_v6 = vld [vmem:[%s157_s28 + $0x60] sm:$0xff]  ;;  %v214_v7 = vld [vmem:[%s157_s28 + $0x70] sm:$0xff] }
  0x22   : > { %213 = vst [vmem:[%s152_s24 + $0x30] sm:$0xff] %v212_v6  ;;  %215 = vst [vmem:[%s152_s24 + $0x38] sm:$0xff] %v214_v7 }
  0x23 PF: > { %221 = sbr.rel (!%p3533_p6) target bundleno = 45 (0x2d), region = 62  ;;  %s223_s26 = sand.u32 (%p3533_p6), 1, %s3414_s13  }
  0x24   : > { %s2749_s29 = sshll.u32 (%p3533_p6), %s3438_s19, 3  ;;  %s3293_s30 = smul.u32 (%p3533_p6), 96, %s223_s26 }
  0x25   : > { %s227_s9 = scalar_lea.vmem (%p3533_p6), %s4705_s2, %s2749_s29 }
  0x26   : > { %v278_v8 = vld [vmem:[%s227_s9] sm:$0xff] (%p3533_p6)  ;;  %v280_v9 = vld [vmem:[%s227_s9 + $0x10] sm:$0xff] (%p3533_p6)  ;;  %s225_s10 = scalar_lea.vmem (%p3533_p6), [#allocation5], %s3293_s30 }
  0x27   : > { %v282_v10 = vld [vmem:[%s227_s9 + $0x20] sm:$0xff] (%p3533_p6)  ;;  %v284_v11 = vld [vmem:[%s227_s9 + $0x30] sm:$0xff] (%p3533_p6)  ;;  %279 = vst [vmem:[%s225_s10] sm:$0xff] (%p3533_p6), %v278_v8  ;;  %281 = vst [vmem:[%s225_s10 + $0x8] sm:$0xff] (%p3533_p6), %v280_v9 }
  0x28   : > { %v286_v12 = vld [vmem:[%s227_s9 + $0x40] sm:$0xff]  ;;  %v288_v13 = vld [vmem:[%s227_s9 + $0x50] sm:$0xff]  ;;  %283 = vst [vmem:[%s225_s10 + $0x10] sm:$0xff] %v282_v10  ;;  %285 = vst [vmem:[%s225_s10 + $0x18] sm:$0xff] %v284_v11 }
  0x29   : > { %287 = vst [vmem:[%s225_s10 + $0x20] sm:$0xff] %v286_v12  ;;  %289 = vst [vmem:[%s225_s10 + $0x28] sm:$0xff] %v288_v13  ;;  %v290_v14 = vld [vmem:[%s227_s9 + $0x60] sm:$0xff]  ;;  %v292_v15 = vld [vmem:[%s227_s9 + $0x70] sm:$0xff] }
  0x2a   : > { %v294_v16 = vld [vmem:[%s227_s9 + $0x80] sm:$0xff]  ;;  %291 = vst [vmem:[%s225_s10 + $0x30] sm:$0xff] %v290_v14  ;;  %293 = vst [vmem:[%s225_s10 + $0x38] sm:$0xff] %v292_v15  ;;  %v296_v17 = vld [vmem:[%s227_s9 + $0x90] sm:$0xff] }
  0x2b   : > { %295 = vst [vmem:[%s225_s10 + $0x40] sm:$0xff] %v294_v16  ;;  %v298_v18 = vld [vmem:[%s227_s9 + $0xa0] sm:$0xff]  ;;  %v300_v19 = vld [vmem:[%s227_s9 + $0xb0] sm:$0xff]  ;;  %297 = vst [vmem:[%s225_s10 + $0x48] sm:$0xff] %v296_v17 }
  0x2c   : > { %299 = vst [vmem:[%s225_s10 + $0x50] sm:$0xff] %v298_v18  ;;  %301 = vst [vmem:[%s225_s10 + $0x58] sm:$0xff] %v300_v19 }
  0x2d PF: > { %p2750_p12 = scmp.ge.s32.totalorder %s3442_s20, 1  ;;  %p306_p13 = scmp.lt.s32.totalorder %s3442_s20, 5 }
  0x2f   : > { %p307_p0 = pnand %p2750_p12, %p306_p13 }
  0x30   : > { %s313_s27 = sand.u32 (!%p307_p0), 1, %s3418_s14   ;;  %s320_s11 = sand.u32 (!%p307_p0), 1, %s3410_s12  }
  0x31   : > { %310 = sbr.rel (%p307_p0) target bundleno = 1991 (0x7c7), region = 100  ;;  %s2751_s23 = sshll.u32 (!%p307_p0), %s313_s27, 6 }
  0x32   : > { %s3294_s25 = smul.u32 (!%p307_p0), 96, %s320_s11  ;;  %s2752_s28 = sshll.u32 (!%p307_p0), %s313_s27, 10 }
  0x33   : > { %s3573_s24 = scalar_lea.vmem (!%p307_p0), [#allocation4], %s2751_s23  ;;  %s3575_s29 = scalar_lea.vmem (!%p307_p0), [#allocation6], %s2752_s28 }
  0x34   : > { %s322_s26 = scalar_lea.vmem (!%p307_p0), [#allocation5], %s3294_s25  ;;  %p2753_p1 = scmp.ne.s32.totalorder (!%p307_p0), %s3426_s16, 0 }
  0x36   : > { %351 = sbr.rel (%p2753_p1) target bundleno = 66 (0x42), region = 112 }
  0x3b   : > { %v352_v20 = vld [vmem:[%s322_s26] sm:$0xff]  ;;  %v353_v21 = vld [vmem:[%s322_s26 + $0x8] sm:$0xff]  ;;  %v354_v22 = vld [vmem:[%s322_s26 + $0x10] sm:$0xff] }
  0x3c   : > { %356 = vst [vmem:[#allocation3 + $0x8] sm:$0xff] %v352_v20  ;;  %357 = vst [vmem:[#allocation3 + $0x10] sm:$0xff] %v353_v21  ;;  %v355_v23 = vld [vmem:[%s322_s26 + $0x18] sm:$0xff]  ;;  %v2754_v24 = vld [vmem:[%s322_s26 + $0x20] sm:$0xff] }
  0x3d   : > { %358 = vst [vmem:[#allocation3] sm:$0xff] %v354_v22  ;;  %v2755_v25 = vld [vmem:[%s322_s26 + $0x28] sm:$0xff]  ;;  %359 = vst [vmem:[#allocation3 + $0x18] sm:$0xff] %v355_v23  ;;  %v2756_v26 = vld [vmem:[%s322_s26 + $0x30] sm:$0xff] }
  0x3e   : > { %365 = vst [vmem:[#allocation2 + $0x38] sm:$0xff] %v2754_v24  ;;  %366 = vst [vmem:[#allocation2 + $0x8] sm:$0xff] %v2755_v25  ;;  %v2757_v27 = vld [vmem:[%s322_s26 + $0x38] sm:$0xff]  ;;  %v2758_v28 = vld [vmem:[%s322_s26 + $0x40] sm:$0xff] }
  0x3f   : > { %367 = vst [vmem:[#allocation2 + $0x20] sm:$0xff] %v2756_v26  ;;  %368 = vst [vmem:[#allocation2 + $0x18] sm:$0xff] %v2757_v27  ;;  %v2759_v29 = vld [vmem:[%s322_s26 + $0x48] sm:$0xff]  ;;  %v2760_v30 = vld [vmem:[%s322_s26 + $0x50] sm:$0xff] }
  0x40   : > { %374 = vst [vmem:[#allocation2 + $0x28] sm:$0xff] %v2758_v28  ;;  %v2761_v31 = vld [vmem:[%s322_s26 + $0x58] sm:$0xff]  ;;  %375 = vst [vmem:[#allocation2 + $0x30] sm:$0xff] %v2759_v29 }
  0x41   : > { %376 = vst [vmem:[#allocation2] sm:$0xff] %v2760_v30  ;;  %377 = vst [vmem:[#allocation2 + $0x40] sm:$0xff] %v2761_v31 }
  0x42 PF: > { %vm401_vm0 = vcmask 588800   ;;  %v3590_v35 = vld [vmem:[%s4704_s1] sm:$0xff]  ;;  %v382_v41 = vld [vmem:[%s3573_s24] sm:$0xff]  ;;  %v3628_v43 = vld [vmem:[%s4704_s1 + $0x10] sm:$0xff]  ;;  %v3444_v60 = vmov 0.0  }
  0x43   : > { %3119 = vmatprep.mubr.msk.f32.mxu0 %vm401_vm0, %v3590_v35  ;;  %3143 = vmatprep.mubr.msk.f32.mxu1 %vm401_vm0, %v3590_v35  ;;  %v3623_v42 = vld [vmem:[%s4704_s1 + $0x8] sm:$0xff]  ;;  %v3637_v44 = vld [vmem:[%s4704_s1 + $0x18] sm:$0xff]  ;;  %v392_v48 = vld [vmem:[#allocation3 + $0x8] sm:$0xff] }
  0x44   : > { %v393_v45 = vld [vmem:[#allocation3 + $0x10] sm:$0xff]  ;;  %v395_v55 = vld [vmem:[#allocation3 + $0x18] sm:$0xff]  ;;  %v394_v5 = vld [vmem:[#allocation3] sm:$0xff] }
  0x45   : > { %v3609_v39 = vld [vmem:[#allocation2 + $0x8] sm:$0xff]  ;;  %v3613_v40 = vld [vmem:[#allocation2 + $0x38] sm:$0xff] }
  0x46   : > { %v3601_v37 = vld [vmem:[#allocation2 + $0x18] sm:$0xff]  ;;  %v3605_v38 = vld [vmem:[#allocation2 + $0x20] sm:$0xff] }
  0x47   : > { %v3584_v34 = vld [vmem:[#allocation2 + $0x30] sm:$0xff]  ;;  %v3593_v36 = vld [vmem:[#allocation2 + $0x28] sm:$0xff] }
  0x48   : > { %v3578_v32 = vld [vmem:[#allocation2 + $0x40] sm:$0xff] }
  0x49   : > { %v3580_v33 = vld [vmem:[#allocation2] sm:$0xff]  ;;  %3101 = vmatprep.subr.mxu0 %v3578_v32 }
  0x4a   : > { %3102 = vmatpush3.msra.mxu0 %v3578_v32 }
  0x4b   : > { %3103 = vmatprep.subr.mxu0 %v3580_v33 }
  0x4c   : > { %3104 = vmatpush3.msra.mxu0 %v3580_v33 }
  0x4d   : > { %3105 = vmatprep.subr.mxu0 %v3584_v34 }
  0x4e   : > { %3106 = vmatpush3.msra.mxu0 %v3584_v34 }
  0x4f   : > { %3107 = vmatprep.subr.mxu0 %v3593_v36 }
  0x50   : > { %3108 = vmatpush3.msra.mxu0 %v3593_v36 }
  0x51   : > { %3109 = vmatprep.subr.mxu0 %v3601_v37 }
  0x52   : > { %3110 = vmatpush3.msra.mxu0 %v3601_v37 }
  0x53   : > { %3111 = vmatprep.subr.mxu0 %v3605_v38 }
  0x54   : > { %3112 = vmatpush3.msra.mxu0 %v3605_v38 }
  0x55   : > { %3113 = vmatprep.subr.mxu0 %v3609_v39 }
  0x56   : > { %3114 = vmatpush3.msra.mxu0 %v3609_v39 }
  0x57   : > { %3115 = vmatprep.subr.mxu0 %v3613_v40 }
  0x58   : > { %3116 = vmatpush3.msra.mxu0 %v3613_v40 }
  0x59   : > { %3117 = vmatprep.subr.mxu0 %v382_v41 }
  0x5a   : > { %3118 = vmatpush3.msra.mxu0 %v382_v41 }
  0x5b   : > { %3120 = vmatmul.mubr.msk.f32.vlgmr.msra.gmra.mxu0 %vm401_vm0, %v3623_v42 }
  0x5c   : > { %3122 = vmatprep.mubr.msk.f32.mxu0 %vm401_vm0, %v3628_v43 }
  0x5f   : > { %3123 = vmatmul.mubr.msk.f32.gmra.mxu0 %vm401_vm0, %v3637_v44 }
  0x60   : > { %3167 = vmatprep.mubr.msk.f32.mxu0 %vm401_vm0, %v3590_v35 }
 0x11b   : > { %v3121_v46 = vpop.f32.mrf.mxu0 }
 0x11c   : > { %v501_v47 = vmul.f32 0.1, %v3121_v46 }
 0x11d   : > { %v480_v49 = vpop.f32.mrf.mxu0 }
 0x11e   : > { %v505_v50 = vadd.f32 %v501_v47, %v393_v45  ;;  %v500_v51 = vmul.f32 0.1, %v480_v49  ;;  %v2767_v56 = vclamps-f32 %v501_v47, 1.0 }
 0x11f   : > { %v3124_v52 = vpop.f32.mrf.mxu0 }
 0x120   : > { %v509_v53 = vmax.f32 %v505_v50, 0.0  ;;  %vm549_vm1 = vcmp.ge.f32.partialorder %v505_v50, 1.0  ;;  %vm553_vm2 = vcmp.le.f32.partialorder %v505_v50, -1.0  ;;  %v504_v54 = vadd.f32 %v500_v51, %v392_v48 }
 0x121   : > { %vm557_vm3 = vmor %vm549_vm1, %vm553_vm2  ;;  %v503_v57 = vmul.f32 0.1, %v3124_v52  ;;  %v490_v58 = vpop.f32.mrf.mxu0  ;;  %v2766_v0 = vclamps-f32 %v500_v51, 1.0 }
 0x122   : > { %v513_v59 = vmin.f32 %v509_v53, 1.0  ;;  %v2771_v61 = vsel %vm557_vm3, 1.0, %v3444_v60  ;;  %v508_v62 = vmax.f32 %v504_v54, 0.0  ;;  %vm548_vm4 = vcmp.ge.f32.partialorder %v504_v54, 1.0 }
 0x123   : > { %v569_v63 = vsub.f32 1.0, %v2771_v61  ;;  %577 = vst [vmem:[%s3575_s29 + $0x8] sm:$0xff] %v2771_v61  ;;  %vm552_vm5 = vcmp.le.f32.partialorder %v504_v54, -1.0  ;;  %v507_v1 = vadd.f32 %v503_v57, %v395_v55  ;;  %v2769_v4 = vclamps-f32 %v503_v57, 1.0 }
 0x124   : > { %v525_v2 = vmul.f32 %v2767_v56, %v513_v59  ;;  %v512_v3 = vmin.f32 %v508_v62, 1.0  ;;  %vm556_vm6 = vmor %vm548_vm4, %vm552_vm5  ;;  %v502_v6 = vmul.f32 0.1, %v490_v58 }
 0x125   : > { %v3645_v7 = vmul.f32 %v569_v63, %v505_v50  ;;  %v2770_v8 = vsel %vm556_vm6, 1.0, %v3444_v60  ;;  %v511_v9 = vmax.f32 %v507_v1, 0.0  ;;  %vm551_vm7 = vcmp.ge.f32.partialorder %v507_v1, 1.0 }
 0x126   : > { %v529_v10 = vsub.f32 %v525_v2, %v3609_v39  ;;  %v541_v11 = vsub.f32 %v525_v2, %v3584_v34  ;;  %v524_v12 = vmul.f32 %v2766_v0, %v512_v3  ;;  %v568_v13 = vsub.f32 1.0, %v2770_v8  ;;  %576 = vst [vmem:[%s3575_s29] sm:$0xff] %v2770_v8 }
 0x127   : > { %2775 = vst [vmem:[%s3575_s29 + $0x28] sm:$0xff] %v3645_v7  ;;  %v515_v14 = vmin.f32 %v511_v9, 1.0  ;;  %vm555_vm8 = vcmp.le.f32.partialorder %v507_v1, -1.0  ;;  %v506_v15 = vadd.f32 %v502_v6, %v394_v5  ;;  %v2768_v16 = vclamps-f32 %v502_v6, 1.0 }
 0x128   : > { %v533_v17 = vmul.f32 0.1, %v529_v10  ;;  %v3654_v18 = vadd.f32 %v541_v11, %v3584_v34  ;;  %v528_v19 = vsub.f32 %v524_v12, %v3613_v40  ;;  %v540_v20 = vsub.f32 %v524_v12, %v3593_v36  ;;  %vm559_vm9 = vmor %vm551_vm7, %vm555_vm8 }
 0x129   : > { %v3659_v21 = vmul.f32 %v568_v13, %v504_v54  ;;  %v527_v22 = vmul.f32 %v2769_v4, %v515_v14  ;;  %v2773_v23 = vsel %vm559_vm9, 1.0, %v3444_v60  ;;  %v510_v24 = vmax.f32 %v506_v15, 0.0 }
 0x12a   : > { %v3663_v25 = vadd.f32 %v533_v17, %v3609_v39  ;;  %2783 = vst [vmem:[%s3575_s29 + $0x68] sm:$0xff] %v3654_v18  ;;  %v532_v26 = vmul.f32 0.1, %v528_v19  ;;  %v3668_v27 = vadd.f32 %v540_v20, %v3593_v36  ;;  %v571_v28 = vsub.f32 1.0, %v2773_v23  ;;  %579 = vst [vmem:[%s3575_s29 + $0x18] sm:$0xff] %v2773_v23 }
 0x12b   : > { %2774 = vst [vmem:[%s3575_s29 + $0x20] sm:$0xff] %v3659_v21  ;;  %v531_v29 = vsub.f32 %v527_v22, %v3601_v37  ;;  %v543_v30 = vsub.f32 %v527_v22, %v3578_v32  ;;  %v514_v31 = vmin.f32 %v510_v24, 1.0  ;;  %vm550_vm10 = vcmp.ge.f32.partialorder %v506_v15, 1.0 }
 0x12c   : > { %2779 = vst [vmem:[%s3575_s29 + $0x48] sm:$0xff] %v3663_v25  ;;  %v3678_v34 = vadd.f32 %v532_v26, %v3613_v40  ;;  %2782 = vst [vmem:[%s3575_s29 + $0x60] sm:$0xff] %v3668_v27  ;;  %v3682_v36 = vmul.f32 %v571_v28, %v507_v1  ;;  %vm554_vm11 = vcmp.le.f32.partialorder %v506_v15, -1.0 }
 0x12d   : > { %v535_v39 = vmul.f32 0.1, %v531_v29  ;;  %v3685_v41 = vadd.f32 %v543_v30, %v3578_v32  ;;  %v526_v45 = vmul.f32 %v2768_v16, %v514_v31  ;;  %vm558_vm12 = vmor %vm550_vm10, %vm554_vm11 }
 0x12e   : > { %2778 = vst [vmem:[%s3575_s29 + $0x40] sm:$0xff] %v3678_v34  ;;  %2777 = vst [vmem:[%s3575_s29 + $0x38] sm:$0xff] %v3682_v36  ;;  %v2772_v40 = vsel %vm558_vm12, 1.0, %v3444_v60 }
 0x12f   : > { %v3693_v46 = vadd.f32 %v535_v39, %v3601_v37  ;;  %2785 = vst [vmem:[%s3575_s29 + $0x78] sm:$0xff] %v3685_v41  ;;  %v530_v47 = vsub.f32 %v526_v45, %v3605_v38  ;;  %v542_v32 = vsub.f32 %v526_v45, %v3580_v33  ;;  %v570_v48 = vsub.f32 1.0, %v2772_v40  ;;  %578 = vst [vmem:[%s3575_s29 + $0x10] sm:$0xff] %v2772_v40 }
 0x130   : > { %3125 = vmatprep.subr.mxu1 %v3685_v41 }
 0x131   : > { %3126 = vmatpush3.msra.mxu1 %v3685_v41  ;;  %2781 = vst [vmem:[%s3575_s29 + $0x58] sm:$0xff] %v3693_v46  ;;  %v534_v49 = vmul.f32 0.1, %v530_v47  ;;  %v3705_v50 = vadd.f32 %v542_v32, %v3580_v33  ;;  %v3707_v37 = vmul.f32 %v570_v48, %v506_v15  ;;  %v2786_v33 = vld [vmem:[%s3573_s24 + $0x8] sm:$0xff] }
 0x133   : > { %v3710_v51 = vadd.f32 %v534_v49, %v3605_v38  ;;  %2776 = vst [vmem:[%s3575_s29 + $0x30] sm:$0xff] %v3707_v37  ;;  %2784 = vst [vmem:[%s3575_s29 + $0x70] sm:$0xff] %v3705_v50  ;;  %3127 = vmatprep.subr.mxu1 %v3705_v50 }
 0x134   : > { %3128 = vmatpush3.msra.mxu1 %v3705_v50 }
 0x135   : > { %2780 = vst [vmem:[%s3575_s29 + $0x50] sm:$0xff] %v3710_v51  ;;  %3129 = vmatprep.subr.mxu1 %v3654_v18 }
 0x136   : > { %3130 = vmatpush3.msra.mxu1 %v3654_v18 }
 0x137   : > { %3131 = vmatprep.subr.mxu1 %v3668_v27 }
 0x138   : > { %3132 = vmatpush3.msra.mxu1 %v3668_v27 }
 0x139   : > { %3133 = vmatprep.subr.mxu1 %v3693_v46 }
 0x13a   : > { %3134 = vmatpush3.msra.mxu1 %v3693_v46 }
 0x13b   : > { %3135 = vmatprep.subr.mxu1 %v3710_v51 }
 0x13c   : > { %3136 = vmatpush3.msra.mxu1 %v3710_v51 }
 0x13d   : > { %3137 = vmatprep.subr.mxu1 %v3663_v25 }
 0x13e   : > { %3138 = vmatpush3.msra.mxu1 %v3663_v25 }
 0x13f   : > { %3139 = vmatprep.subr.mxu1 %v3678_v34 }
 0x140   : > { %3140 = vmatpush3.msra.mxu1 %v3678_v34 }
 0x141   : > { %3141 = vmatprep.subr.mxu1 %v2786_v33 }
 0x142   : > { %3142 = vmatpush3.msra.mxu1 %v2786_v33 }
 0x143   : > { %3144 = vmatmul.mubr.msk.f32.vlgmr.msra.gmra.mxu1 %vm401_vm0, %v3623_v42 }
 0x144   : > { %3146 = vmatprep.mubr.msk.f32.mxu1 %vm401_vm0, %v3628_v43 }
 0x147   : > { %3147 = vmatmul.mubr.msk.f32.gmra.mxu1 %vm401_vm0, %v3637_v44 }
 0x148   : > { %3191 = vmatprep.mubr.msk.f32.mxu1 %vm401_vm0, %v3590_v35 }
 0x203   : > { %v3145_v38 = vpop.f32.mrf.mxu1 }
 0x204   : > { %v713_v52 = vmul.f32 0.1, %v3145_v38 }
 0x205   : > { %v693_v53 = vpop.f32.mrf.mxu1 }
 0x206   : > { %v717_v54 = vadd.f32 %v713_v52, %v3645_v7  ;;  %v712_v55 = vmul.f32 0.1, %v693_v53  ;;  %v2792_v59 = vclamps-f32 %v713_v52, 1.0 }
 0x207   : > { %v3148_v56 = vpop.f32.mrf.mxu1 }
 0x208   : > { %v721_v57 = vmax.f32 %v717_v54, 0.0  ;;  %vm761_vm13 = vcmp.ge.f32.partialorder %v717_v54, 1.0  ;;  %vm765_vm14 = vcmp.le.f32.partialorder %v717_v54, -1.0  ;;  %v716_v58 = vadd.f32 %v712_v55, %v3659_v21 }
 0x209   : > { %vm769_vm15 = vmor %vm761_vm13, %vm765_vm14  ;;  %v715_v61 = vmul.f32 0.1, %v3148_v56  ;;  %v703_v62 = vpop.f32.mrf.mxu1  ;;  %v2791_v3 = vclamps-f32 %v712_v55, 1.0 }
 0x20a   : > { %v725_v63 = vmin.f32 %v721_v57, 1.0  ;;  %v2796_v0 = vsel %vm769_vm15, 1.0, %v3444_v60  ;;  %v720_v1 = vmax.f32 %v716_v58, 0.0  ;;  %vm760_vm1 = vcmp.ge.f32.partialorder %v716_v58, 1.0 }
 0x20b   : > { %v781_v2 = vsub.f32 1.0, %v2796_v0  ;;  %2800 = vst [vmem:[%s3575_s29 + $0x88] sm:$0xff] %v2796_v0  ;;  %vm764_vm2 = vcmp.le.f32.partialorder %v716_v58, -1.0  ;;  %v719_v4 = vadd.f32 %v715_v61, %v3682_v36  ;;  %v2794_v7 = vclamps-f32 %v715_v61, 1.0 }
 0x20c   : > { %v737_v5 = vmul.f32 %v2792_v59, %v725_v63  ;;  %v724_v6 = vmin.f32 %v720_v1, 1.0  ;;  %vm768_vm3 = vmor %vm760_vm1, %vm764_vm2  ;;  %v714_v8 = vmul.f32 0.1, %v703_v62 }
 0x20d   : > { %v3746_v9 = vmul.f32 %v781_v2, %v717_v54  ;;  %v2795_v10 = vsel %vm768_vm3, 1.0, %v3444_v60  ;;  %v723_v11 = vmax.f32 %v719_v4, 0.0  ;;  %vm763_vm4 = vcmp.ge.f32.partialorder %v719_v4, 1.0 }
 0x20e   : > { %v741_v12 = vsub.f32 %v737_v5, %v3663_v25  ;;  %v753_v13 = vsub.f32 %v737_v5, %v3654_v18  ;;  %v736_v14 = vmul.f32 %v2791_v3, %v724_v6  ;;  %v780_v15 = vsub.f32 1.0, %v2795_v10  ;;  %2799 = vst [vmem:[%s3575_s29 + $0x80] sm:$0xff] %v2795_v10 }
 0x20f   : > { %2804 = vst [vmem:[%s3575_s29 + $0xa8] sm:$0xff] %v3746_v9  ;;  %v727_v16 = vmin.f32 %v723_v11, 1.0  ;;  %vm767_vm5 = vcmp.le.f32.partialorder %v719_v4, -1.0  ;;  %v718_v17 = vadd.f32 %v714_v8, %v3707_v37  ;;  %v2793_v19 = vclamps-f32 %v714_v8, 1.0 }
 0x210   : > { %v745_v20 = vmul.f32 0.1, %v741_v12  ;;  %v3756_v21 = vadd.f32 %v753_v13, %v3654_v18  ;;  %v740_v22 = vsub.f32 %v736_v14, %v3678_v34  ;;  %v752_v23 = vsub.f32 %v736_v14, %v3668_v27  ;;  %vm771_vm6 = vmor %vm763_vm4, %vm767_vm5 }
 0x211   : > { %v3761_v24 = vmul.f32 %v780_v15, %v716_v58  ;;  %v739_v26 = vmul.f32 %v2794_v7, %v727_v16  ;;  %v2798_v28 = vsel %vm771_vm6, 1.0, %v3444_v60  ;;  %v722_v29 = vmax.f32 %v718_v17, 0.0 }
 0x212   : > { %v3765_v30 = vadd.f32 %v745_v20, %v3663_v25  ;;  %2812 = vst [vmem:[%s3575_s29 + $0xe8] sm:$0xff] %v3756_v21  ;;  %v744_v18 = vmul.f32 0.1, %v740_v22  ;;  %v3770_v31 = vadd.f32 %v752_v23, %v3668_v27  ;;  %v783_v36 = vsub.f32 1.0, %v2798_v28  ;;  %2802 = vst [vmem:[%s3575_s29 + $0x98] sm:$0xff] %v2798_v28 }
 0x213   : > { %2803 = vst [vmem:[%s3575_s29 + $0xa0] sm:$0xff] %v3761_v24  ;;  %v743_v39 = vsub.f32 %v739_v26, %v3693_v46  ;;  %v755_v45 = vsub.f32 %v739_v26, %v3685_v41  ;;  %v726_v40 = vmin.f32 %v722_v29, 1.0  ;;  %vm762_vm7 = vcmp.ge.f32.partialorder %v718_v17, 1.0 }
 0x214   : > { %2808 = vst [vmem:[%s3575_s29 + $0xc8] sm:$0xff] %v3765_v30  ;;  %v3780_v25 = vadd.f32 %v744_v18, %v3678_v34  ;;  %2811 = vst [vmem:[%s3575_s29 + $0xe0] sm:$0xff] %v3770_v31  ;;  %v3784_v27 = vmul.f32 %v783_v36, %v719_v4  ;;  %vm766_vm8 = vcmp.le.f32.partialorder %v718_v17, -1.0 }
 0x215   : > { %v747_v47 = vmul.f32 0.1, %v743_v39  ;;  %v3787_v32 = vadd.f32 %v755_v45, %v3685_v41  ;;  %v738_v48 = vmul.f32 %v2793_v19, %v726_v40  ;;  %vm770_vm9 = vmor %vm762_vm7, %vm766_vm8 }
 0x216   : > { %2807 = vst [vmem:[%s3575_s29 + $0xc0] sm:$0xff] %v3780_v25  ;;  %2806 = vst [vmem:[%s3575_s29 + $0xb8] sm:$0xff] %v3784_v27  ;;  %v2797_v34 = vsel %vm770_vm9, 1.0, %v3444_v60 }
 0x217   : > { %v3795_v49 = vadd.f32 %v747_v47, %v3693_v46  ;;  %2814 = vst [vmem:[%s3575_s29 + $0xf8] sm:$0xff] %v3787_v32  ;;  %v742_v37 = vsub.f32 %v738_v48, %v3710_v51  ;;  %v754_v41 = vsub.f32 %v738_v48, %v3705_v50  ;;  %v782_v33 = vsub.f32 1.0, %v2797_v34  ;;  %2801 = vst [vmem:[%s3575_s29 + $0x90] sm:$0xff] %v2797_v34 }
 0x218   : > { %3149 = vmatprep.subr.mxu0 %v3787_v32 }
 0x219   : > { %3150 = vmatpush3.msra.mxu0 %v3787_v32  ;;  %2810 = vst [vmem:[%s3575_s29 + $0xd8] sm:$0xff] %v3795_v49  ;;  %v746_v38 = vmul.f32 0.1, %v742_v37  ;;  %v3807_v52 = vadd.f32 %v754_v41, %v3705_v50  ;;  %v3809_v46 = vmul.f32 %v782_v33, %v718_v17  ;;  %v2815_v50 = vld [vmem:[%s3573_s24 + $0x10] sm:$0xff] }
 0x21b   : > { %v3812_v53 = vadd.f32 %v746_v38, %v3710_v51  ;;  %2805 = vst [vmem:[%s3575_s29 + $0xb0] sm:$0xff] %v3809_v46  ;;  %2813 = vst [vmem:[%s3575_s29 + $0xf0] sm:$0xff] %v3807_v52  ;;  %3151 = vmatprep.subr.mxu0 %v3807_v52 }
 0x21c   : > { %3152 = vmatpush3.msra.mxu0 %v3807_v52 }
 0x21d   : > { %2809 = vst [vmem:[%s3575_s29 + $0xd0] sm:$0xff] %v3812_v53  ;;  %3153 = vmatprep.subr.mxu0 %v3756_v21 }
 0x21e   : > { %3154 = vmatpush3.msra.mxu0 %v3756_v21 }
 0x21f   : > { %3155 = vmatprep.subr.mxu0 %v3770_v31 }
 0x220   : > { %3156 = vmatpush3.msra.mxu0 %v3770_v31 }
 0x221   : > { %3157 = vmatprep.subr.mxu0 %v3795_v49 }
 0x222   : > { %3158 = vmatpush3.msra.mxu0 %v3795_v49 }
 0x223   : > { %3159 = vmatprep.subr.mxu0 %v3812_v53 }
 0x224   : > { %3160 = vmatpush3.msra.mxu0 %v3812_v53 }
 0x225   : > { %3161 = vmatprep.subr.mxu0 %v3765_v30 }
 0x226   : > { %3162 = vmatpush3.msra.mxu0 %v3765_v30 }
 0x227   : > { %3163 = vmatprep.subr.mxu0 %v3780_v25 }
 0x228   : > { %3164 = vmatpush3.msra.mxu0 %v3780_v25 }
 0x229   : > { %3165 = vmatprep.subr.mxu0 %v2815_v50 }
 0x22a   : > { %3166 = vmatpush3.msra.mxu0 %v2815_v50 }
 0x22b   : > { %3168 = vmatmul.mubr.msk.f32.vlgmr.msra.gmra.mxu0 %vm401_vm0, %v3623_v42 }
 0x22c   : > { %3170 = vmatprep.mubr.msk.f32.mxu0 %vm401_vm0, %v3628_v43 }
 0x22f   : > { %3171 = vmatmul.mubr.msk.f32.gmra.mxu0 %vm401_vm0, %v3637_v44 }
 0x230   : > { %3215 = vmatprep.mubr.msk.f32.mxu0 %vm401_vm0, %v3590_v35 }
 0x2eb   : > { %v3169_v51 = vpop.f32.mrf.mxu0 }
 0x2ec   : > { %v926_v54 = vmul.f32 0.1, %v3169_v51 }
 0x2ed   : > { %v906_v55 = vpop.f32.mrf.mxu0 }
 0x2ee   : > { %v930_v56 = vadd.f32 %v926_v54, %v3746_v9  ;;  %v925_v57 = vmul.f32 0.1, %v906_v55  ;;  %v2821_v62 = vclamps-f32 %v926_v54, 1.0 }
 0x2ef   : > { %v3172_v58 = vpop.f32.mrf.mxu0 }
 0x2f0   : > { %v934_v59 = vmax.f32 %v930_v56, 0.0  ;;  %vm974_vm10 = vcmp.ge.f32.partialorder %v930_v56, 1.0  ;;  %vm978_vm11 = vcmp.le.f32.partialorder %v930_v56, -1.0  ;;  %v929_v61 = vadd.f32 %v925_v57, %v3761_v24 }
 0x2f1   : > { %vm982_vm12 = vmor %vm974_vm10, %vm978_vm11  ;;  %v928_v63 = vmul.f32 0.1, %v3172_v58  ;;  %v916_v0 = vpop.f32.mrf.mxu0  ;;  %v2820_v5 = vclamps-f32 %v925_v57, 1.0 }
 0x2f2   : > { %v938_v1 = vmin.f32 %v934_v59, 1.0  ;;  %v2825_v2 = vsel %vm982_vm12, 1.0, %v3444_v60  ;;  %v933_v3 = vmax.f32 %v929_v61, 0.0  ;;  %vm973_vm13 = vcmp.ge.f32.partialorder %v929_v61, 1.0 }
 0x2f3   : > { %v994_v4 = vsub.f32 1.0, %v2825_v2  ;;  %2829 = vst [vmem:[%s3575_s29 + $0x108] sm:$0xff] %v2825_v2  ;;  %vm977_vm14 = vcmp.le.f32.partialorder %v929_v61, -1.0  ;;  %v932_v6 = vadd.f32 %v928_v63, %v3784_v27  ;;  %v2823_v9 = vclamps-f32 %v928_v63, 1.0 }
 0x2f4   : > { %v950_v7 = vmul.f32 %v2821_v62, %v938_v1  ;;  %v937_v8 = vmin.f32 %v933_v3, 1.0  ;;  %vm981_vm15 = vmor %vm973_vm13, %vm977_vm14  ;;  %v927_v10 = vmul.f32 0.1, %v916_v0 }
 0x2f5   : > { %v3848_v11 = vmul.f32 %v994_v4, %v930_v56  ;;  %v2824_v12 = vsel %vm981_vm15, 1.0, %v3444_v60  ;;  %v936_v13 = vmax.f32 %v932_v6, 0.0  ;;  %vm976_vm1 = vcmp.ge.f32.partialorder %v932_v6, 1.0 }
 0x2f6   : > { %v954_v14 = vsub.f32 %v950_v7, %v3765_v30  ;;  %v966_v15 = vsub.f32 %v950_v7, %v3756_v21  ;;  %v949_v16 = vmul.f32 %v2820_v5, %v937_v8  ;;  %v993_v17 = vsub.f32 1.0, %v2824_v12  ;;  %2828 = vst [vmem:[%s3575_s29 + $0x100] sm:$0xff] %v2824_v12 }
 0x2f7   : > { %2833 = vst [vmem:[%s3575_s29 + $0x128] sm:$0xff] %v3848_v11  ;;  %v940_v19 = vmin.f32 %v936_v13, 1.0  ;;  %vm980_vm2 = vcmp.le.f32.partialorder %v932_v6, -1.0  ;;  %v931_v20 = vadd.f32 %v927_v10, %v3809_v46  ;;  %v2822_v22 = vclamps-f32 %v927_v10, 1.0 }
 0x2f8   : > { %v958_v23 = vmul.f32 0.1, %v954_v14  ;;  %v3858_v24 = vadd.f32 %v966_v15, %v3756_v21  ;;  %v953_v26 = vsub.f32 %v949_v16, %v3780_v25  ;;  %v965_v28 = vsub.f32 %v949_v16, %v3770_v31  ;;  %vm984_vm3 = vmor %vm976_vm1, %vm980_vm2 }
 0x2f9   : > { %v3863_v29 = vmul.f32 %v993_v17, %v929_v61  ;;  %v952_v18 = vmul.f32 %v2823_v9, %v940_v19  ;;  %v2827_v36 = vsel %vm984_vm3, 1.0, %v3444_v60  ;;  %v935_v39 = vmax.f32 %v931_v20, 0.0 }
 0x2fa   : > { %v3867_v45 = vadd.f32 %v958_v23, %v3765_v30  ;;  %2841 = vst [vmem:[%s3575_s29 + $0x168] sm:$0xff] %v3858_v24  ;;  %v957_v21 = vmul.f32 0.1, %v953_v26  ;;  %v3872_v40 = vadd.f32 %v965_v28, %v3770_v31  ;;  %v996_v27 = vsub.f32 1.0, %v2827_v36  ;;  %2831 = vst [vmem:[%s3575_s29 + $0x118] sm:$0xff] %v2827_v36 }
 0x2fb   : > { %2832 = vst [vmem:[%s3575_s29 + $0x120] sm:$0xff] %v3863_v29  ;;  %v956_v47 = vsub.f32 %v952_v18, %v3795_v49  ;;  %v968_v48 = vsub.f32 %v952_v18, %v3787_v32  ;;  %v939_v34 = vmin.f32 %v935_v39, 1.0  ;;  %vm975_vm4 = vcmp.ge.f32.partialorder %v931_v20, 1.0 }
 0x2fc   : > { %2837 = vst [vmem:[%s3575_s29 + $0x148] sm:$0xff] %v3867_v45  ;;  %v3882_v30 = vadd.f32 %v957_v21, %v3780_v25  ;;  %2840 = vst [vmem:[%s3575_s29 + $0x160] sm:$0xff] %v3872_v40  ;;  %v3886_v31 = vmul.f32 %v996_v27, %v932_v6  ;;  %vm979_vm5 = vcmp.le.f32.partialorder %v931_v20, -1.0 }
 0x2fd   : > { %v960_v37 = vmul.f32 0.1, %v956_v47  ;;  %v3889_v41 = vadd.f32 %v968_v48, %v3787_v32  ;;  %v951_v33 = vmul.f32 %v2822_v22, %v939_v34  ;;  %vm983_vm6 = vmor %vm975_vm4, %vm979_vm5 }
 0x2fe   : > { %2836 = vst [vmem:[%s3575_s29 + $0x140] sm:$0xff] %v3882_v30  ;;  %2835 = vst [vmem:[%s3575_s29 + $0x138] sm:$0xff] %v3886_v31  ;;  %v2826_v25 = vsel %vm983_vm6, 1.0, %v3444_v60 }
 0x2ff   : > { %v3897_v38 = vadd.f32 %v960_v37, %v3795_v49  ;;  %2843 = vst [vmem:[%s3575_s29 + $0x178] sm:$0xff] %v3889_v41  ;;  %v955_v46 = vsub.f32 %v951_v33, %v3812_v53  ;;  %v967_v32 = vsub.f32 %v951_v33, %v3807_v52  ;;  %v995_v50 = vsub.f32 1.0, %v2826_v25  ;;  %2830 = vst [vmem:[%s3575_s29 + $0x110] sm:$0xff] %v2826_v25 }
 0x300   : > { %3173 = vmatprep.subr.mxu1 %v3889_v41 }
 0x301   : > { %3174 = vmatpush3.msra.mxu1 %v3889_v41  ;;  %2839 = vst [vmem:[%s3575_s29 + $0x158] sm:$0xff] %v3897_v38  ;;  %v959_v51 = vmul.f32 0.1, %v955_v46  ;;  %v3909_v54 = vadd.f32 %v967_v32, %v3807_v52  ;;  %v3911_v49 = vmul.f32 %v995_v50, %v931_v20  ;;  %v2844_v52 = vld [vmem:[%s3573_s24 + $0x18] sm:$0xff] }
 0x303   : > { %v3914_v55 = vadd.f32 %v959_v51, %v3812_v53  ;;  %2834 = vst [vmem:[%s3575_s29 + $0x130] sm:$0xff] %v3911_v49  ;;  %2842 = vst [vmem:[%s3575_s29 + $0x170] sm:$0xff] %v3909_v54  ;;  %3175 = vmatprep.subr.mxu1 %v3909_v54 }
 0x304   : > { %3176 = vmatpush3.msra.mxu1 %v3909_v54 }
 0x305   : > { %2838 = vst [vmem:[%s3575_s29 + $0x150] sm:$0xff] %v3914_v55  ;;  %3177 = vmatprep.subr.mxu1 %v3858_v24 }
 0x306   : > { %3178 = vmatpush3.msra.mxu1 %v3858_v24 }
 0x307   : > { %3179 = vmatprep.subr.mxu1 %v3872_v40 }
 0x308   : > { %3180 = vmatpush3.msra.mxu1 %v3872_v40 }
 0x309   : > { %3181 = vmatprep.subr.mxu1 %v3897_v38 }
 0x30a   : > { %3182 = vmatpush3.msra.mxu1 %v3897_v38 }
 0x30b   : > { %3183 = vmatprep.subr.mxu1 %v3914_v55 }
 0x30c   : > { %3184 = vmatpush3.msra.mxu1 %v3914_v55 }
 0x30d   : > { %3185 = vmatprep.subr.mxu1 %v3867_v45 }
 0x30e   : > { %3186 = vmatpush3.msra.mxu1 %v3867_v45 }
 0x30f   : > { %3187 = vmatprep.subr.mxu1 %v3882_v30 }
 0x310   : > { %3188 = vmatpush3.msra.mxu1 %v3882_v30 }
 0x311   : > { %3189 = vmatprep.subr.mxu1 %v2844_v52 }
 0x312   : > { %3190 = vmatpush3.msra.mxu1 %v2844_v52 }
 0x313   : > { %3192 = vmatmul.mubr.msk.f32.vlgmr.msra.gmra.mxu1 %vm401_vm0, %v3623_v42 }
 0x314   : > { %3194 = vmatprep.mubr.msk.f32.mxu1 %vm401_vm0, %v3628_v43 }
 0x317   : > { %3195 = vmatmul.mubr.msk.f32.gmra.mxu1 %vm401_vm0, %v3637_v44 }
 0x318   : > { %3239 = vmatprep.mubr.msk.f32.mxu1 %vm401_vm0, %v3590_v35 }
 0x3d3   : > { %v3193_v53 = vpop.f32.mrf.mxu1 }
 0x3d4   : > { %v1139_v56 = vmul.f32 0.1, %v3193_v53 }
 0x3d5   : > { %v1119_v57 = vpop.f32.mrf.mxu1 }
 0x3d6   : > { %v1143_v58 = vadd.f32 %v1139_v56, %v3848_v11  ;;  %v1138_v59 = vmul.f32 0.1, %v1119_v57  ;;  %v2850_v0 = vclamps-f32 %v1139_v56, 1.0 }
 0x3d7   : > { %v3196_v61 = vpop.f32.mrf.mxu1 }
 0x3d8   : > { %v1147_v62 = vmax.f32 %v1143_v58, 0.0  ;;  %vm1187_vm7 = vcmp.ge.f32.partialorder %v1143_v58, 1.0  ;;  %vm1191_vm8 = vcmp.le.f32.partialorder %v1143_v58, -1.0  ;;  %v1142_v63 = vadd.f32 %v1138_v59, %v3863_v29 }
 0x3d9   : > { %vm1195_vm9 = vmor %vm1187_vm7, %vm1191_vm8  ;;  %v1141_v1 = vmul.f32 0.1, %v3196_v61  ;;  %v1129_v2 = vpop.f32.mrf.mxu1  ;;  %v2849_v7 = vclamps-f32 %v1138_v59, 1.0 }
 0x3da   : > { %v1151_v3 = vmin.f32 %v1147_v62, 1.0  ;;  %v2854_v4 = vsel %vm1195_vm9, 1.0, %v3444_v60  ;;  %v1146_v5 = vmax.f32 %v1142_v63, 0.0  ;;  %vm1186_vm10 = vcmp.ge.f32.partialorder %v1142_v63, 1.0 }
 0x3db   : > { %v1207_v6 = vsub.f32 1.0, %v2854_v4  ;;  %2858 = vst [vmem:[%s3575_s29 + $0x188] sm:$0xff] %v2854_v4  ;;  %vm1190_vm11 = vcmp.le.f32.partialorder %v1142_v63, -1.0  ;;  %v1145_v8 = vadd.f32 %v1141_v1, %v3886_v31  ;;  %v2852_v11 = vclamps-f32 %v1141_v1, 1.0 }
 0x3dc   : > { %v1163_v9 = vmul.f32 %v2850_v0, %v1151_v3  ;;  %v1150_v10 = vmin.f32 %v1146_v5, 1.0  ;;  %vm1194_vm12 = vmor %vm1186_vm10, %vm1190_vm11  ;;  %v1140_v12 = vmul.f32 0.1, %v1129_v2 }
 0x3dd   : > { %v3950_v13 = vmul.f32 %v1207_v6, %v1143_v58  ;;  %v2853_v14 = vsel %vm1194_vm12, 1.0, %v3444_v60  ;;  %v1149_v15 = vmax.f32 %v1145_v8, 0.0  ;;  %vm1189_vm13 = vcmp.ge.f32.partialorder %v1145_v8, 1.0 }
 0x3de   : > { %v1167_v16 = vsub.f32 %v1163_v9, %v3867_v45  ;;  %v1179_v17 = vsub.f32 %v1163_v9, %v3858_v24  ;;  %v1162_v19 = vmul.f32 %v2849_v7, %v1150_v10  ;;  %v1206_v20 = vsub.f32 1.0, %v2853_v14  ;;  %2857 = vst [vmem:[%s3575_s29 + $0x180] sm:$0xff] %v2853_v14 }
 0x3df   : > { %2862 = vst [vmem:[%s3575_s29 + $0x1a8] sm:$0xff] %v3950_v13  ;;  %v1153_v22 = vmin.f32 %v1149_v15, 1.0  ;;  %vm1193_vm14 = vcmp.le.f32.partialorder %v1145_v8, -1.0  ;;  %v1144_v23 = vadd.f32 %v1140_v12, %v3911_v49  ;;  %v2851_v26 = vclamps-f32 %v1140_v12, 1.0 }
 0x3e0   : > { %v1171_v28 = vmul.f32 0.1, %v1167_v16  ;;  %v3960_v29 = vadd.f32 %v1179_v17, %v3858_v24  ;;  %v1166_v18 = vsub.f32 %v1162_v19, %v3882_v30  ;;  %v1178_v36 = vsub.f32 %v1162_v19, %v3872_v40  ;;  %vm1197_vm15 = vmor %vm1189_vm13, %vm1193_vm14 }
 0x3e1   : > { %v3965_v39 = vmul.f32 %v1206_v20, %v1142_v63  ;;  %v1165_v21 = vmul.f32 %v2852_v11, %v1153_v22  ;;  %v2856_v27 = vsel %vm1197_vm15, 1.0, %v3444_v60  ;;  %v1148_v47 = vmax.f32 %v1144_v23, 0.0 }
 0x3e2   : > { %v3969_v48 = vadd.f32 %v1171_v28, %v3867_v45  ;;  %2870 = vst [vmem:[%s3575_s29 + $0x1e8] sm:$0xff] %v3960_v29  ;;  %v1170_v24 = vmul.f32 0.1, %v1166_v18  ;;  %v3974_v34 = vadd.f32 %v1178_v36, %v3872_v40  ;;  %v1209_v31 = vsub.f32 1.0, %v2856_v27  ;;  %2860 = vst [vmem:[%s3575_s29 + $0x198] sm:$0xff] %v2856_v27 }
 0x3e3   : > { %2861 = vst [vmem:[%s3575_s29 + $0x1a0] sm:$0xff] %v3965_v39  ;;  %v1169_v37 = vsub.f32 %v1165_v21, %v3897_v38  ;;  %v1181_v33 = vsub.f32 %v1165_v21, %v3889_v41  ;;  %v1152_v25 = vmin.f32 %v1148_v47, 1.0  ;;  %vm1188_vm1 = vcmp.ge.f32.partialorder %v1144_v23, 1.0 }
 0x3e4   : > { %2866 = vst [vmem:[%s3575_s29 + $0x1c8] sm:$0xff] %v3969_v48  ;;  %v3984_v45 = vadd.f32 %v1170_v24, %v3882_v30  ;;  %2869 = vst [vmem:[%s3575_s29 + $0x1e0] sm:$0xff] %v3974_v34  ;;  %v3988_v40 = vmul.f32 %v1209_v31, %v1145_v8  ;;  %vm1192_vm2 = vcmp.le.f32.partialorder %v1144_v23, -1.0 }
 0x3e5   : > { %v1173_v46 = vmul.f32 0.1, %v1169_v37  ;;  %v3991_v32 = vadd.f32 %v1181_v33, %v3889_v41  ;;  %v1164_v50 = vmul.f32 %v2851_v26, %v1152_v25  ;;  %vm1196_vm3 = vmor %vm1188_vm1, %vm1192_vm2 }
 0x3e6   : > { %2865 = vst [vmem:[%s3575_s29 + $0x1c0] sm:$0xff] %v3984_v45  ;;  %2864 = vst [vmem:[%s3575_s29 + $0x1b8] sm:$0xff] %v3988_v40  ;;  %v2855_v30 = vsel %vm1196_vm3, 1.0, %v3444_v60 }
 0x3e7   : > { %v3999_v51 = vadd.f32 %v1173_v46, %v3897_v38  ;;  %2872 = vst [vmem:[%s3575_s29 + $0x1f8] sm:$0xff] %v3991_v32  ;;  %v1168_v49 = vsub.f32 %v1164_v50, %v3914_v55  ;;  %v1180_v41 = vsub.f32 %v1164_v50, %v3909_v54  ;;  %v1208_v52 = vsub.f32 1.0, %v2855_v30  ;;  %2859 = vst [vmem:[%s3575_s29 + $0x190] sm:$0xff] %v2855_v30 }
 0x3e8   : > { %3197 = vmatprep.subr.mxu0 %v3991_v32 }
 0x3e9   : > { %3198 = vmatpush3.msra.mxu0 %v3991_v32  ;;  %2868 = vst [vmem:[%s3575_s29 + $0x1d8] sm:$0xff] %v3999_v51  ;;  %v1172_v53 = vmul.f32 0.1, %v1168_v49  ;;  %v4011_v56 = vadd.f32 %v1180_v41, %v3909_v54  ;;  %v4013_v38 = vmul.f32 %v1208_v52, %v1144_v23  ;;  %v2873_v54 = vld [vmem:[%s3573_s24 + $0x20] sm:$0xff] }
 0x3eb   : > { %v4016_v57 = vadd.f32 %v1172_v53, %v3914_v55  ;;  %2863 = vst [vmem:[%s3575_s29 + $0x1b0] sm:$0xff] %v4013_v38  ;;  %2871 = vst [vmem:[%s3575_s29 + $0x1f0] sm:$0xff] %v4011_v56  ;;  %3199 = vmatprep.subr.mxu0 %v4011_v56 }
 0x3ec   : > { %3200 = vmatpush3.msra.mxu0 %v4011_v56 }
 0x3ed   : > { %2867 = vst [vmem:[%s3575_s29 + $0x1d0] sm:$0xff] %v4016_v57  ;;  %3201 = vmatprep.subr.mxu0 %v3960_v29 }
 0x3ee   : > { %3202 = vmatpush3.msra.mxu0 %v3960_v29 }
 0x3ef   : > { %3203 = vmatprep.subr.mxu0 %v3974_v34 }
 0x3f0   : > { %3204 = vmatpush3.msra.mxu0 %v3974_v34 }
 0x3f1   : > { %3205 = vmatprep.subr.mxu0 %v3999_v51 }
 0x3f2   : > { %3206 = vmatpush3.msra.mxu0 %v3999_v51 }
 0x3f3   : > { %3207 = vmatprep.subr.mxu0 %v4016_v57 }
 0x3f4   : > { %3208 = vmatpush3.msra.mxu0 %v4016_v57 }
 0x3f5   : > { %3209 = vmatprep.subr.mxu0 %v3969_v48 }
 0x3f6   : > { %3210 = vmatpush3.msra.mxu0 %v3969_v48 }
 0x3f7   : > { %3211 = vmatprep.subr.mxu0 %v3984_v45 }
 0x3f8   : > { %3212 = vmatpush3.msra.mxu0 %v3984_v45 }
 0x3f9   : > { %3213 = vmatprep.subr.mxu0 %v2873_v54 }
 0x3fa   : > { %3214 = vmatpush3.msra.mxu0 %v2873_v54  ;;  %v4151_v54 = vld [vmem:[%s4704_s1 + $0x10] sm:$0xff] }
 0x3fb   : > { %3216 = vmatmul.mubr.msk.f32.vlgmr.msra.gmra.mxu0 %vm401_vm0, %v3623_v42 }
 0x3fc   : > { %3218 = vmatprep.mubr.msk.f32.mxu0 %vm401_vm0, %v3628_v43 }
 0x3ff   : > { %3219 = vmatmul.mubr.msk.f32.gmra.mxu0 %vm401_vm0, %v3637_v44 }
 0x400   : > { %3263 = vmatprep.mubr.msk.f32.mxu0 %vm401_vm0, %v3590_v35 }
 0x4bb   : > { %v3217_v55 = vpop.f32.mrf.mxu0 }
 0x4bc   : > { %v1352_v58 = vmul.f32 0.1, %v3217_v55  ;;  %v4158_v55 = vld [vmem:[%s4704_s1 + $0x18] sm:$0xff] }
 0x4bd   : > { %v1332_v59 = vpop.f32.mrf.mxu0 }
 0x4be   : > { %v1356_v61 = vadd.f32 %v1352_v58, %v3950_v13  ;;  %v1351_v62 = vmul.f32 0.1, %v1332_v59  ;;  %v2879_v43 = vclamps-f32 %v1352_v58, 1.0  ;;  %v3371_v58 = vld [vmem:[%s4704_s1] sm:$0xff] }
 0x4bf   : > { %v3220_v63 = vpop.f32.mrf.mxu0  ;;  %v4167_v59 = vld [vmem:[%s3573_s24 + $0x38] sm:$0xff] }
 0x4c0   : > { %v1360_v0 = vmax.f32 %v1356_v61, 0.0  ;;  %vm1400_vm4 = vcmp.ge.f32.partialorder %v1356_v61, 1.0  ;;  %vm1404_vm5 = vcmp.le.f32.partialorder %v1356_v61, -1.0  ;;  %v1355_v42 = vadd.f32 %v1351_v62, %v3965_v39 }
 0x4c1   : > { %vm1408_vm6 = vmor %vm1400_vm4, %vm1404_vm5  ;;  %v1354_v1 = vmul.f32 0.1, %v3220_v63  ;;  %v1342_v44 = vpop.f32.mrf.mxu0  ;;  %v2878_v5 = vclamps-f32 %v1351_v62, 1.0 }
 0x4c2   : > { %v1364_v2 = vmin.f32 %v1360_v0, 1.0  ;;  %v2883_v35 = vsel %vm1408_vm6, 1.0, %v3444_v60  ;;  %v1359_v3 = vmax.f32 %v1355_v42, 0.0  ;;  %vm1399_vm7 = vcmp.ge.f32.partialorder %v1355_v42, 1.0 }
 0x4c3   : > { %v1420_v4 = vsub.f32 1.0, %v2883_v35  ;;  %2887 = vst [vmem:[%s3575_s29 + $0x208] sm:$0xff] %v2883_v35  ;;  %vm1403_vm8 = vcmp.le.f32.partialorder %v1355_v42, -1.0  ;;  %v1358_v6 = vadd.f32 %v1354_v1, %v3988_v40  ;;  %v2881_v9 = vclamps-f32 %v1354_v1, 1.0 }
 0x4c4   : > { %v1376_v7 = vmul.f32 %v2879_v43, %v1364_v2  ;;  %v1363_v8 = vmin.f32 %v1359_v3, 1.0  ;;  %vm1407_vm9 = vmor %vm1399_vm7, %vm1403_vm8  ;;  %v1353_v10 = vmul.f32 0.1, %v1342_v44 }
 0x4c5   : > { %v4052_v11 = vmul.f32 %v1420_v4, %v1356_v61  ;;  %v2882_v12 = vsel %vm1407_vm9, 1.0, %v3444_v60  ;;  %v1362_v13 = vmax.f32 %v1358_v6, 0.0  ;;  %vm1402_vm10 = vcmp.ge.f32.partialorder %v1358_v6, 1.0 }
 0x4c6   : > { %v1380_v14 = vsub.f32 %v1376_v7, %v3969_v48  ;;  %v1392_v15 = vsub.f32 %v1376_v7, %v3960_v29  ;;  %v1375_v16 = vmul.f32 %v2878_v5, %v1363_v8  ;;  %v1419_v17 = vsub.f32 1.0, %v2882_v12  ;;  %2886 = vst [vmem:[%s3575_s29 + $0x200] sm:$0xff] %v2882_v12 }
 0x4c7   : > { %2891 = vst [vmem:[%s3575_s29 + $0x228] sm:$0xff] %v4052_v11  ;;  %v1366_v19 = vmin.f32 %v1362_v13, 1.0  ;;  %vm1406_vm11 = vcmp.le.f32.partialorder %v1358_v6, -1.0  ;;  %v1357_v20 = vadd.f32 %v1353_v10, %v4013_v38  ;;  %v2880_v22 = vclamps-f32 %v1353_v10, 1.0 }
 0x4c8   : > { %v1384_v23 = vmul.f32 0.1, %v1380_v14  ;;  %v4062_v26 = vadd.f32 %v1392_v15, %v3960_v29  ;;  %v1379_v28 = vsub.f32 %v1375_v16, %v3984_v45  ;;  %v1391_v18 = vsub.f32 %v1375_v16, %v3974_v34  ;;  %vm1410_vm12 = vmor %vm1402_vm10, %vm1406_vm11 }
 0x4c9   : > { %v4067_v36 = vmul.f32 %v1419_v17, %v1355_v42  ;;  %v1378_v39 = vmul.f32 %v2881_v9, %v1366_v19  ;;  %v2885_v21 = vsel %vm1410_vm12, 1.0, %v3444_v60  ;;  %v1361_v27 = vmax.f32 %v1357_v20, 0.0 }
 0x4ca   : > { %v4071_v47 = vadd.f32 %v1384_v23, %v3969_v48  ;;  %2899 = vst [vmem:[%s3575_s29 + $0x268] sm:$0xff] %v4062_v26  ;;  %v1383_v29 = vmul.f32 0.1, %v1379_v28  ;;  %v4076_v24 = vadd.f32 %v1391_v18, %v3974_v34  ;;  %v1422_v31 = vsub.f32 1.0, %v2885_v21  ;;  %2889 = vst [vmem:[%s3575_s29 + $0x218] sm:$0xff] %v2885_v21 }
 0x4cb   : > { %2890 = vst [vmem:[%s3575_s29 + $0x220] sm:$0xff] %v4067_v36  ;;  %v1382_v37 = vsub.f32 %v1378_v39, %v3999_v51  ;;  %v1394_v33 = vsub.f32 %v1378_v39, %v3991_v32  ;;  %v1365_v25 = vmin.f32 %v1361_v27, 1.0  ;;  %vm1401_vm13 = vcmp.ge.f32.partialorder %v1357_v20, 1.0 }
 0x4cc   : > { %2895 = vst [vmem:[%s3575_s29 + $0x248] sm:$0xff] %v4071_v47  ;;  %v4086_v48 = vadd.f32 %v1383_v29, %v3984_v45  ;;  %2898 = vst [vmem:[%s3575_s29 + $0x260] sm:$0xff] %v4076_v24  ;;  %v4090_v34 = vmul.f32 %v1422_v31, %v1358_v6  ;;  %vm1405_vm14 = vcmp.le.f32.partialorder %v1357_v20, -1.0 }
 0x4cd   : > { %v1386_v40 = vmul.f32 0.1, %v1382_v37  ;;  %v4093_v46 = vadd.f32 %v1394_v33, %v3991_v32  ;;  %v1377_v50 = vmul.f32 %v2880_v22, %v1365_v25  ;;  %vm1409_vm15 = vmor %vm1401_vm13, %vm1405_vm14 }
 0x4ce   : > { %2894 = vst [vmem:[%s3575_s29 + $0x240] sm:$0xff] %v4086_v48  ;;  %2893 = vst [vmem:[%s3575_s29 + $0x238] sm:$0xff] %v4090_v34  ;;  %v2884_v45 = vsel %vm1409_vm15, 1.0, %v3444_v60 }
 0x4cf   : > { %v4101_v30 = vadd.f32 %v1386_v40, %v3999_v51  ;;  %2901 = vst [vmem:[%s3575_s29 + $0x278] sm:$0xff] %v4093_v46  ;;  %v1381_v49 = vsub.f32 %v1377_v50, %v4016_v57  ;;  %v1393_v32 = vsub.f32 %v1377_v50, %v4011_v56  ;;  %v1421_v41 = vsub.f32 1.0, %v2884_v45  ;;  %2888 = vst [vmem:[%s3575_s29 + $0x210] sm:$0xff] %v2884_v45 }
 0x4d0   : > { %3221 = vmatprep.subr.mxu1 %v4093_v46 }
 0x4d1   : > { %3222 = vmatpush3.msra.mxu1 %v4093_v46  ;;  %2897 = vst [vmem:[%s3575_s29 + $0x258] sm:$0xff] %v4101_v30  ;;  %v1385_v52 = vmul.f32 0.1, %v1381_v49  ;;  %v4113_v53 = vadd.f32 %v1393_v32, %v4011_v56  ;;  %v4115_v51 = vmul.f32 %v1421_v41, %v1357_v20  ;;  %v2902_v56 = vld [vmem:[%s3573_s24 + $0x28] sm:$0xff] }
 0x4d3   : > { %v4118_v38 = vadd.f32 %v1385_v52, %v4016_v57  ;;  %2892 = vst [vmem:[%s3575_s29 + $0x230] sm:$0xff] %v4115_v51  ;;  %2900 = vst [vmem:[%s3575_s29 + $0x270] sm:$0xff] %v4113_v53  ;;  %3223 = vmatprep.subr.mxu1 %v4113_v53  ;;  %v4144_v57 = vld [vmem:[%s4704_s1 + $0x8] sm:$0xff] }
 0x4d4   : > { %3224 = vmatpush3.msra.mxu1 %v4113_v53 }
 0x4d5   : > { %2896 = vst [vmem:[%s3575_s29 + $0x250] sm:$0xff] %v4118_v38  ;;  %3225 = vmatprep.subr.mxu1 %v4062_v26 }
 0x4d6   : > { %3226 = vmatpush3.msra.mxu1 %v4062_v26 }
 0x4d7   : > { %3227 = vmatprep.subr.mxu1 %v4076_v24 }
 0x4d8   : > { %3228 = vmatpush3.msra.mxu1 %v4076_v24 }
 0x4d9   : > { %3229 = vmatprep.subr.mxu1 %v4101_v30 }
 0x4da   : > { %3230 = vmatpush3.msra.mxu1 %v4101_v30 }
 0x4db   : > { %3231 = vmatprep.subr.mxu1 %v4118_v38 }
 0x4dc   : > { %3232 = vmatpush3.msra.mxu1 %v4118_v38 }
 0x4dd   : > { %3233 = vmatprep.subr.mxu1 %v4071_v47 }
 0x4de   : > { %3234 = vmatpush3.msra.mxu1 %v4071_v47 }
 0x4df   : > { %3235 = vmatprep.subr.mxu1 %v4086_v48 }
 0x4e0   : > { %3236 = vmatpush3.msra.mxu1 %v4086_v48 }
 0x4e1   : > { %3237 = vmatprep.subr.mxu1 %v2902_v56 }
 0x4e2   : > { %3238 = vmatpush3.msra.mxu1 %v2902_v56 }
 0x4e3   : > { %3240 = vmatmul.mubr.msk.f32.vlgmr.msra.gmra.mxu1 %vm401_vm0, %v4144_v57 }
 0x4e4   : > { %3242 = vmatprep.mubr.msk.f32.mxu1 %vm401_vm0, %v4151_v54 }
 0x4e7   : > { %3243 = vmatmul.mubr.msk.f32.gmra.mxu1 %vm401_vm0, %v4158_v55 }
 0x4e8   : > { %3287 = vmatprep.mubr.msk.f32.mxu1 %vm401_vm0, %v3371_v58 }
 0x5a3   : > { %v3241_v61 = vpop.f32.mrf.mxu1 }
 0x5a4   : > { %v1565_v62 = vmul.f32 0.1, %v3241_v61 }
 0x5a5   : > { %v1545_v63 = vpop.f32.mrf.mxu1 }
 0x5a6   : > { %v1569_v0 = vadd.f32 %v1565_v62, %v4052_v11  ;;  %v1564_v42 = vmul.f32 0.1, %v1545_v63  ;;  %v2908_v2 = vclamps-f32 %v1565_v62, 1.0 }
 0x5a7   : > { %v3244_v43 = vpop.f32.mrf.mxu1 }
 0x5a8   : > { %v1573_v1 = vmax.f32 %v1569_v0, 0.0  ;;  %vm1613_vm1 = vcmp.ge.f32.partialorder %v1569_v0, 1.0  ;;  %vm1617_vm2 = vcmp.le.f32.partialorder %v1569_v0, -1.0  ;;  %v1568_v44 = vadd.f32 %v1564_v42, %v4067_v36 }
 0x5a9   : > { %vm1621_vm3 = vmor %vm1613_vm1, %vm1617_vm2  ;;  %v1567_v35 = vmul.f32 0.1, %v3244_v43  ;;  %v1555_v3 = vpop.f32.mrf.mxu1  ;;  %v2907_v8 = vclamps-f32 %v1564_v42, 1.0 }
 0x5aa   : > { %v1577_v4 = vmin.f32 %v1573_v1, 1.0  ;;  %v2912_v5 = vsel %vm1621_vm3, 1.0, %v3444_v60  ;;  %v1572_v6 = vmax.f32 %v1568_v44, 0.0  ;;  %vm1612_vm4 = vcmp.ge.f32.partialorder %v1568_v44, 1.0 }
 0x5ab   : > { %v1633_v7 = vsub.f32 1.0, %v2912_v5  ;;  %2916 = vst [vmem:[%s3575_s29 + $0x288] sm:$0xff] %v2912_v5  ;;  %vm1616_vm5 = vcmp.le.f32.partialorder %v1568_v44, -1.0  ;;  %v1571_v9 = vadd.f32 %v1567_v35, %v4090_v34  ;;  %v2910_v12 = vclamps-f32 %v1567_v35, 1.0 }
 0x5ac   : > { %v1589_v10 = vmul.f32 %v2908_v2, %v1577_v4  ;;  %v1576_v11 = vmin.f32 %v1572_v6, 1.0  ;;  %vm1620_vm6 = vmor %vm1612_vm4, %vm1616_vm5  ;;  %v1566_v13 = vmul.f32 0.1, %v1555_v3 }
 0x5ad   : > { %v4174_v14 = vmul.f32 %v1633_v7, %v1569_v0  ;;  %v2911_v15 = vsel %vm1620_vm6, 1.0, %v3444_v60  ;;  %v1575_v16 = vmax.f32 %v1571_v9, 0.0  ;;  %vm1615_vm7 = vcmp.ge.f32.partialorder %v1571_v9, 1.0 }
 0x5ae   : > { %v1593_v17 = vsub.f32 %v1589_v10, %v4071_v47  ;;  %v1605_v19 = vsub.f32 %v1589_v10, %v4062_v26  ;;  %v1588_v20 = vmul.f32 %v2907_v8, %v1576_v11  ;;  %v1632_v22 = vsub.f32 1.0, %v2911_v15  ;;  %2915 = vst [vmem:[%s3575_s29 + $0x280] sm:$0xff] %v2911_v15 }
 0x5af   : > { %2920 = vst [vmem:[%s3575_s29 + $0x2a8] sm:$0xff] %v4174_v14  ;;  %v1579_v23 = vmin.f32 %v1575_v16, 1.0  ;;  %vm1619_vm8 = vcmp.le.f32.partialorder %v1571_v9, -1.0  ;;  %v1570_v28 = vadd.f32 %v1566_v13, %v4115_v51  ;;  %v2909_v18 = vclamps-f32 %v1566_v13, 1.0 }
 0x5b0   : > { %v1597_v36 = vmul.f32 0.1, %v1593_v17  ;;  %v4184_v39 = vadd.f32 %v1605_v19, %v4062_v26  ;;  %v1592_v21 = vsub.f32 %v1588_v20, %v4086_v48  ;;  %v1604_v27 = vsub.f32 %v1588_v20, %v4076_v24  ;;  %vm1623_vm9 = vmor %vm1615_vm7, %vm1619_vm8 }
 0x5b1   : > { %v4189_v29 = vmul.f32 %v1632_v22, %v1568_v44  ;;  %v1591_v31 = vmul.f32 %v2910_v12, %v1579_v23  ;;  %v2914_v37 = vsel %vm1623_vm9, 1.0, %v3444_v60  ;;  %v1574_v33 = vmax.f32 %v1570_v28, 0.0 }
 0x5b2   : > { %v4193_v25 = vadd.f32 %v1597_v36, %v4071_v47  ;;  %2928 = vst [vmem:[%s3575_s29 + $0x2e8] sm:$0xff] %v4184_v39  ;;  %v1596_v26 = vmul.f32 0.1, %v1592_v21  ;;  %v4198_v34 = vadd.f32 %v1604_v27, %v4076_v24  ;;  %v1635_v40 = vsub.f32 1.0, %v2914_v37  ;;  %2918 = vst [vmem:[%s3575_s29 + $0x298] sm:$0xff] %v2914_v37 }
 0x5b3   : > { %2919 = vst [vmem:[%s3575_s29 + $0x2a0] sm:$0xff] %v4189_v29  ;;  %v1595_v50 = vsub.f32 %v1591_v31, %v4101_v30  ;;  %v1607_v45 = vsub.f32 %v1591_v31, %v4093_v46  ;;  %v1578_v49 = vmin.f32 %v1574_v33, 1.0  ;;  %vm1614_vm10 = vcmp.ge.f32.partialorder %v1570_v28, 1.0 }
 0x5b4   : > { %2924 = vst [vmem:[%s3575_s29 + $0x2c8] sm:$0xff] %v4193_v25  ;;  %v4208_v47 = vadd.f32 %v1596_v26, %v4086_v48  ;;  %2927 = vst [vmem:[%s3575_s29 + $0x2e0] sm:$0xff] %v4198_v34  ;;  %v4212_v24 = vmul.f32 %v1635_v40, %v1571_v9  ;;  %vm1618_vm11 = vcmp.le.f32.partialorder %v1570_v28, -1.0 }
 0x5b5   : > { %v1599_v32 = vmul.f32 0.1, %v1595_v50  ;;  %v4215_v41 = vadd.f32 %v1607_v45, %v4093_v46  ;;  %v1590_v52 = vmul.f32 %v2909_v18, %v1578_v49  ;;  %vm1622_vm12 = vmor %vm1614_vm10, %vm1618_vm11 }
 0x5b6   : > { %2923 = vst [vmem:[%s3575_s29 + $0x2c0] sm:$0xff] %v4208_v47  ;;  %2922 = vst [vmem:[%s3575_s29 + $0x2b8] sm:$0xff] %v4212_v24  ;;  %v2913_v48 = vsel %vm1622_vm12, 1.0, %v3444_v60 }
 0x5b7   : > { %v4223_v51 = vadd.f32 %v1599_v32, %v4101_v30  ;;  %2930 = vst [vmem:[%s3575_s29 + $0x2f8] sm:$0xff] %v4215_v41  ;;  %v1594_v56 = vsub.f32 %v1590_v52, %v4118_v38  ;;  %v1606_v46 = vsub.f32 %v1590_v52, %v4113_v53  ;;  %v1634_v58 = vsub.f32 1.0, %v2913_v48  ;;  %2917 = vst [vmem:[%s3575_s29 + $0x290] sm:$0xff] %v2913_v48 }
 0x5b8   : > { %3245 = vmatprep.subr.mxu0 %v4215_v41 }
 0x5b9   : > { %3246 = vmatpush3.msra.mxu0 %v4215_v41  ;;  %2926 = vst [vmem:[%s3575_s29 + $0x2d8] sm:$0xff] %v4223_v51  ;;  %v1598_v61 = vmul.f32 0.1, %v1594_v56  ;;  %v4235_v62 = vadd.f32 %v1606_v46, %v4113_v53  ;;  %v4237_v30 = vmul.f32 %v1634_v58, %v1570_v28  ;;  %v2931_v53 = vld [vmem:[%s3573_s24 + $0x30] sm:$0xff]  ;;  %s2996_s24 = sshll.u32 (%p3543_p10), %s3426_s16, 8 }
 0x5ba   : > { %s2107_s4 = sadd.s32 (%p3543_p10), %s3430_s17, %s2996_s24 }
 0x5bb   : > { %v4240_v63 = vadd.f32 %v1598_v61, %v4118_v38  ;;  %2921 = vst [vmem:[%s3575_s29 + $0x2b0] sm:$0xff] %v4237_v30  ;;  %2929 = vst [vmem:[%s3575_s29 + $0x2f0] sm:$0xff] %v4235_v62  ;;  %3247 = vmatprep.subr.mxu0 %v4235_v62  ;;  %s2992_s7 = sshll.u32 (%p3543_p10), %s2107_s4, 3 }
 0x5bc   : > { %3248 = vmatpush3.msra.mxu0 %v4235_v62  ;;  %s4427_s10 = scalar_lea.vmem (%p3543_p10), %s4706_s3, %s2992_s7 }
 0x5bd   : > { %2925 = vst [vmem:[%s3575_s29 + $0x2d0] sm:$0xff] %v4240_v63  ;;  %3249 = vmatprep.subr.mxu0 %v4184_v39 }
 0x5be   : > { %3250 = vmatpush3.msra.mxu0 %v4184_v39 }
 0x5bf   : > { %3251 = vmatprep.subr.mxu0 %v4198_v34 }
 0x5c0   : > { %3252 = vmatpush3.msra.mxu0 %v4198_v34 }
 0x5c1   : > { %3253 = vmatprep.subr.mxu0 %v4223_v51 }
 0x5c2   : > { %3254 = vmatpush3.msra.mxu0 %v4223_v51 }
 0x5c3   : > { %3255 = vmatprep.subr.mxu0 %v4240_v63 }
 0x5c4   : > { %3256 = vmatpush3.msra.mxu0 %v4240_v63 }
 0x5c5   : > { %3257 = vmatprep.subr.mxu0 %v4193_v25 }
 0x5c6   : > { %3258 = vmatpush3.msra.mxu0 %v4193_v25 }
 0x5c7   : > { %3259 = vmatprep.subr.mxu0 %v4208_v47 }
 0x5c8   : > { %3260 = vmatpush3.msra.mxu0 %v4208_v47 }
 0x5c9   : > { %3261 = vmatprep.subr.mxu0 %v2931_v53 }
 0x5ca   : > { %3262 = vmatpush3.msra.mxu0 %v2931_v53 }
 0x5cb   : > { %3264 = vmatmul.mubr.msk.f32.vlgmr.msra.gmra.mxu0 %vm401_vm0, %v4144_v57 }
 0x5cc   : > { %3266 = vmatprep.mubr.msk.f32.mxu0 %vm401_vm0, %v4151_v54 }
 0x5cf   : > { %3267 = vmatmul.mubr.msk.f32.gmra.mxu0 %vm401_vm0, %v4158_v55 }
 0x68b   : > { %v3265_v38 = vpop.f32.mrf.mxu0 }
 0x68c   : > { %v1778_v0 = vmul.f32 0.1, %v3265_v38 }
 0x68d   : > { %v1758_v42 = vpop.f32.mrf.mxu0 }
 0x68e   : > { %v1782_v43 = vadd.f32 %v1778_v0, %v4174_v14  ;;  %v1777_v1 = vmul.f32 0.1, %v1758_v42  ;;  %v2937_v3 = vclamps-f32 %v1778_v0, 1.0 }
 0x68f   : > { %v3268_v44 = vpop.f32.mrf.mxu0 }
 0x690   : > { %v1786_v2 = vmax.f32 %v1782_v43, 0.0  ;;  %vm1826_vm13 = vcmp.ge.f32.partialorder %v1782_v43, 1.0  ;;  %vm1830_vm14 = vcmp.le.f32.partialorder %v1782_v43, -1.0  ;;  %v1781_v35 = vadd.f32 %v1777_v1, %v4189_v29 }
 0x691   : > { %vm1834_vm15 = vmor %vm1826_vm13, %vm1830_vm14  ;;  %v1780_v4 = vmul.f32 0.1, %v3268_v44  ;;  %v1768_v5 = vpop.f32.mrf.mxu0  ;;  %v2936_v10 = vclamps-f32 %v1777_v1, 1.0 }
 0x692   : > { %v1790_v6 = vmin.f32 %v1786_v2, 1.0  ;;  %v2941_v7 = vsel %vm1834_vm15, 1.0, %v3444_v60  ;;  %v1785_v8 = vmax.f32 %v1781_v35, 0.0  ;;  %vm1825_vm1 = vcmp.ge.f32.partialorder %v1781_v35, 1.0 }
 0x693   : > { %v1846_v9 = vsub.f32 1.0, %v2941_v7  ;;  %2945 = vst [vmem:[%s3575_s29 + $0x308] sm:$0xff] %v2941_v7  ;;  %vm1829_vm2 = vcmp.le.f32.partialorder %v1781_v35, -1.0  ;;  %v1784_v11 = vadd.f32 %v1780_v4, %v4212_v24  ;;  %v2939_v14 = vclamps-f32 %v1780_v4, 1.0 }
 0x694   : > { %v1802_v12 = vmul.f32 %v2937_v3, %v1790_v6  ;;  %v1789_v13 = vmin.f32 %v1785_v8, 1.0  ;;  %vm1833_vm3 = vmor %vm1825_vm1, %vm1829_vm2  ;;  %v1779_v15 = vmul.f32 0.1, %v1768_v5 }
 0x695   : > { %v4274_v16 = vmul.f32 %v1846_v9, %v1782_v43  ;;  %v2940_v17 = vsel %vm1833_vm3, 1.0, %v3444_v60  ;;  %v1788_v19 = vmax.f32 %v1784_v11, 0.0  ;;  %vm1828_vm4 = vcmp.ge.f32.partialorder %v1784_v11, 1.0 }
 0x696   : > { %v1806_v20 = vsub.f32 %v1802_v12, %v4193_v25  ;;  %v1818_v22 = vsub.f32 %v1802_v12, %v4184_v39  ;;  %v1801_v23 = vmul.f32 %v2936_v10, %v1789_v13  ;;  %v1845_v28 = vsub.f32 1.0, %v2940_v17  ;;  %2944 = vst [vmem:[%s3575_s29 + $0x300] sm:$0xff] %v2940_v17 }
 0x697   : > { %2949 = vst [vmem:[%s3575_s29 + $0x328] sm:$0xff] %v4274_v16  ;;  %v1792_v18 = vmin.f32 %v1788_v19, 1.0  ;;  %vm1832_vm5 = vcmp.le.f32.partialorder %v1784_v11, -1.0  ;;  %v1783_v36 = vadd.f32 %v1779_v15, %v4237_v30  ;;  %v2938_v21 = vclamps-f32 %v1779_v15, 1.0 }
 0x698   : > { %v1810_v27 = vmul.f32 0.1, %v1806_v20  ;;  %v4284_v29 = vadd.f32 %v1818_v22, %v4184_v39  ;;  %v1805_v31 = vsub.f32 %v1801_v23, %v4208_v47  ;;  %v1817_v37 = vsub.f32 %v1801_v23, %v4198_v34  ;;  %vm1836_vm6 = vmor %vm1828_vm4, %vm1832_vm5 }
 0x699   : > { %v4289_v33 = vmul.f32 %v1845_v28, %v1781_v35  ;;  %v1804_v26 = vmul.f32 %v2939_v14, %v1792_v18  ;;  %v2943_v40 = vsel %vm1836_vm6, 1.0, %v3444_v60  ;;  %v1787_v50 = vmax.f32 %v1783_v36, 0.0 }
 0x69a   : > { %v4293_v45 = vadd.f32 %v1810_v27, %v4193_v25  ;;  %2957 = vst [vmem:[%s3575_s29 + $0x368] sm:$0xff] %v4284_v29  ;;  %v1809_v39 = vmul.f32 0.1, %v1805_v31  ;;  %v4298_v49 = vadd.f32 %v1817_v37, %v4198_v34  ;;  %v1848_v24 = vsub.f32 1.0, %v2943_v40  ;;  %2947 = vst [vmem:[%s3575_s29 + $0x318] sm:$0xff] %v2943_v40 }
 0x69b   : > { %2948 = vst [vmem:[%s3575_s29 + $0x320] sm:$0xff] %v4289_v33  ;;  %v1808_v32 = vsub.f32 %v1804_v26, %v4223_v51  ;;  %v1820_v52 = vsub.f32 %v1804_v26, %v4215_v41  ;;  %v1791_v48 = vmin.f32 %v1787_v50, 1.0  ;;  %vm1827_vm7 = vcmp.ge.f32.partialorder %v1783_v36, 1.0 }
 0x69c   : > { %2953 = vst [vmem:[%s3575_s29 + $0x348] sm:$0xff] %v4293_v45  ;;  %v4308_v25 = vadd.f32 %v1809_v39, %v4208_v47  ;;  %2956 = vst [vmem:[%s3575_s29 + $0x360] sm:$0xff] %v4298_v49  ;;  %v4312_v34 = vmul.f32 %v1848_v24, %v1784_v11  ;;  %vm1831_vm8 = vcmp.le.f32.partialorder %v1783_v36, -1.0 }
 0x69d   : > { %v1812_v56 = vmul.f32 0.1, %v1808_v32  ;;  %v4315_v46 = vadd.f32 %v1820_v52, %v4215_v41  ;;  %v1803_v58 = vmul.f32 %v2938_v21, %v1791_v48  ;;  %vm1835_vm9 = vmor %vm1827_vm7, %vm1831_vm8 }
 0x69e   : > { %2952 = vst [vmem:[%s3575_s29 + $0x340] sm:$0xff] %v4308_v25  ;;  %2951 = vst [vmem:[%s3575_s29 + $0x338] sm:$0xff] %v4312_v34  ;;  %v2942_v47 = vsel %vm1835_vm9, 1.0, %v3444_v60 }
 0x69f   : > { %v4323_v61 = vadd.f32 %v1812_v56, %v4223_v51  ;;  %2959 = vst [vmem:[%s3575_s29 + $0x378] sm:$0xff] %v4315_v46  ;;  %v1807_v30 = vsub.f32 %v1803_v58, %v4240_v63  ;;  %v1819_v41 = vsub.f32 %v1803_v58, %v4235_v62  ;;  %v1847_v53 = vsub.f32 1.0, %v2942_v47  ;;  %2946 = vst [vmem:[%s3575_s29 + $0x310] sm:$0xff] %v2942_v47 }
 0x6a0   : > { %3269 = vmatprep.subr.mxu1 %v4315_v46 }
 0x6a1   : > { %3270 = vmatpush3.msra.mxu1 %v4315_v46  ;;  %2955 = vst [vmem:[%s3575_s29 + $0x358] sm:$0xff] %v4323_v61  ;;  %v1811_v38 = vmul.f32 0.1, %v1807_v30  ;;  %v4335_v0 = vadd.f32 %v1819_v41, %v4235_v62  ;;  %v4337_v51 = vmul.f32 %v1847_v53, %v1783_v36 }
 0x6a3   : > { %v4340_v42 = vadd.f32 %v1811_v38, %v4240_v63  ;;  %2950 = vst [vmem:[%s3575_s29 + $0x330] sm:$0xff] %v4337_v51  ;;  %2958 = vst [vmem:[%s3575_s29 + $0x370] sm:$0xff] %v4335_v0  ;;  %3271 = vmatprep.subr.mxu1 %v4335_v0 }
 0x6a4   : > { %3272 = vmatpush3.msra.mxu1 %v4335_v0 }
 0x6a5   : > { %2954 = vst [vmem:[%s3575_s29 + $0x350] sm:$0xff] %v4340_v42  ;;  %3273 = vmatprep.subr.mxu1 %v4284_v29 }
 0x6a6   : > { %3274 = vmatpush3.msra.mxu1 %v4284_v29 }
 0x6a7   : > { %3275 = vmatprep.subr.mxu1 %v4298_v49 }
 0x6a8   : > { %3276 = vmatpush3.msra.mxu1 %v4298_v49 }
 0x6a9   : > { %3277 = vmatprep.subr.mxu1 %v4323_v61 }
 0x6aa   : > { %3278 = vmatpush3.msra.mxu1 %v4323_v61 }
 0x6ab   : > { %3279 = vmatprep.subr.mxu1 %v4340_v42 }
 0x6ac   : > { %3280 = vmatpush3.msra.mxu1 %v4340_v42 }
 0x6ad   : > { %3281 = vmatprep.subr.mxu1 %v4293_v45 }
 0x6ae   : > { %3282 = vmatpush3.msra.mxu1 %v4293_v45 }
 0x6af   : > { %3283 = vmatprep.subr.mxu1 %v4308_v25 }
 0x6b0   : > { %3284 = vmatpush3.msra.mxu1 %v4308_v25 }
 0x6b1   : > { %3285 = vmatprep.subr.mxu1 %v4167_v59 }
 0x6b2   : > { %3286 = vmatpush3.msra.mxu1 %v4167_v59 }
 0x6b3   : > { %3288 = vmatmul.mubr.msk.f32.vlgmr.msra.gmra.mxu1 %vm401_vm0, %v4144_v57 }
 0x6b4   : > { %3290 = vmatprep.mubr.msk.f32.mxu1 %vm401_vm0, %v4151_v54 }
 0x6b7   : > { %3291 = vmatmul.mubr.msk.f32.gmra.mxu1 %vm401_vm0, %v4158_v55 }
 0x773   : > { %v3289_v62 = vpop.f32.mrf.mxu1 }
 0x774   : > { %v1991_v63 = vmul.f32 0.1, %v3289_v62  ;;  %v2400_v62 = vld [vmem:[%s3575_s29 + $0x20] sm:$0xff] (%p3543_p10) }
 0x775   : > { %v1971_v43 = vpop.f32.mrf.mxu1  ;;  %2401 = vst [vmem:[%s4427_s10 + $0x40] sm:$0xff] (%p3543_p10), %v2400_v62  ;;  %v2528_v62 = vld [vmem:[%s3575_s29 + $0x220] sm:$0xff] (%p3543_p10) }
 0x776   : > { %v1995_v1 = vadd.f32 %v1991_v63, %v4274_v16  ;;  %v1990_v44 = vmul.f32 0.1, %v1971_v43  ;;  %v2966_v57 = vclamps-f32 %v1991_v63, 1.0  ;;  %v2402_v63 = vld [vmem:[%s3575_s29 + $0x28] sm:$0xff] (%p3543_p10)  ;;  %v2404_v43 = vld [vmem:[%s3575_s29 + $0x30] sm:$0xff] (%p3543_p10)  ;;  %2529 = vst [vmem:[%s4427_s10 + $0x440] sm:$0xff] (%p3543_p10), %v2528_v62 }
 0x777   : > { %v3292_v2 = vpop.f32.mrf.mxu1  ;;  %2403 = vst [vmem:[%s4427_s10 + $0x50] sm:$0xff] (%p3543_p10), %v2402_v63  ;;  %2405 = vst [vmem:[%s4427_s10 + $0x60] sm:$0xff] (%p3543_p10), %v2404_v43  ;;  %v2530_v63 = vld [vmem:[%s3575_s29 + $0x228] sm:$0xff] (%p3543_p10)  ;;  %v2532_v43 = vld [vmem:[%s3575_s29 + $0x230] sm:$0xff] (%p3543_p10) }
 0x778   : > { %v1999_v35 = vmax.f32 %v1995_v1, 0.0  ;;  %vm2039_vm10 = vcmp.ge.f32.partialorder %v1995_v1, 1.0  ;;  %vm2043_vm11 = vcmp.le.f32.partialorder %v1995_v1, -1.0  ;;  %v1994_v59 = vadd.f32 %v1990_v44, %v4289_v33  ;;  %2531 = vst [vmem:[%s4427_s10 + $0x450] sm:$0xff] (%p3543_p10), %v2530_v63  ;;  %2533 = vst [vmem:[%s4427_s10 + $0x460] sm:$0xff] (%p3543_p10), %v2532_v43 }
 0x779   : > { %vm2047_vm12 = vmor %vm2039_vm10, %vm2043_vm11  ;;  %v1993_v3 = vmul.f32 0.1, %v3292_v2  ;;  %v1981_v54 = vpop.f32.mrf.mxu1  ;;  %v2965_v7 = vclamps-f32 %v1990_v44, 1.0  ;;  %v2408_v44 = vld [vmem:[%s3575_s29 + $0x40] sm:$0xff] (%p3543_p10)  ;;  %v2410_v2 = vld [vmem:[%s3575_s29 + $0x48] sm:$0xff] (%p3543_p10) }
 0x77a   : > { %v2003_v4 = vmin.f32 %v1999_v35, 1.0  ;;  %v2970_v55 = vsel %vm2047_vm12, 1.0, %v3444_v60  ;;  %v1998_v5 = vmax.f32 %v1994_v59, 0.0  ;;  %vm2038_vm0 = vcmp.ge.f32.partialorder %v1994_v59, 1.0  ;;  %v2412_v35 = vld [vmem:[%s3575_s29 + $0x50] sm:$0xff] (%p3543_p10)  ;;  %2409 = vst [vmem:[%s4427_s10 + $0x80] sm:$0xff] (%p3543_p10), %v2408_v44 }
 0x77b   : > { %v2059_v6 = vsub.f32 1.0, %v2970_v55  ;;  %2974 = vst [vmem:[%s3575_s29 + $0x388] sm:$0xff] %v2970_v55  ;;  %vm2042_vm13 = vcmp.le.f32.partialorder %v1994_v59, -1.0  ;;  %v1997_v8 = vadd.f32 %v1993_v3, %v4312_v34  ;;  %v2968_v11 = vclamps-f32 %v1993_v3, 1.0  ;;  %2411 = vst [vmem:[%s4427_s10 + $0x90] sm:$0xff] (%p3543_p10), %v2410_v2  ;;  %v2418_v3 = vld [vmem:[%s3575_s29 + $0x68] sm:$0xff] (%p3543_p10) }
 0x77c   : > { %v2015_v9 = vmul.f32 %v2966_v57, %v2003_v4  ;;  %v2002_v10 = vmin.f32 %v1998_v5, 1.0  ;;  %vm2046_vm14 = vmor %vm2038_vm0, %vm2042_vm13  ;;  %v1992_v12 = vmul.f32 0.1, %v1981_v54  ;;  %2413 = vst [vmem:[%s4427_s10 + $0xa0] sm:$0xff] (%p3543_p10), %v2412_v35  ;;  %v2416_v57 = vld [vmem:[%s3575_s29 + $0x60] sm:$0xff] (%p3543_p10)  ;;  %v2420_v54 = vld [vmem:[%s3575_s29 + $0x70] sm:$0xff] (%p3543_p10) }
 0x77d   : > { %v2063_v13 = vmul.f32 %v2059_v6, %v1995_v1  ;;  %v2969_v14 = vsel %vm2046_vm14, 1.0, %v3444_v60  ;;  %v2001_v15 = vmax.f32 %v1997_v8, 0.0  ;;  %vm2041_vm15 = vcmp.ge.f32.partialorder %v1997_v8, 1.0  ;;  %v2406_v1 = vld [vmem:[%s3575_s29 + $0x38] sm:$0xff] (%p3543_p10)  ;;  %2417 = vst [vmem:[%s4427_s10 + $0xc0] sm:$0xff] (%p3543_p10), %v2416_v57  ;;  %2419 = vst [vmem:[%s4427_s10 + $0xd0] sm:$0xff] (%p3543_p10), %v2418_v3 }
 0x77e   : > { %v2019_v16 = vsub.f32 %v2015_v9, %v4293_v45  ;;  %v2031_v17 = vsub.f32 %v2015_v9, %v4284_v29  ;;  %v2014_v19 = vmul.f32 %v2965_v7, %v2002_v10  ;;  %v2058_v20 = vsub.f32 1.0, %v2969_v14  ;;  %2973 = vst [vmem:[%s3575_s29 + $0x380] sm:$0xff] %v2969_v14  ;;  %2407 = vst [vmem:[%s4427_s10 + $0x70] sm:$0xff] (%p3543_p10), %v2406_v1  ;;  %v2422_v4 = vld [vmem:[%s3575_s29 + $0x78] sm:$0xff] (%p3543_p10)  ;;  %v2424_v55 = vld [vmem:[%s3575_s29 + $0x80] sm:$0xff] (%p3543_p10) }
 0x77f   : > { %2978 = vst [vmem:[%s3575_s29 + $0x3a8] sm:$0xff] %v2063_v13  ;;  %2087 = vst [vmem:[#allocation3 + $0x10] sm:$0xff] %v2063_v13  ;;  %v2005_v22 = vmin.f32 %v2001_v15, 1.0  ;;  %vm2045_vm1 = vcmp.le.f32.partialorder %v1997_v8, -1.0  ;;  %v1996_v23 = vadd.f32 %v1992_v12, %v4337_v51  ;;  %v2967_v28 = vclamps-f32 %v1992_v12, 1.0  ;;  %v2426_v5 = vld [vmem:[%s3575_s29 + $0x88] sm:$0xff] (%p3543_p10) }
 0x780   : > { %v2023_v18 = vmul.f32 0.1, %v2019_v16  ;;  %v2035_v36 = vadd.f32 %v2031_v17, %v4284_v29  ;;  %v2018_v21 = vsub.f32 %v2014_v19, %v4308_v25  ;;  %v2030_v27 = vsub.f32 %v2014_v19, %v4298_v49  ;;  %vm2049_vm2 = vmor %vm2041_vm15, %vm2045_vm1  ;;  %2421 = vst [vmem:[%s4427_s10 + $0xe0] sm:$0xff] (%p3543_p10), %v2420_v54  ;;  %v2428_v6 = vld [vmem:[%s3575_s29 + $0x90] sm:$0xff] (%p3543_p10)  ;;  %v2430_v7 = vld [vmem:[%s3575_s29 + $0x98] sm:$0xff] (%p3543_p10) }
 0x781   : > { %v2062_v31 = vmul.f32 %v2058_v20, %v1994_v59  ;;  %v2017_v37 = vmul.f32 %v2968_v11, %v2005_v22  ;;  %v2972_v33 = vsel %vm2049_vm2, 1.0, %v3444_v60  ;;  %v2000_v26 = vmax.f32 %v1996_v23, 0.0  ;;  %v2414_v59 = vld [vmem:[%s3575_s29 + $0x58] sm:$0xff] (%p3543_p10)  ;;  %2423 = vst [vmem:[%s4427_s10 + $0xf0] sm:$0xff] (%p3543_p10), %v2422_v4  ;;  %2425 = vst [vmem:[%s4427_s10 + $0x100] sm:$0xff] (%p3543_p10), %v2424_v55  ;;  %v2434_v9 = vld [vmem:[%s3575_s29 + $0xa8] sm:$0xff] (%p3543_p10) }
 0x782   : > { %v2027_v40 = vadd.f32 %v2023_v18, %v4293_v45  ;;  %2986 = vst [vmem:[%s3575_s29 + $0x3e8] sm:$0xff] %v2035_v36  ;;  %2095 = vst [vmem:[#allocation2 + $0x30] sm:$0xff] %v2035_v36  ;;  %v2022_v50 = vmul.f32 0.1, %v2018_v21  ;;  %v2034_v29 = vadd.f32 %v2030_v27, %v4298_v49  ;;  %v2061_v39 = vsub.f32 1.0, %v2972_v33  ;;  %v2436_v10 = vld [vmem:[%s3575_s29 + $0xb0] sm:$0xff] (%p3543_p10) }
 0x783   : > { %2976 = vst [vmem:[%s3575_s29 + $0x398] sm:$0xff] %v2972_v33  ;;  %2977 = vst [vmem:[%s3575_s29 + $0x3a0] sm:$0xff] %v2062_v31  ;;  %v2021_v24 = vsub.f32 %v2017_v37, %v4323_v61  ;;  %v2033_v32 = vsub.f32 %v2017_v37, %v4315_v46  ;;  %v2004_v52 = vmin.f32 %v2000_v26, 1.0  ;;  %vm2040_vm3 = vcmp.ge.f32.partialorder %v1996_v23, 1.0  ;;  %v2438_v11 = vld [vmem:[%s3575_s29 + $0xb8] sm:$0xff] (%p3543_p10)  ;;  %v2440_v12 = vld [vmem:[%s3575_s29 + $0xc0] sm:$0xff] (%p3543_p10) }
 0x784   : > { %2086 = vst [vmem:[#allocation3 + $0x8] sm:$0xff] %v2062_v31  ;;  %2982 = vst [vmem:[%s3575_s29 + $0x3c8] sm:$0xff] %v2027_v40  ;;  %v2026_v45 = vadd.f32 %v2022_v50, %v4308_v25  ;;  %v2065_v49 = vmul.f32 %v2061_v39, %v1997_v8  ;;  %vm2044_vm4 = vcmp.le.f32.partialorder %v1996_v23, -1.0  ;;  %v2432_v8 = vld [vmem:[%s3575_s29 + $0xa0] sm:$0xff] (%p3543_p10)  ;;  %v2442_v13 = vld [vmem:[%s3575_s29 + $0xc8] sm:$0xff] (%p3543_p10) }
 0x785   : > { %2091 = vst [vmem:[#allocation2 + $0x8] sm:$0xff] %v2027_v40  ;;  %2985 = vst [vmem:[%s3575_s29 + $0x3e0] sm:$0xff] %v2034_v29  ;;  %v2025_v48 = vmul.f32 0.1, %v2021_v24  ;;  %v2037_v34 = vadd.f32 %v2033_v32, %v4315_v46  ;;  %v2016_v56 = vmul.f32 %v2967_v28, %v2004_v52  ;;  %v2444_v14 = vld [vmem:[%s3575_s29 + $0xd0] sm:$0xff] (%p3543_p10)  ;;  %v2446_v15 = vld [vmem:[%s3575_s29 + $0xd8] sm:$0xff] (%p3543_p10) }
 0x786   : > { %2094 = vst [vmem:[#allocation2 + $0x28] sm:$0xff] %v2034_v29  ;;  %vm2048_vm5 = vmor %vm2040_vm3, %vm2044_vm4  ;;  %v2448_v16 = vld [vmem:[%s3575_s29 + $0xe0] sm:$0xff] (%p3543_p10)  ;;  %v2450_v17 = vld [vmem:[%s3575_s29 + $0xe8] sm:$0xff] (%p3543_p10) }
 0x787   : > { %2981 = vst [vmem:[%s3575_s29 + $0x3c0] sm:$0xff] %v2026_v45  ;;  %2090 = vst [vmem:[#allocation2 + $0x38] sm:$0xff] %v2026_v45  ;;  %v2971_v58 = vsel %vm2048_vm5, 1.0, %v3444_v60  ;;  %v2029_v25 = vadd.f32 %v2025_v48, %v4323_v61  ;;  %v2020_v47 = vsub.f32 %v2016_v56, %v4340_v42  ;;  %v2032_v30 = vsub.f32 %v2016_v56, %v4335_v0  ;;  %v2392_v60 = vld [vmem:[%s3575_s29] sm:$0xff] (%p3543_p10)  ;;  %v2394_v61 = vld [vmem:[%s3575_s29 + $0x8] sm:$0xff] (%p3543_p10) }
 0x788   : > { %2980 = vst [vmem:[%s3575_s29 + $0x3b8] sm:$0xff] %v2065_v49  ;;  %2089 = vst [vmem:[#allocation3 + $0x18] sm:$0xff] %v2065_v49  ;;  %v2060_v46 = vsub.f32 1.0, %v2971_v58  ;;  %v2452_v19 = vld [vmem:[%s3575_s29 + $0xf0] sm:$0xff] (%p3543_p10)  ;;  %v2454_v20 = vld [vmem:[%s3575_s29 + $0xf8] sm:$0xff] (%p3543_p10) }
 0x789   : > { %2988 = vst [vmem:[%s3575_s29 + $0x3f8] sm:$0xff] %v2037_v34  ;;  %2097 = vst [vmem:[#allocation2 + $0x40] sm:$0xff] %v2037_v34  ;;  %v2024_v41 = vmul.f32 0.1, %v2020_v47  ;;  %v2036_v53 = vadd.f32 %v2032_v30, %v4335_v0  ;;  %v2396_v0 = vld [vmem:[%s3575_s29 + $0x10] sm:$0xff] (%p3543_p10)  ;;  %v2456_v22 = vld [vmem:[%s3575_s29 + $0x100] sm:$0xff] (%p3543_p10) }
 0x78a   : > { %2975 = vst [vmem:[%s3575_s29 + $0x390] sm:$0xff] %v2971_v58  ;;  %2984 = vst [vmem:[%s3575_s29 + $0x3d8] sm:$0xff] %v2029_v25  ;;  %v2064_v38 = vmul.f32 %v2060_v46, %v1996_v23  ;;  %2104 = sbr.rel (!%p3543_p10) target bundleno = 1991 (0x7c7), region = 116  ;;  %v2458_v23 = vld [vmem:[%s3575_s29 + $0x108] sm:$0xff] (%p3543_p10)  ;;  %v2460_v28 = vld [vmem:[%s3575_s29 + $0x110] sm:$0xff] (%p3543_p10) }
 0x78b   : > { %2093 = vst [vmem:[#allocation2 + $0x18] sm:$0xff] %v2029_v25  ;;  %v2028_v51 = vadd.f32 %v2024_v41, %v4340_v42  ;;  %2987 = vst [vmem:[%s3575_s29 + $0x3f0] sm:$0xff] %v2036_v53  ;;  %v2398_v42 = vld [vmem:[%s3575_s29 + $0x18] sm:$0xff] (%p3543_p10)  ;;  %v2464_v36 = vld [vmem:[%s3575_s29 + $0x120] sm:$0xff] (%p3543_p10) }
 0x78c   : > { %2979 = vst [vmem:[%s3575_s29 + $0x3b0] sm:$0xff] %v2064_v38  ;;  %2088 = vst [vmem:[#allocation3] sm:$0xff] %v2064_v38  ;;  %v2462_v18 = vld [vmem:[%s3575_s29 + $0x118] sm:$0xff] (%p3543_p10)  ;;  %v2466_v21 = vld [vmem:[%s3575_s29 + $0x128] sm:$0xff] (%p3543_p10) }
 0x78d   : > { %2096 = vst [vmem:[#allocation2] sm:$0xff] %v2036_v53  ;;  %2983 = vst [vmem:[%s3575_s29 + $0x3d0] sm:$0xff] %v2028_v51  ;;  %v2468_v27 = vld [vmem:[%s3575_s29 + $0x130] sm:$0xff] (%p3543_p10)  ;;  %v2470_v31 = vld [vmem:[%s3575_s29 + $0x138] sm:$0xff] (%p3543_p10) }
 0x78e   : > { %2092 = vst [vmem:[#allocation2 + $0x20] sm:$0xff] %v2028_v51  ;;  %2393 = vst [vmem:[%s4427_s10] sm:$0xff] (%p3543_p10), %v2392_v60  ;;  %v2472_v37 = vld [vmem:[%s3575_s29 + $0x140] sm:$0xff] (%p3543_p10)  ;;  %v2474_v33 = vld [vmem:[%s3575_s29 + $0x148] sm:$0xff] (%p3543_p10) }
 0x78f   : > { %2395 = vst [vmem:[%s4427_s10 + $0x10] sm:$0xff] %v2394_v61  ;;  %2397 = vst [vmem:[%s4427_s10 + $0x20] sm:$0xff] %v2396_v0  ;;  %v2476_v26 = vld [vmem:[%s3575_s29 + $0x150] sm:$0xff]  ;;  %v2478_v40 = vld [vmem:[%s3575_s29 + $0x158] sm:$0xff] }
 0x790   : > { %2399 = vst [vmem:[%s4427_s10 + $0x30] sm:$0xff] %v2398_v42  ;;  %2415 = vst [vmem:[%s4427_s10 + $0xb0] sm:$0xff] %v2414_v59  ;;  %v2480_v50 = vld [vmem:[%s3575_s29 + $0x160] sm:$0xff]  ;;  %v2482_v29 = vld [vmem:[%s3575_s29 + $0x168] sm:$0xff] }
 0x791   : > { %2427 = vst [vmem:[%s4427_s10 + $0x110] sm:$0xff] %v2426_v5  ;;  %2429 = vst [vmem:[%s4427_s10 + $0x120] sm:$0xff] %v2428_v6  ;;  %v2484_v39 = vld [vmem:[%s3575_s29 + $0x170] sm:$0xff]  ;;  %v2486_v24 = vld [vmem:[%s3575_s29 + $0x178] sm:$0xff] }
 0x792   : > { %2431 = vst [vmem:[%s4427_s10 + $0x130] sm:$0xff] %v2430_v7  ;;  %2433 = vst [vmem:[%s4427_s10 + $0x140] sm:$0xff] %v2432_v8  ;;  %v2488_v32 = vld [vmem:[%s3575_s29 + $0x180] sm:$0xff]  ;;  %v2490_v52 = vld [vmem:[%s3575_s29 + $0x188] sm:$0xff] }
 0x793   : > { %2435 = vst [vmem:[%s4427_s10 + $0x150] sm:$0xff] %v2434_v9  ;;  %2437 = vst [vmem:[%s4427_s10 + $0x160] sm:$0xff] %v2436_v10  ;;  %v2492_v45 = vld [vmem:[%s3575_s29 + $0x190] sm:$0xff]  ;;  %v2494_v49 = vld [vmem:[%s3575_s29 + $0x198] sm:$0xff] }
 0x794   : > { %2439 = vst [vmem:[%s4427_s10 + $0x170] sm:$0xff] %v2438_v11  ;;  %2441 = vst [vmem:[%s4427_s10 + $0x180] sm:$0xff] %v2440_v12  ;;  %v2496_v48 = vld [vmem:[%s3575_s29 + $0x1a0] sm:$0xff]  ;;  %v2498_v34 = vld [vmem:[%s3575_s29 + $0x1a8] sm:$0xff] }
 0x795   : > { %2443 = vst [vmem:[%s4427_s10 + $0x190] sm:$0xff] %v2442_v13  ;;  %2445 = vst [vmem:[%s4427_s10 + $0x1a0] sm:$0xff] %v2444_v14  ;;  %v2500_v56 = vld [vmem:[%s3575_s29 + $0x1b0] sm:$0xff]  ;;  %v2502_v58 = vld [vmem:[%s3575_s29 + $0x1b8] sm:$0xff] }
 0x796   : > { %2447 = vst [vmem:[%s4427_s10 + $0x1b0] sm:$0xff] %v2446_v15  ;;  %2449 = vst [vmem:[%s4427_s10 + $0x1c0] sm:$0xff] %v2448_v16  ;;  %v2504_v25 = vld [vmem:[%s3575_s29 + $0x1c0] sm:$0xff]  ;;  %v2506_v47 = vld [vmem:[%s3575_s29 + $0x1c8] sm:$0xff] }
 0x797   : > { %2451 = vst [vmem:[%s4427_s10 + $0x1d0] sm:$0xff] %v2450_v17  ;;  %2453 = vst [vmem:[%s4427_s10 + $0x1e0] sm:$0xff] %v2452_v19  ;;  %v2508_v30 = vld [vmem:[%s3575_s29 + $0x1d0] sm:$0xff]  ;;  %v2510_v46 = vld [vmem:[%s3575_s29 + $0x1d8] sm:$0xff] }
 0x798   : > { %2455 = vst [vmem:[%s4427_s10 + $0x1f0] sm:$0xff] %v2454_v20  ;;  %2457 = vst [vmem:[%s4427_s10 + $0x200] sm:$0xff] %v2456_v22  ;;  %v2512_v41 = vld [vmem:[%s3575_s29 + $0x1e0] sm:$0xff]  ;;  %v2514_v53 = vld [vmem:[%s3575_s29 + $0x1e8] sm:$0xff] }
 0x799   : > { %2459 = vst [vmem:[%s4427_s10 + $0x210] sm:$0xff] %v2458_v23  ;;  %2461 = vst [vmem:[%s4427_s10 + $0x220] sm:$0xff] %v2460_v28  ;;  %v2516_v38 = vld [vmem:[%s3575_s29 + $0x1f0] sm:$0xff]  ;;  %v2518_v51 = vld [vmem:[%s3575_s29 + $0x1f8] sm:$0xff] }
 0x79a   : > { %2463 = vst [vmem:[%s4427_s10 + $0x230] sm:$0xff] %v2462_v18  ;;  %2465 = vst [vmem:[%s4427_s10 + $0x240] sm:$0xff] %v2464_v36  ;;  %v2520_v60 = vld [vmem:[%s3575_s29 + $0x200] sm:$0xff]  ;;  %v2522_v61 = vld [vmem:[%s3575_s29 + $0x208] sm:$0xff] }
 0x79b   : > { %2467 = vst [vmem:[%s4427_s10 + $0x250] sm:$0xff] %v2466_v21  ;;  %2469 = vst [vmem:[%s4427_s10 + $0x260] sm:$0xff] %v2468_v27  ;;  %v2524_v0 = vld [vmem:[%s3575_s29 + $0x210] sm:$0xff]  ;;  %v2526_v42 = vld [vmem:[%s3575_s29 + $0x218] sm:$0xff] }
 0x79c   : > { %2471 = vst [vmem:[%s4427_s10 + $0x270] sm:$0xff] %v2470_v31  ;;  %2473 = vst [vmem:[%s4427_s10 + $0x280] sm:$0xff] %v2472_v37  ;;  %v2534_v1 = vld [vmem:[%s3575_s29 + $0x238] sm:$0xff]  ;;  %v2536_v44 = vld [vmem:[%s3575_s29 + $0x240] sm:$0xff] }
 0x79d   : > { %2475 = vst [vmem:[%s4427_s10 + $0x290] sm:$0xff] %v2474_v33  ;;  %2477 = vst [vmem:[%s4427_s10 + $0x2a0] sm:$0xff] %v2476_v26  ;;  %v2538_v2 = vld [vmem:[%s3575_s29 + $0x248] sm:$0xff]  ;;  %v2540_v35 = vld [vmem:[%s3575_s29 + $0x250] sm:$0xff] }
 0x79e   : > { %2479 = vst [vmem:[%s4427_s10 + $0x2b0] sm:$0xff] %v2478_v40  ;;  %2481 = vst [vmem:[%s4427_s10 + $0x2c0] sm:$0xff] %v2480_v50  ;;  %v2542_v59 = vld [vmem:[%s3575_s29 + $0x258] sm:$0xff]  ;;  %v2544_v57 = vld [vmem:[%s3575_s29 + $0x260] sm:$0xff] }
 0x79f   : > { %2483 = vst [vmem:[%s4427_s10 + $0x2d0] sm:$0xff] %v2482_v29  ;;  %2485 = vst [vmem:[%s4427_s10 + $0x2e0] sm:$0xff] %v2484_v39  ;;  %v2546_v3 = vld [vmem:[%s3575_s29 + $0x268] sm:$0xff]  ;;  %v2548_v54 = vld [vmem:[%s3575_s29 + $0x270] sm:$0xff] }
 0x7a0   : > { %2487 = vst [vmem:[%s4427_s10 + $0x2f0] sm:$0xff] %v2486_v24  ;;  %2489 = vst [vmem:[%s4427_s10 + $0x300] sm:$0xff] %v2488_v32  ;;  %v2550_v4 = vld [vmem:[%s3575_s29 + $0x278] sm:$0xff]  ;;  %v2552_v55 = vld [vmem:[%s3575_s29 + $0x280] sm:$0xff] }
 0x7a1   : > { %2491 = vst [vmem:[%s4427_s10 + $0x310] sm:$0xff] %v2490_v52  ;;  %2493 = vst [vmem:[%s4427_s10 + $0x320] sm:$0xff] %v2492_v45  ;;  %v2554_v5 = vld [vmem:[%s3575_s29 + $0x288] sm:$0xff]  ;;  %v2556_v6 = vld [vmem:[%s3575_s29 + $0x290] sm:$0xff] }
 0x7a2   : > { %2495 = vst [vmem:[%s4427_s10 + $0x330] sm:$0xff] %v2494_v49  ;;  %2497 = vst [vmem:[%s4427_s10 + $0x340] sm:$0xff] %v2496_v48  ;;  %v2558_v7 = vld [vmem:[%s3575_s29 + $0x298] sm:$0xff]  ;;  %v2560_v8 = vld [vmem:[%s3575_s29 + $0x2a0] sm:$0xff] }
 0x7a3   : > { %2499 = vst [vmem:[%s4427_s10 + $0x350] sm:$0xff] %v2498_v34  ;;  %2501 = vst [vmem:[%s4427_s10 + $0x360] sm:$0xff] %v2500_v56  ;;  %v2562_v9 = vld [vmem:[%s3575_s29 + $0x2a8] sm:$0xff]  ;;  %v2564_v10 = vld [vmem:[%s3575_s29 + $0x2b0] sm:$0xff] }
 0x7a4   : > { %2503 = vst [vmem:[%s4427_s10 + $0x370] sm:$0xff] %v2502_v58  ;;  %2505 = vst [vmem:[%s4427_s10 + $0x380] sm:$0xff] %v2504_v25  ;;  %v2566_v11 = vld [vmem:[%s3575_s29 + $0x2b8] sm:$0xff]  ;;  %v2568_v12 = vld [vmem:[%s3575_s29 + $0x2c0] sm:$0xff] }
 0x7a5   : > { %2507 = vst [vmem:[%s4427_s10 + $0x390] sm:$0xff] %v2506_v47  ;;  %2509 = vst [vmem:[%s4427_s10 + $0x3a0] sm:$0xff] %v2508_v30  ;;  %v2570_v13 = vld [vmem:[%s3575_s29 + $0x2c8] sm:$0xff]  ;;  %v2572_v14 = vld [vmem:[%s3575_s29 + $0x2d0] sm:$0xff] }
 0x7a6   : > { %2511 = vst [vmem:[%s4427_s10 + $0x3b0] sm:$0xff] %v2510_v46  ;;  %2513 = vst [vmem:[%s4427_s10 + $0x3c0] sm:$0xff] %v2512_v41  ;;  %v2574_v15 = vld [vmem:[%s3575_s29 + $0x2d8] sm:$0xff]  ;;  %v2576_v16 = vld [vmem:[%s3575_s29 + $0x2e0] sm:$0xff] }
 0x7a7   : > { %2515 = vst [vmem:[%s4427_s10 + $0x3d0] sm:$0xff] %v2514_v53  ;;  %2517 = vst [vmem:[%s4427_s10 + $0x3e0] sm:$0xff] %v2516_v38  ;;  %v2578_v17 = vld [vmem:[%s3575_s29 + $0x2e8] sm:$0xff]  ;;  %v2580_v19 = vld [vmem:[%s3575_s29 + $0x2f0] sm:$0xff] }
 0x7a8   : > { %2519 = vst [vmem:[%s4427_s10 + $0x3f0] sm:$0xff] %v2518_v51  ;;  %2521 = vst [vmem:[%s4427_s10 + $0x400] sm:$0xff] %v2520_v60  ;;  %v2582_v20 = vld [vmem:[%s3575_s29 + $0x2f8] sm:$0xff]  ;;  %v2584_v22 = vld [vmem:[%s3575_s29 + $0x300] sm:$0xff] }
 0x7a9   : > { %2523 = vst [vmem:[%s4427_s10 + $0x410] sm:$0xff] %v2522_v61  ;;  %2525 = vst [vmem:[%s4427_s10 + $0x420] sm:$0xff] %v2524_v0  ;;  %v2586_v23 = vld [vmem:[%s3575_s29 + $0x308] sm:$0xff]  ;;  %v2588_v28 = vld [vmem:[%s3575_s29 + $0x310] sm:$0xff] }
 0x7aa   : > { %2527 = vst [vmem:[%s4427_s10 + $0x430] sm:$0xff] %v2526_v42  ;;  %2535 = vst [vmem:[%s4427_s10 + $0x470] sm:$0xff] %v2534_v1  ;;  %v2590_v18 = vld [vmem:[%s3575_s29 + $0x318] sm:$0xff]  ;;  %v2592_v36 = vld [vmem:[%s3575_s29 + $0x320] sm:$0xff] }
 0x7ab   : > { %2537 = vst [vmem:[%s4427_s10 + $0x480] sm:$0xff] %v2536_v44  ;;  %2539 = vst [vmem:[%s4427_s10 + $0x490] sm:$0xff] %v2538_v2  ;;  %v2594_v21 = vld [vmem:[%s3575_s29 + $0x328] sm:$0xff]  ;;  %v2596_v27 = vld [vmem:[%s3575_s29 + $0x330] sm:$0xff] }
 0x7ac   : > { %2541 = vst [vmem:[%s4427_s10 + $0x4a0] sm:$0xff] %v2540_v35  ;;  %2543 = vst [vmem:[%s4427_s10 + $0x4b0] sm:$0xff] %v2542_v59  ;;  %v2598_v31 = vld [vmem:[%s3575_s29 + $0x338] sm:$0xff]  ;;  %v2600_v37 = vld [vmem:[%s3575_s29 + $0x340] sm:$0xff] }
 0x7ad   : > { %2545 = vst [vmem:[%s4427_s10 + $0x4c0] sm:$0xff] %v2544_v57  ;;  %2547 = vst [vmem:[%s4427_s10 + $0x4d0] sm:$0xff] %v2546_v3  ;;  %v2602_v33 = vld [vmem:[%s3575_s29 + $0x348] sm:$0xff]  ;;  %v2604_v26 = vld [vmem:[%s3575_s29 + $0x350] sm:$0xff] }
 0x7ae   : > { %2549 = vst [vmem:[%s4427_s10 + $0x4e0] sm:$0xff] %v2548_v54  ;;  %2551 = vst [vmem:[%s4427_s10 + $0x4f0] sm:$0xff] %v2550_v4  ;;  %v2606_v40 = vld [vmem:[%s3575_s29 + $0x358] sm:$0xff]  ;;  %v2608_v50 = vld [vmem:[%s3575_s29 + $0x360] sm:$0xff] }
 0x7af   : > { %2553 = vst [vmem:[%s4427_s10 + $0x500] sm:$0xff] %v2552_v55  ;;  %2555 = vst [vmem:[%s4427_s10 + $0x510] sm:$0xff] %v2554_v5  ;;  %v2610_v29 = vld [vmem:[%s3575_s29 + $0x368] sm:$0xff]  ;;  %v2612_v39 = vld [vmem:[%s3575_s29 + $0x370] sm:$0xff] }
 0x7b0   : > { %2557 = vst [vmem:[%s4427_s10 + $0x520] sm:$0xff] %v2556_v6  ;;  %2559 = vst [vmem:[%s4427_s10 + $0x530] sm:$0xff] %v2558_v7  ;;  %v2614_v24 = vld [vmem:[%s3575_s29 + $0x378] sm:$0xff]  ;;  %v2616_v32 = vld [vmem:[%s3575_s29 + $0x380] sm:$0xff] }
 0x7b1   : > { %2561 = vst [vmem:[%s4427_s10 + $0x540] sm:$0xff] %v2560_v8  ;;  %2563 = vst [vmem:[%s4427_s10 + $0x550] sm:$0xff] %v2562_v9  ;;  %v2618_v52 = vld [vmem:[%s3575_s29 + $0x388] sm:$0xff]  ;;  %v2620_v45 = vld [vmem:[%s3575_s29 + $0x390] sm:$0xff] }
 0x7b2   : > { %2565 = vst [vmem:[%s4427_s10 + $0x560] sm:$0xff] %v2564_v10  ;;  %2567 = vst [vmem:[%s4427_s10 + $0x570] sm:$0xff] %v2566_v11  ;;  %v2622_v49 = vld [vmem:[%s3575_s29 + $0x398] sm:$0xff]  ;;  %v2624_v48 = vld [vmem:[%s3575_s29 + $0x3a0] sm:$0xff] }
 0x7b3   : > { %2569 = vst [vmem:[%s4427_s10 + $0x580] sm:$0xff] %v2568_v12  ;;  %2571 = vst [vmem:[%s4427_s10 + $0x590] sm:$0xff] %v2570_v13  ;;  %v2626_v34 = vld [vmem:[%s3575_s29 + $0x3a8] sm:$0xff]  ;;  %v2628_v56 = vld [vmem:[%s3575_s29 + $0x3b0] sm:$0xff] }
 0x7b4   : > { %2573 = vst [vmem:[%s4427_s10 + $0x5a0] sm:$0xff] %v2572_v14  ;;  %2575 = vst [vmem:[%s4427_s10 + $0x5b0] sm:$0xff] %v2574_v15  ;;  %v2630_v58 = vld [vmem:[%s3575_s29 + $0x3b8] sm:$0xff]  ;;  %v2632_v25 = vld [vmem:[%s3575_s29 + $0x3c0] sm:$0xff] }
 0x7b5   : > { %2577 = vst [vmem:[%s4427_s10 + $0x5c0] sm:$0xff] %v2576_v16  ;;  %2579 = vst [vmem:[%s4427_s10 + $0x5d0] sm:$0xff] %v2578_v17  ;;  %v2634_v47 = vld [vmem:[%s3575_s29 + $0x3c8] sm:$0xff]  ;;  %v2636_v30 = vld [vmem:[%s3575_s29 + $0x3d0] sm:$0xff] }
 0x7b6   : > { %2581 = vst [vmem:[%s4427_s10 + $0x5e0] sm:$0xff] %v2580_v19  ;;  %2583 = vst [vmem:[%s4427_s10 + $0x5f0] sm:$0xff] %v2582_v20  ;;  %v2638_v46 = vld [vmem:[%s3575_s29 + $0x3d8] sm:$0xff]  ;;  %v2640_v41 = vld [vmem:[%s3575_s29 + $0x3e0] sm:$0xff] }
 0x7b7   : > { %2585 = vst [vmem:[%s4427_s10 + $0x600] sm:$0xff] %v2584_v22  ;;  %2587 = vst [vmem:[%s4427_s10 + $0x610] sm:$0xff] %v2586_v23  ;;  %v2642_v53 = vld [vmem:[%s3575_s29 + $0x3e8] sm:$0xff]  ;;  %v2644_v38 = vld [vmem:[%s3575_s29 + $0x3f0] sm:$0xff] }
 0x7b8   : > { %2589 = vst [vmem:[%s4427_s10 + $0x620] sm:$0xff] %v2588_v28  ;;  %2591 = vst [vmem:[%s4427_s10 + $0x630] sm:$0xff] %v2590_v18  ;;  %v2646_v51 = vld [vmem:[%s3575_s29 + $0x3f8] sm:$0xff] }
 0x7b9   : > { %2593 = vst [vmem:[%s4427_s10 + $0x640] sm:$0xff] %v2592_v36  ;;  %2595 = vst [vmem:[%s4427_s10 + $0x650] sm:$0xff] %v2594_v21 }
 0x7ba   : > { %2597 = vst [vmem:[%s4427_s10 + $0x660] sm:$0xff] %v2596_v27  ;;  %2599 = vst [vmem:[%s4427_s10 + $0x670] sm:$0xff] %v2598_v31 }
 0x7bb   : > { %2601 = vst [vmem:[%s4427_s10 + $0x680] sm:$0xff] %v2600_v37  ;;  %2603 = vst [vmem:[%s4427_s10 + $0x690] sm:$0xff] %v2602_v33 }
 0x7bc   : > { %2605 = vst [vmem:[%s4427_s10 + $0x6a0] sm:$0xff] %v2604_v26  ;;  %2607 = vst [vmem:[%s4427_s10 + $0x6b0] sm:$0xff] %v2606_v40 }
 0x7bd   : > { %2609 = vst [vmem:[%s4427_s10 + $0x6c0] sm:$0xff] %v2608_v50  ;;  %2611 = vst [vmem:[%s4427_s10 + $0x6d0] sm:$0xff] %v2610_v29 }
 0x7be   : > { %2613 = vst [vmem:[%s4427_s10 + $0x6e0] sm:$0xff] %v2612_v39  ;;  %2615 = vst [vmem:[%s4427_s10 + $0x6f0] sm:$0xff] %v2614_v24 }
 0x7bf   : > { %2617 = vst [vmem:[%s4427_s10 + $0x700] sm:$0xff] %v2616_v32  ;;  %2619 = vst [vmem:[%s4427_s10 + $0x710] sm:$0xff] %v2618_v52 }
 0x7c0   : > { %2621 = vst [vmem:[%s4427_s10 + $0x720] sm:$0xff] %v2620_v45  ;;  %2623 = vst [vmem:[%s4427_s10 + $0x730] sm:$0xff] %v2622_v49 }
 0x7c1   : > { %2625 = vst [vmem:[%s4427_s10 + $0x740] sm:$0xff] %v2624_v48  ;;  %2627 = vst [vmem:[%s4427_s10 + $0x750] sm:$0xff] %v2626_v34 }
 0x7c2   : > { %2629 = vst [vmem:[%s4427_s10 + $0x760] sm:$0xff] %v2628_v56  ;;  %2631 = vst [vmem:[%s4427_s10 + $0x770] sm:$0xff] %v2630_v58 }
 0x7c3   : > { %2633 = vst [vmem:[%s4427_s10 + $0x780] sm:$0xff] %v2632_v25  ;;  %2635 = vst [vmem:[%s4427_s10 + $0x790] sm:$0xff] %v2634_v47 }
 0x7c4   : > { %2637 = vst [vmem:[%s4427_s10 + $0x7a0] sm:$0xff] %v2636_v30  ;;  %2639 = vst [vmem:[%s4427_s10 + $0x7b0] sm:$0xff] %v2638_v46 }
 0x7c5   : > { %2641 = vst [vmem:[%s4427_s10 + $0x7c0] sm:$0xff] %v2640_v41  ;;  %2643 = vst [vmem:[%s4427_s10 + $0x7d0] sm:$0xff] %v2642_v53 }
 0x7c6   : > { %2645 = vst [vmem:[%s4427_s10 + $0x7e0] sm:$0xff] %v2644_v38  ;;  %2647 = vst [vmem:[%s4427_s10 + $0x7f0] sm:$0xff] %v2646_v51 }
 0x7c7 PF: > { %s13_s20 = sadd.s32 1, %s3442_s20   ;;  %s4710_s12 = smov %s3414_s13 }
 0x7c8   : > { %p10_p2 = scmp.ge.s32.totalorder %s13_s20, 6   ;;  %s4711_s13 = smov %s3548_s5 }
 0x7c9   : > { %s4712_s14 = smov %s3422_s15  ;;  %s4713_s15 = smov %s3551_s6 }
 0x7ca   : > { %s4714_s16 = smov %s3434_s18  ;;  %s4715_s17 = smov %s3438_s19 }
 0x7cb   : > { %s4716_s18 = smov %s4719_s21  ;;  %s4717_s19 = smov %s4723_s22 }
 0x7cc   :  { %12 = sbr.rel (!%p10_p2) target bundleno = 5 (0x5), region = 233 }

</bundles_post_ra>
